<compile_context>
chip_gen: v6e
topology: v6e:2x2x1
jax: 0.10.0
libtpu: 0.0.40
codegen_flags: <defaults>
</compile_context>

<pallas_src>
import jax
import jax.numpy as jnp
from jax.experimental import pallas as pl
from jax.experimental.pallas import tpu as pltpu

_BN_EPS = 1e-5


def _round_up(x, m):
    return ((x + m - 1) // m) * m


# --------------------------------------------------------------------------- kernels
def _make_conv_bn_kernel(m_valid, m_pad, relu, has_res):
    """Fused im2col-GEMM conv + training-mode BatchNorm + optional residual + ReLU."""

    def kernel(a_ref, w_ref, g_ref, b_ref, *rest):
        if has_res:
            r_ref, o_ref = rest
        else:
            (o_ref,) = rest
        # MXU matmul in bf16 with f32 accumulation (activation cast in-kernel).
        y = jnp.dot(a_ref[...].astype(jnp.bfloat16), w_ref[...],
                    preferred_element_type=jnp.float32)            # (m_pad, cout) f32
        cout = y.shape[1]
        inv_m = 1.0 / m_valid
        # rows >= m_valid of `a` are zero, so y's padded rows are exactly zero and
        # contribute nothing to the plain column sum.
        mean = jnp.sum(y, axis=0, keepdims=True) * inv_m
        diff = y - mean
        if m_valid < m_pad:
            valid = jax.lax.broadcasted_iota(jnp.int32, (m_pad, cout), 0) < m_valid
            diff = jnp.where(valid, diff, 0.0)
        var = jnp.sum(diff * diff, axis=0, keepdims=True) * inv_m   # biased, like PyTorch
        scale = g_ref[...] * jax.lax.rsqrt(var + _BN_EPS)
        out = diff * scale + b_ref[...]            # == (y - mean) * scale + beta
        if has_res:
            out = out + r_ref[...]
        if relu:
            out = jnp.maximum(out, 0.0)
        if m_valid < m_pad:
            out = jnp.where(valid, out, 0.0)       # keep padded rows exactly zero
        o_ref[...] = out

    return kernel


def _make_maxpool_kernel(k):
    def kernel(x_ref, o_ref):
        _, hp, wp, _ = x_ref.shape
        hd, wd = hp - k + 1, wp - k + 1
        m = x_ref[:, 0:hd, 0:wd, :]
        for i in range(k):
            for j in range(k):
                if i == 0 and j == 0:
                    continue
                m = jnp.maximum(m, x_ref[:, i:i + hd, j:j + wd, :])
        o_ref[...] = m
    return kernel


def _fc_kernel(a_ref, w_ref, b_ref, o_ref):
    y = jnp.dot(a_ref[...].astype(jnp.bfloat16), w_ref[...],
                preferred_element_type=jnp.float32)
    o_ref[...] = y + b_ref[...]


# --------------------------------------------------------------------------- call wrappers
def _conv_bn_call(a, w2d, gamma, beta, m_valid, relu, residual=None):
    m_pad, k = a.shape
    cout = w2d.shape[1]
    args = [a, w2d, gamma.reshape(1, cout), beta.reshape(1, cout)]
    in_specs = [pl.BlockSpec((m_pad, k), lambda i: (0, 0)),
                pl.BlockSpec((k, cout), lambda i: (0, 0)),
                pl.BlockSpec((1, cout), lambda i: (0, 0)),
                pl.BlockSpec((1, cout), lambda i: (0, 0))]
    if residual is not None:
        args.append(residual)
        in_specs.append(pl.BlockSpec((m_pad, cout), lambda i: (0, 0)))
    kernel = _make_conv_bn_kernel(m_valid, m_pad, relu, residual is not None)
    return pl.pallas_call(
        kernel,
        out_shape=jax.ShapeDtypeStruct((m_pad, cout), jnp.float32),
        grid=(1,),
        in_specs=in_specs,
        out_specs=pl.BlockSpec((m_pad, cout), lambda i: (0, 0)),
        compiler_params=pltpu.CompilerParams(dimension_semantics=("arbitrary",)),
    )(*args)


# --------------------------------------------------------------------------- model ops
def conv_block(act, w_hwio, gamma, beta, stride, padding, relu, residual=None):
    """Conv2d (bias-free; a bias is cancelled exactly by the batch-stat BN that follows)
    + BatchNorm2d (training mode) + optional residual + ReLU, as ONE fused Pallas call.

    act: {"arr": (m_pad, Cin) f32 with zero padding rows, "n","h","w"}.
    w_hwio: (kh, kw, Cin, Cout) f32.
    """
    n, hin, win = act["n"], act["h"], act["w"]
    kh, kw, cin, cout = w_hwio.shape
    hout = (hin + 2 * padding - kh) // stride + 1
    wout = (win + 2 * padding - kw) // stride + 1
    m_out = n * hout * wout
    m_pad = _round_up(m_out, 8)

    if hin == 1 and win == 1 and kh == 2 * padding + 1 and kw == 2 * padding + 1:
        # 1x1 spatial input: only the centre tap of the kxk window touches real data,
        # so the conv is exactly a (Cin -> Cout) matmul.  No im2col, no extra copies.
        a = act["arr"]                        # (m_pad, cin), rows >= n are zero
        w2d = w_hwio[padding, padding]        # (cin, cout)
    else:
        # General path: small wrapper-side im2col restricted to taps that see real data.
        # TODO(synk): fold these taps into the kernel's K reduction via manual DMA of
        # shifted windows to avoid materializing even these small patch matrices.
        x4 = act["arr"][:n * hin * win].reshape(n, hin, win, cin)
        xp = jnp.pad(x4, ((0, 0), (padding, padding), (padding, padding), (0, 0)))
        taps = []
        for i in range(kh):
            if not any(0 <= s * stride + i - padding < hin for s in range(hout)):
                continue
            for j in range(kw):
                if not any(0 <= s * stride + j - padding < win for s in range(wout)):
                    continue
                taps.append((i, j))
        views = [xp[:, i:i + stride * (hout - 1) + 1:stride,
                    j:j + stride * (wout - 1) + 1:stride, :] for (i, j) in taps]
        a = jnp.concatenate(views, axis=-1).reshape(m_out, len(taps) * cin)
        a = a.astype(jnp.bfloat16)
        w2d = jnp.concatenate([w_hwio[i, j] for (i, j) in taps], axis=0)

    # Zero-pad the GEMM K to a lane multiple and rows to a sublane multiple (no-op when
    # already aligned, which is the common case for the deep layers).
    k = a.shape[1]
    kp = _round_up(k, 128)
    if a.shape[0] != m_pad or kp != k:
        a = jnp.pad(a, ((0, m_pad - a.shape[0]), (0, kp - k)))
    if kp != k:
        w2d = jnp.pad(w2d, ((0, kp - k), (0, 0)))
    w2d = w2d.astype(jnp.bfloat16)

    y = _conv_bn_call(a, w2d, gamma, beta, m_out, relu, residual)
    return {"arr": y, "n": n, "h": hout, "w": wout}


def maxpool(act, k=3, stride=2, pad=1):
    """MaxPool2d(kernel=3, stride=2, padding=1): dense 3x3 max in one Pallas kernel,
    stride-2 subsample as a tiny wrapper slice (no 9x stacked copy)."""
    n, h, w = act["n"], act["h"], act["w"]
    c = act["arr"].shape[1]
    x4 = act["arr"][:n * h * w].reshape(n, h, w, c)
    xp = jnp.pad(x4, ((0, 0), (pad, pad), (pad, pad), (0, 0)),
                 constant_values=-jnp.inf)
    hd, wd = h + 2 * pad - k + 1, w + 2 * pad - k + 1
    dense = pl.pallas_call(
        _make_maxpool_kernel(k),
        out_shape=jax.ShapeDtypeStruct((n, hd, wd, c), jnp.float32),
        grid=(1,),
        in_specs=[pl.BlockSpec(xp.shape, lambda i: (0, 0, 0, 0))],
        out_specs=pl.BlockSpec((n, hd, wd, c), lambda i: (0, 0, 0, 0)),
        compiler_params=pltpu.CompilerParams(dimension_semantics=("arbitrary",)),
    )(xp)
    hout = (h + 2 * pad - k) // stride + 1
    wout = (w + 2 * pad - k) // stride + 1
    out = dense[:, 0:(hout - 1) * stride + 1:stride,
                0:(wout - 1) * stride + 1:stride, :]
    m = n * hout * wout
    arr = out.reshape(m, c)
    m_pad = _round_up(m, 8)
    if m_pad != m:
        arr = jnp.pad(arr, ((0, m_pad - m), (0, 0)))
    return {"arr": arr, "n": n, "h": hout, "w": wout}


def block_forward(act, p, stride):
    out = conv_block(act, p["conv1_w"], p["bn1_g"], p["bn1_b"],
                     stride=stride, padding=1, relu=True)
    cout = p["conv2_w"].shape[3]
    same = (out["h"], out["w"], cout) == (act["h"], act["w"], act["arr"].shape[1])
    # TODO(synk): the reference `out + x` is a shape mismatch (PyTorch would raise) for
    # every stride-2 / channel-changing Block (no downsample path); the add is skipped there.
    res = act["arr"] if same else None
    out = conv_block(out, p["conv2_w"], p["bn2_g"], p["bn2_b"],
                     stride=1, padding=1, relu=True, residual=res)
    return out


def resnet18_forward(params, x_nchw):
    n, _, h, w = x_nchw.shape
    x = jnp.transpose(x_nchw, (0, 2, 3, 1))              # NCHW -> NHWC
    act = {"arr": x.reshape(n * h * w, x.shape[-1]), "n": n, "h": h, "w": w}

    act = conv_block(act, params["conv1_w"], params["bn1_g"], params["bn1_b"],
                     stride=2, padding=3, relu=True)
    act = maxpool(act, 3, 2, 1)
    for layer in ("layer1", "layer2", "layer3", "layer4"):
        for bi, bp in enumerate(params[layer]):
            act = block_forward(act, bp, 2 if bi == 0 else 1)

    # AdaptiveAvgPool2d((1,1)) + flatten: spatial mean over the valid rows.
    c = act["arr"].shape[1]
    feat = act["arr"][:act["n"] * act["h"] * act["w"]]
    feat = feat.reshape(act["n"], act["h"] * act["w"], c).mean(axis=1)   # (N, 512)

    # Fully-connected layer: GEMM + bias fused in a single kernel.
    m_pad = _round_up(feat.shape[0], 8)
    if m_pad != feat.shape[0]:
        feat = jnp.pad(feat, ((0, m_pad - feat.shape[0]), (0, 0)))
    wfc = params["fc_w"].astype(jnp.bfloat16)
    nc = wfc.shape[1]
    out = pl.pallas_call(
        _fc_kernel,
        out_shape=jax.ShapeDtypeStruct((m_pad, nc), jnp.float32),
        grid=(1,),
        in_specs=[pl.BlockSpec(feat.shape, lambda i: (0, 0)),
                  pl.BlockSpec(wfc.shape, lambda i: (0, 0)),
                  pl.BlockSpec((1, nc), lambda i: (0, 0))],
        out_specs=pl.BlockSpec((m_pad, nc), lambda i: (0, 0)),
        compiler_params=pltpu.CompilerParams(dimension_semantics=("arbitrary",)),
    )(feat, wfc, params["fc_b"].reshape(1, nc))
    return out[:n]


# --------------------------------------------------------------------------- params
def init_params(key, num_classes=10):
    keys = iter(jax.random.split(key, 64))

    def convw(cout, cin, kh, kw):
        fan_in = cin * kh * kw
        return jax.random.normal(next(keys), (kh, kw, cin, cout), jnp.float32) * (2.0 / fan_in) ** 0.5

    params = {
        "conv1_w": convw(64, 3, 7, 7),
        "bn1_g": jnp.ones((64,), jnp.float32),
        "bn1_b": jnp.zeros((64,), jnp.float32),
    }
    plan = [("layer1", 64, 64), ("layer2", 64, 128), ("layer3", 128, 256), ("layer4", 256, 512)]
    for name, cin, cout in plan:
        blocks = []
        for i in range(2):
            ic = cin if i == 0 else cout
            blocks.append({
                "conv1_w": convw(cout, ic, 3, 3),
                "bn1_g": jnp.ones((cout,), jnp.float32),
                "bn1_b": jnp.zeros((cout,), jnp.float32),
                "conv2_w": convw(cout, cout, 3, 3),
                "bn2_g": jnp.ones((cout,), jnp.float32),
                "bn2_b": jnp.zeros((cout,), jnp.float32),
            })
        params[name] = blocks
    params["fc_w"] = jax.random.normal(next(keys), (512, num_classes), jnp.float32) * (1.0 / 512) ** 0.5
    params["fc_b"] = jnp.zeros((num_classes,), jnp.float32)
    return params


# --------------------------------------------------------------------------- main
if __name__ == "__main__":
    key = jax.random.PRNGKey(0)
    pkey, xkey = jax.random.split(key)
    params = init_params(pkey, num_classes=10)
    x = jax.random.normal(xkey, (2, 3, 16, 16), jnp.float32)  # NCHW, like the PyTorch module

    fwd = jax.jit(resnet18_forward)
    out = jax.block_until_ready(fwd(params, x))
    assert out.shape == (2, 10) and out.dtype == jnp.float32
    print("KERNEL_OK")
</pallas_src>

<mosaic_0001>
module attributes {stable_mosaic.version = 11 : i64} {
  func.func @kernel(%arg0: i32, %arg1: memref<2x10x10x64xf32, #tpu.memory_space<vmem>>, %arg2: memref<2x8x8x64xf32, #tpu.memory_space<vmem>>) attributes {dimension_semantics = [#tpu.dimension_semantics<arbitrary>], iteration_bounds = array<i64: 1>, scalar_prefetch = 0 : i64, scratch_operands = 0 : i64, tpu.core_type = #tpu.core_type<tc>, window_params = [{pipeline_mode = #tpu.pipeline_mode<synchronous>, transform_indices = @transform_0, window_bounds = array<i64: 2, 10, 10, 64>}, {pipeline_mode = #tpu.pipeline_mode<synchronous>, transform_indices = @transform_1, window_bounds = array<i64: 2, 8, 8, 64>}]} {
    %c0 = arith.constant 0 : index
    %c0_0 = arith.constant 0 : index
    %c0_1 = arith.constant 0 : index
    %c0_2 = arith.constant 0 : index
    %0 = vector.load %arg1[%c0, %c0_0, %c0_1, %c0_2] : memref<2x10x10x64xf32, #tpu.memory_space<vmem>>, vector<2x8x8x64xf32>
    %c0_3 = arith.constant 0 : index
    %c0_4 = arith.constant 0 : index
    %c1 = arith.constant 1 : index
    %c0_5 = arith.constant 0 : index
    %1 = vector.load %arg1[%c0_3, %c0_4, %c1, %c0_5] : memref<2x10x10x64xf32, #tpu.memory_space<vmem>>, vector<2x8x8x64xf32>
    %2 = arith.maximumf %0, %1 : vector<2x8x8x64xf32>
    %c0_6 = arith.constant 0 : index
    %c0_7 = arith.constant 0 : index
    %c2 = arith.constant 2 : index
    %c0_8 = arith.constant 0 : index
    %3 = vector.load %arg1[%c0_6, %c0_7, %c2, %c0_8] : memref<2x10x10x64xf32, #tpu.memory_space<vmem>>, vector<2x8x8x64xf32>
    %4 = arith.maximumf %2, %3 : vector<2x8x8x64xf32>
    %c0_9 = arith.constant 0 : index
    %c1_10 = arith.constant 1 : index
    %c0_11 = arith.constant 0 : index
    %c0_12 = arith.constant 0 : index
    %5 = vector.load %arg1[%c0_9, %c1_10, %c0_11, %c0_12] : memref<2x10x10x64xf32, #tpu.memory_space<vmem>>, vector<2x8x8x64xf32>
    %6 = arith.maximumf %4, %5 : vector<2x8x8x64xf32>
    %c0_13 = arith.constant 0 : index
    %c1_14 = arith.constant 1 : index
    %c1_15 = arith.constant 1 : index
    %c0_16 = arith.constant 0 : index
    %7 = vector.load %arg1[%c0_13, %c1_14, %c1_15, %c0_16] : memref<2x10x10x64xf32, #tpu.memory_space<vmem>>, vector<2x8x8x64xf32>
    %8 = arith.maximumf %6, %7 : vector<2x8x8x64xf32>
    %c0_17 = arith.constant 0 : index
    %c1_18 = arith.constant 1 : index
    %c2_19 = arith.constant 2 : index
    %c0_20 = arith.constant 0 : index
    %9 = vector.load %arg1[%c0_17, %c1_18, %c2_19, %c0_20] : memref<2x10x10x64xf32, #tpu.memory_space<vmem>>, vector<2x8x8x64xf32>
    %10 = arith.maximumf %8, %9 : vector<2x8x8x64xf32>
    %c0_21 = arith.constant 0 : index
    %c2_22 = arith.constant 2 : index
    %c0_23 = arith.constant 0 : index
    %c0_24 = arith.constant 0 : index
    %11 = vector.load %arg1[%c0_21, %c2_22, %c0_23, %c0_24] : memref<2x10x10x64xf32, #tpu.memory_space<vmem>>, vector<2x8x8x64xf32>
    %12 = arith.maximumf %10, %11 : vector<2x8x8x64xf32>
    %c0_25 = arith.constant 0 : index
    %c2_26 = arith.constant 2 : index
    %c1_27 = arith.constant 1 : index
    %c0_28 = arith.constant 0 : index
    %13 = vector.load %arg1[%c0_25, %c2_26, %c1_27, %c0_28] : memref<2x10x10x64xf32, #tpu.memory_space<vmem>>, vector<2x8x8x64xf32>
    %14 = arith.maximumf %12, %13 : vector<2x8x8x64xf32>
    %c0_29 = arith.constant 0 : index
    %c2_30 = arith.constant 2 : index
    %c2_31 = arith.constant 2 : index
    %c0_32 = arith.constant 0 : index
    %15 = vector.load %arg1[%c0_29, %c2_30, %c2_31, %c0_32] : memref<2x10x10x64xf32, #tpu.memory_space<vmem>>, vector<2x8x8x64xf32>
    %16 = arith.maximumf %14, %15 : vector<2x8x8x64xf32>
    %c0_33 = arith.constant 0 : index
    %c0_34 = arith.constant 0 : index
    %c0_35 = arith.constant 0 : index
    %c0_36 = arith.constant 0 : index
    %17 = vector.load %arg2[%c0_33, %c0_34, %c0_35, %c0_36] : memref<2x8x8x64xf32, #tpu.memory_space<vmem>>, vector<2x8x8x64xf32>
    tpu.vector_store %arg2[%c0_33, %c0_34, %c0_35, %c0_36], %16 {strides = array<i32>} : memref<2x8x8x64xf32, #tpu.memory_space<vmem>>, vector<2x8x8x64xf32>,
    return
  }
  func.func @transform_0(%arg0: i32) -> (i32, i32, i32, i32) {
    %c0_i32 = arith.constant 0 : i32
    %c0_i32_0 = arith.constant 0 : i32
    %c0_i32_1 = arith.constant 0 : i32
    %c0_i32_2 = arith.constant 0 : i32
    %c0_i32_3 = arith.constant 0 : i32
    return %c0_i32, %c0_i32_0, %c0_i32_1, %c0_i32_2 : i32, i32, i32, i32
  }
  func.func @transform_1(%arg0: i32) -> (i32, i32, i32, i32) {
    %c0_i32 = arith.constant 0 : i32
    %c0_i32_0 = arith.constant 0 : i32
    %c0_i32_1 = arith.constant 0 : i32
    %c0_i32_2 = arith.constant 0 : i32
    %c0_i32_3 = arith.constant 0 : i32
    return %c0_i32, %c0_i32_0, %c0_i32_1, %c0_i32_2 : i32, i32, i32, i32
  }
}

module attributes {stable_mosaic.version = 11 : i64} {
  func.func @kernel(%arg0: i32, %arg1: memref<128x256xbf16, #tpu.memory_space<vmem>>, %arg2: memref<256x64xbf16, #tpu.memory_space<vmem>>, %arg3: memref<1x64xf32, #tpu.memory_space<vmem>>, %arg4: memref<1x64xf32, #tpu.memory_space<vmem>>, %arg5: memref<128x64xf32, #tpu.memory_space<vmem>>) attributes {dimension_semantics = [#tpu.dimension_semantics<arbitrary>], iteration_bounds = array<i64: 1>, scalar_prefetch = 0 : i64, scratch_operands = 0 : i64, tpu.core_type = #tpu.core_type<tc>, window_params = [{pipeline_mode = #tpu.pipeline_mode<synchronous>, transform_indices = @transform_0, window_bounds = array<i64: 128, 256>}, {pipeline_mode = #tpu.pipeline_mode<synchronous>, transform_indices = @transform_1, window_bounds = array<i64: 256, 64>}, {pipeline_mode = #tpu.pipeline_mode<synchronous>, transform_indices = @transform_2, window_bounds = array<i64: 1, 64>}, {pipeline_mode = #tpu.pipeline_mode<synchronous>, transform_indices = @transform_3, window_bounds = array<i64: 1, 64>}, {pipeline_mode = #tpu.pipeline_mode<synchronous>, transform_indices = @transform_4, window_bounds = array<i64: 128, 64>}]} {
    %c0 = arith.constant 0 : index
    %c0_0 = arith.constant 0 : index
    %0 = vector.load %arg1[%c0, %c0_0] : memref<128x256xbf16, #tpu.memory_space<vmem>>, vector<128x256xbf16>
    %c0_1 = arith.constant 0 : index
    %c0_2 = arith.constant 0 : index
    %1 = vector.load %arg2[%c0_1, %c0_2] : memref<256x64xbf16, #tpu.memory_space<vmem>>, vector<256x64xbf16>
    %cst = arith.constant dense<0.000000e+00> : vector<128x64xf32>
    %2 = tpu.matmul %0, %1, %cst {dimension_numbers = #tpu.dot_dimension_numbers<[1], [0], [0], [1], [0, 0, 1, 1], [], []>} : vector<128x256xbf16>, vector<256x64xbf16>, vector<128x64xf32> -> vector<128x64xf32>
    %cst_3 = arith.constant dense<0.000000e+00> : vector<64xf32>
    %3 = vector.multi_reduction <add>, %2, %cst_3 [0] : vector<128x64xf32> to vector<64xf32>
    %4 = vector.shape_cast %3 : vector<64xf32> to vector<1x64xf32>
    %cst_4 = arith.constant 7.812500e-03 : f32
    %5 = vector.broadcast %cst_4 : f32 to vector<1x64xf32>
    %6 = arith.mulf %4, %5 : vector<1x64xf32>
    %7 = vector.broadcast %6 : vector<1x64xf32> to vector<128x64xf32>
    %8 = arith.subf %2, %7 : vector<128x64xf32>
    %9 = arith.mulf %8, %8 : vector<128x64xf32>
    %cst_5 = arith.constant dense<0.000000e+00> : vector<64xf32>
    %10 = vector.multi_reduction <add>, %9, %cst_5 [0] : vector<128x64xf32> to vector<64xf32>
    %11 = vector.shape_cast %10 : vector<64xf32> to vector<1x64xf32>
    %cst_6 = arith.constant 7.812500e-03 : f32
    %12 = vector.broadcast %cst_6 : f32 to vector<1x64xf32>
    %13 = arith.mulf %11, %12 : vector<1x64xf32>
    %c0_7 = arith.constant 0 : index
    %c0_8 = arith.constant 0 : index
    %14 = vector.load %arg3[%c0_7, %c0_8] : memref<1x64xf32, #tpu.memory_space<vmem>>, vector<1x64xf32>
    %cst_9 = arith.constant 9.99999974E-6 : f32
    %15 = vector.broadcast %cst_9 : f32 to vector<1x64xf32>
    %16 = arith.addf %13, %15 : vector<1x64xf32>
    %17 = math.rsqrt %16 : vector<1x64xf32>
    %18 = arith.mulf %14, %17 : vector<1x64xf32>
    %19 = vector.broadcast %18 : vector<1x64xf32> to vector<128x64xf32>
    %20 = arith.mulf %8, %19 : vector<128x64xf32>
    %c0_10 = arith.constant 0 : index
    %c0_11 = arith.constant 0 : index
    %21 = vector.load %arg4[%c0_10, %c0_11] : memref<1x64xf32, #tpu.memory_space<vmem>>, vector<1x64xf32>
    %22 = vector.broadcast %21 : vector<1x64xf32> to vector<128x64xf32>
    %23 = arith.addf %20, %22 : vector<128x64xf32>
    %cst_12 = arith.constant 0.000000e+00 : f32
    %24 = vector.broadcast %cst_12 : f32 to vector<128x64xf32>
    %25 = arith.maximumf %23, %24 : vector<128x64xf32>
    %c0_13 = arith.constant 0 : index
    %c0_14 = arith.constant 0 : index
    %26 = vector.load %arg5[%c0_13, %c0_14] : memref<128x64xf32, #tpu.memory_space<vmem>>, vector<128x64xf32>
    tpu.vector_store %arg5[%c0_13, %c0_14], %25 {strides = array<i32>} : memref<128x64xf32, #tpu.memory_space<vmem>>, vector<128x64xf32>,
    return
  }
  func.func @transform_0(%arg0: i32) -> (i32, i32) {
    %c0_i32 = arith.constant 0 : i32
    %c0_i32_0 = arith.constant 0 : i32
    %c0_i32_1 = arith.constant 0 : i32
    return %c0_i32, %c0_i32_0 : i32, i32
  }
  func.func @transform_1(%arg0: i32) -> (i32, i32) {
    %c0_i32 = arith.constant 0 : i32
    %c0_i32_0 = arith.constant 0 : i32
    %c0_i32_1 = arith.constant 0 : i32
    return %c0_i32, %c0_i32_0 : i32, i32
  }
  func.func @transform_2(%arg0: i32) -> (i32, i32) {
    %c0_i32 = arith.constant 0 : i32
    %c0_i32_0 = arith.constant 0 : i32
    %c0_i32_1 = arith.constant 0 : i32
    return %c0_i32, %c0_i32_0 : i32, i32
  }
  func.func @transform_3(%arg0: i32) -> (i32, i32) {
    %c0_i32 = arith.constant 0 : i32
    %c0_i32_0 = arith.constant 0 : i32
    %c0_i32_1 = arith.constant 0 : i32
    return %c0_i32, %c0_i32_0 : i32, i32
  }
  func.func @transform_4(%arg0: i32) -> (i32, i32) {
    %c0_i32 = arith.constant 0 : i32
    %c0_i32_0 = arith.constant 0 : i32
    %c0_i32_1 = arith.constant 0 : i32
    return %c0_i32, %c0_i32_0 : i32, i32
  }
}

module attributes {stable_mosaic.version = 11 : i64} {
  func.func @kernel(%arg0: i32, %arg1: memref<8x640xbf16, #tpu.memory_space<vmem>>, %arg2: memref<640x64xbf16, #tpu.memory_space<vmem>>, %arg3: memref<1x64xf32, #tpu.memory_space<vmem>>, %arg4: memref<1x64xf32, #tpu.memory_space<vmem>>, %arg5: memref<8x64xf32, #tpu.memory_space<vmem>>) attributes {dimension_semantics = [#tpu.dimension_semantics<arbitrary>], iteration_bounds = array<i64: 1>, scalar_prefetch = 0 : i64, scratch_operands = 0 : i64, tpu.core_type = #tpu.core_type<tc>, window_params = [{pipeline_mode = #tpu.pipeline_mode<synchronous>, transform_indices = @transform_0, window_bounds = array<i64: 8, 640>}, {pipeline_mode = #tpu.pipeline_mode<synchronous>, transform_indices = @transform_1, window_bounds = array<i64: 640, 64>}, {pipeline_mode = #tpu.pipeline_mode<synchronous>, transform_indices = @transform_2, window_bounds = array<i64: 1, 64>}, {pipeline_mode = #tpu.pipeline_mode<synchronous>, transform_indices = @transform_3, window_bounds = array<i64: 1, 64>}, {pipeline_mode = #tpu.pipeline_mode<synchronous>, transform_indices = @transform_4, window_bounds = array<i64: 8, 64>}]} {
    %c0 = arith.constant 0 : index
    %c0_0 = arith.constant 0 : index
    %0 = vector.load %arg1[%c0, %c0_0] : memref<8x640xbf16, #tpu.memory_space<vmem>>, vector<8x640xbf16>
    %c0_1 = arith.constant 0 : index
    %c0_2 = arith.constant 0 : index
    %1 = vector.load %arg2[%c0_1, %c0_2] : memref<640x64xbf16, #tpu.memory_space<vmem>>, vector<640x64xbf16>
    %cst = arith.constant dense<0.000000e+00> : vector<8x64xf32>
    %2 = tpu.matmul %0, %1, %cst {dimension_numbers = #tpu.dot_dimension_numbers<[1], [0], [0], [1], [0, 0, 1, 1], [], []>} : vector<8x640xbf16>, vector<640x64xbf16>, vector<8x64xf32> -> vector<8x64xf32>
    %cst_3 = arith.constant dense<0.000000e+00> : vector<64xf32>
    %3 = vector.multi_reduction <add>, %2, %cst_3 [0] : vector<8x64xf32> to vector<64xf32>
    %4 = vector.shape_cast %3 : vector<64xf32> to vector<1x64xf32>
    %cst_4 = arith.constant 1.250000e-01 : f32
    %5 = vector.broadcast %cst_4 : f32 to vector<1x64xf32>
    %6 = arith.mulf %4, %5 : vector<1x64xf32>
    %7 = vector.broadcast %6 : vector<1x64xf32> to vector<8x64xf32>
    %8 = arith.subf %2, %7 : vector<8x64xf32>
    %9 = arith.mulf %8, %8 : vector<8x64xf32>
    %cst_5 = arith.constant dense<0.000000e+00> : vector<64xf32>
    %10 = vector.multi_reduction <add>, %9, %cst_5 [0] : vector<8x64xf32> to vector<64xf32>
    %11 = vector.shape_cast %10 : vector<64xf32> to vector<1x64xf32>
    %cst_6 = arith.constant 1.250000e-01 : f32
    %12 = vector.broadcast %cst_6 : f32 to vector<1x64xf32>
    %13 = arith.mulf %11, %12 : vector<1x64xf32>
    %c0_7 = arith.constant 0 : index
    %c0_8 = arith.constant 0 : index
    %14 = vector.load %arg3[%c0_7, %c0_8] : memref<1x64xf32, #tpu.memory_space<vmem>>, vector<1x64xf32>
    %cst_9 = arith.constant 9.99999974E-6 : f32
    %15 = vector.broadcast %cst_9 : f32 to vector<1x64xf32>
    %16 = arith.addf %13, %15 : vector<1x64xf32>
    %17 = math.rsqrt %16 : vector<1x64xf32>
    %18 = arith.mulf %14, %17 : vector<1x64xf32>
    %19 = vector.broadcast %18 : vector<1x64xf32> to vector<8x64xf32>
    %20 = arith.mulf %8, %19 : vector<8x64xf32>
    %c0_10 = arith.constant 0 : index
    %c0_11 = arith.constant 0 : index
    %21 = vector.load %arg4[%c0_10, %c0_11] : memref<1x64xf32, #tpu.memory_space<vmem>>, vector<1x64xf32>
    %22 = vector.broadcast %21 : vector<1x64xf32> to vector<8x64xf32>
    %23 = arith.addf %20, %22 : vector<8x64xf32>
    %cst_12 = arith.constant 0.000000e+00 : f32
    %24 = vector.broadcast %cst_12 : f32 to vector<8x64xf32>
    %25 = arith.maximumf %23, %24 : vector<8x64xf32>
    %c0_13 = arith.constant 0 : index
    %c0_14 = arith.constant 0 : index
    %26 = vector.load %arg5[%c0_13, %c0_14] : memref<8x64xf32, #tpu.memory_space<vmem>>, vector<8x64xf32>
    tpu.vector_store %arg5[%c0_13, %c0_14], %25 {strides = array<i32>} : memref<8x64xf32, #tpu.memory_space<vmem>>, vector<8x64xf32>,
    return
  }
  func.func @transform_0(%arg0: i32) -> (i32, i32) {
    %c0_i32 = arith.constant 0 : i32
    %c0_i32_0 = arith.constant 0 : i32
    %c0_i32_1 = arith.constant 0 : i32
    return %c0_i32, %c0_i32_0 : i32, i32
  }
  func.func @transform_1(%arg0: i32) -> (i32, i32) {
    %c0_i32 = arith.constant 0 : i32
    %c0_i32_0 = arith.constant 0 : i32
    %c0_i32_1 = arith.constant 0 : i32
    return %c0_i32, %c0_i32_0 : i32, i32
  }
  func.func @transform_2(%arg0: i32) -> (i32, i32) {
    %c0_i32 = arith.constant 0 : i32
    %c0_i32_0 = arith.constant 0 : i32
    %c0_i32_1 = arith.constant 0 : i32
    return %c0_i32, %c0_i32_0 : i32, i32
  }
  func.func @transform_3(%arg0: i32) -> (i32, i32) {
    %c0_i32 = arith.constant 0 : i32
    %c0_i32_0 = arith.constant 0 : i32
    %c0_i32_1 = arith.constant 0 : i32
    return %c0_i32, %c0_i32_0 : i32, i32
  }
  func.func @transform_4(%arg0: i32) -> (i32, i32) {
    %c0_i32 = arith.constant 0 : i32
    %c0_i32_0 = arith.constant 0 : i32
    %c0_i32_1 = arith.constant 0 : i32
    return %c0_i32, %c0_i32_0 : i32, i32
  }
}

module attributes {stable_mosaic.version = 11 : i64} {
  func.func @kernel(%arg0: i32, %arg1: memref<8x640xbf16, #tpu.memory_space<vmem>>, %arg2: memref<640x64xbf16, #tpu.memory_space<vmem>>, %arg3: memref<1x64xf32, #tpu.memory_space<vmem>>, %arg4: memref<1x64xf32, #tpu.memory_space<vmem>>, %arg5: memref<8x64xf32, #tpu.memory_space<vmem>>, %arg6: memref<8x64xf32, #tpu.memory_space<vmem>>) attributes {dimension_semantics = [#tpu.dimension_semantics<arbitrary>], iteration_bounds = array<i64: 1>, scalar_prefetch = 0 : i64, scratch_operands = 0 : i64, tpu.core_type = #tpu.core_type<tc>, window_params = [{pipeline_mode = #tpu.pipeline_mode<synchronous>, transform_indices = @transform_0, window_bounds = array<i64: 8, 640>}, {pipeline_mode = #tpu.pipeline_mode<synchronous>, transform_indices = @transform_1, window_bounds = array<i64: 640, 64>}, {pipeline_mode = #tpu.pipeline_mode<synchronous>, transform_indices = @transform_2, window_bounds = array<i64: 1, 64>}, {pipeline_mode = #tpu.pipeline_mode<synchronous>, transform_indices = @transform_3, window_bounds = array<i64: 1, 64>}, {pipeline_mode = #tpu.pipeline_mode<synchronous>, transform_indices = @transform_4, window_bounds = array<i64: 8, 64>}, {pipeline_mode = #tpu.pipeline_mode<synchronous>, transform_indices = @transform_5, window_bounds = array<i64: 8, 64>}]} {
    %c0 = arith.constant 0 : index
    %c0_0 = arith.constant 0 : index
    %0 = vector.load %arg1[%c0, %c0_0] : memref<8x640xbf16, #tpu.memory_space<vmem>>, vector<8x640xbf16>
    %c0_1 = arith.constant 0 : index
    %c0_2 = arith.constant 0 : index
    %1 = vector.load %arg2[%c0_1, %c0_2] : memref<640x64xbf16, #tpu.memory_space<vmem>>, vector<640x64xbf16>
    %cst = arith.constant dense<0.000000e+00> : vector<8x64xf32>
    %2 = tpu.matmul %0, %1, %cst {dimension_numbers = #tpu.dot_dimension_numbers<[1], [0], [0], [1], [0, 0, 1, 1], [], []>} : vector<8x640xbf16>, vector<640x64xbf16>, vector<8x64xf32> -> vector<8x64xf32>
    %cst_3 = arith.constant dense<0.000000e+00> : vector<64xf32>
    %3 = vector.multi_reduction <add>, %2, %cst_3 [0] : vector<8x64xf32> to vector<64xf32>
    %4 = vector.shape_cast %3 : vector<64xf32> to vector<1x64xf32>
    %cst_4 = arith.constant 1.250000e-01 : f32
    %5 = vector.broadcast %cst_4 : f32 to vector<1x64xf32>
    %6 = arith.mulf %4, %5 : vector<1x64xf32>
    %7 = vector.broadcast %6 : vector<1x64xf32> to vector<8x64xf32>
    %8 = arith.subf %2, %7 : vector<8x64xf32>
    %9 = arith.mulf %8, %8 : vector<8x64xf32>
    %cst_5 = arith.constant dense<0.000000e+00> : vector<64xf32>
    %10 = vector.multi_reduction <add>, %9, %cst_5 [0] : vector<8x64xf32> to vector<64xf32>
    %11 = vector.shape_cast %10 : vector<64xf32> to vector<1x64xf32>
    %cst_6 = arith.constant 1.250000e-01 : f32
    %12 = vector.broadcast %cst_6 : f32 to vector<1x64xf32>
    %13 = arith.mulf %11, %12 : vector<1x64xf32>
    %c0_7 = arith.constant 0 : index
    %c0_8 = arith.constant 0 : index
    %14 = vector.load %arg3[%c0_7, %c0_8] : memref<1x64xf32, #tpu.memory_space<vmem>>, vector<1x64xf32>
    %cst_9 = arith.constant 9.99999974E-6 : f32
    %15 = vector.broadcast %cst_9 : f32 to vector<1x64xf32>
    %16 = arith.addf %13, %15 : vector<1x64xf32>
    %17 = math.rsqrt %16 : vector<1x64xf32>
    %18 = arith.mulf %14, %17 : vector<1x64xf32>
    %19 = vector.broadcast %18 : vector<1x64xf32> to vector<8x64xf32>
    %20 = arith.mulf %8, %19 : vector<8x64xf32>
    %c0_10 = arith.constant 0 : index
    %c0_11 = arith.constant 0 : index
    %21 = vector.load %arg4[%c0_10, %c0_11] : memref<1x64xf32, #tpu.memory_space<vmem>>, vector<1x64xf32>
    %22 = vector.broadcast %21 : vector<1x64xf32> to vector<8x64xf32>
    %23 = arith.addf %20, %22 : vector<8x64xf32>
    %c0_12 = arith.constant 0 : index
    %c0_13 = arith.constant 0 : index
    %24 = vector.load %arg5[%c0_12, %c0_13] : memref<8x64xf32, #tpu.memory_space<vmem>>, vector<8x64xf32>
    %25 = arith.addf %23, %24 : vector<8x64xf32>
    %cst_14 = arith.constant 0.000000e+00 : f32
    %26 = vector.broadcast %cst_14 : f32 to vector<8x64xf32>
    %27 = arith.maximumf %25, %26 : vector<8x64xf32>
    %c0_15 = arith.constant 0 : index
    %c0_16 = arith.constant 0 : index
    %28 = vector.load %arg6[%c0_15, %c0_16] : memref<8x64xf32, #tpu.memory_space<vmem>>, vector<8x64xf32>
    tpu.vector_store %arg6[%c0_15, %c0_16], %27 {strides = array<i32>} : memref<8x64xf32, #tpu.memory_space<vmem>>, vector<8x64xf32>,
    return
  }
  func.func @transform_0(%arg0: i32) -> (i32, i32) {
    %c0_i32 = arith.constant 0 : i32
    %c0_i32_0 = arith.constant 0 : i32
    %c0_i32_1 = arith.constant 0 : i32
    return %c0_i32, %c0_i32_0 : i32, i32
  }
  func.func @transform_1(%arg0: i32) -> (i32, i32) {
    %c0_i32 = arith.constant 0 : i32
    %c0_i32_0 = arith.constant 0 : i32
    %c0_i32_1 = arith.constant 0 : i32
    return %c0_i32, %c0_i32_0 : i32, i32
  }
  func.func @transform_2(%arg0: i32) -> (i32, i32) {
    %c0_i32 = arith.constant 0 : i32
    %c0_i32_0 = arith.constant 0 : i32
    %c0_i32_1 = arith.constant 0 : i32
    return %c0_i32, %c0_i32_0 : i32, i32
  }
  func.func @transform_3(%arg0: i32) -> (i32, i32) {
    %c0_i32 = arith.constant 0 : i32
    %c0_i32_0 = arith.constant 0 : i32
    %c0_i32_1 = arith.constant 0 : i32
    return %c0_i32, %c0_i32_0 : i32, i32
  }
  func.func @transform_4(%arg0: i32) -> (i32, i32) {
    %c0_i32 = arith.constant 0 : i32
    %c0_i32_0 = arith.constant 0 : i32
    %c0_i32_1 = arith.constant 0 : i32
    return %c0_i32, %c0_i32_0 : i32, i32
  }
  func.func @transform_5(%arg0: i32) -> (i32, i32) {
    %c0_i32 = arith.constant 0 : i32
    %c0_i32_0 = arith.constant 0 : i32
    %c0_i32_1 = arith.constant 0 : i32
    return %c0_i32, %c0_i32_0 : i32, i32
  }
}

module attributes {stable_mosaic.version = 11 : i64} {
  func.func @kernel(%arg0: i32, %arg1: memref<8x256xbf16, #tpu.memory_space<vmem>>, %arg2: memref<256x128xbf16, #tpu.memory_space<vmem>>, %arg3: memref<1x128xf32, #tpu.memory_space<vmem>>, %arg4: memref<1x128xf32, #tpu.memory_space<vmem>>, %arg5: memref<8x128xf32, #tpu.memory_space<vmem>>) attributes {dimension_semantics = [#tpu.dimension_semantics<arbitrary>], iteration_bounds = array<i64: 1>, scalar_prefetch = 0 : i64, scratch_operands = 0 : i64, tpu.core_type = #tpu.core_type<tc>, window_params = [{pipeline_mode = #tpu.pipeline_mode<synchronous>, transform_indices = @transform_0, window_bounds = array<i64: 8, 256>}, {pipeline_mode = #tpu.pipeline_mode<synchronous>, transform_indices = @transform_1, window_bounds = array<i64: 256, 128>}, {pipeline_mode = #tpu.pipeline_mode<synchronous>, transform_indices = @transform_2, window_bounds = array<i64: 1, 128>}, {pipeline_mode = #tpu.pipeline_mode<synchronous>, transform_indices = @transform_3, window_bounds = array<i64: 1, 128>}, {pipeline_mode = #tpu.pipeline_mode<synchronous>, transform_indices = @transform_4, window_bounds = array<i64: 8, 128>}]} {
    %c0 = arith.constant 0 : index
    %c0_0 = arith.constant 0 : index
    %0 = vector.load %arg1[%c0, %c0_0] : memref<8x256xbf16, #tpu.memory_space<vmem>>, vector<8x256xbf16>
    %c0_1 = arith.constant 0 : index
    %c0_2 = arith.constant 0 : index
    %1 = vector.load %arg2[%c0_1, %c0_2] : memref<256x128xbf16, #tpu.memory_space<vmem>>, vector<256x128xbf16>
    %cst = arith.constant dense<0.000000e+00> : vector<8x128xf32>
    %2 = tpu.matmul %0, %1, %cst {dimension_numbers = #tpu.dot_dimension_numbers<[1], [0], [0], [1], [0, 0, 1, 1], [], []>} : vector<8x256xbf16>, vector<256x128xbf16>, vector<8x128xf32> -> vector<8x128xf32>
    %cst_3 = arith.constant dense<0.000000e+00> : vector<128xf32>
    %3 = vector.multi_reduction <add>, %2, %cst_3 [0] : vector<8x128xf32> to vector<128xf32>
    %4 = vector.shape_cast %3 : vector<128xf32> to vector<1x128xf32>
    %cst_4 = arith.constant 5.000000e-01 : f32
    %5 = vector.broadcast %cst_4 : f32 to vector<1x128xf32>
    %6 = arith.mulf %4, %5 : vector<1x128xf32>
    %7 = vector.broadcast %6 : vector<1x128xf32> to vector<8x128xf32>
    %8 = arith.subf %2, %7 : vector<8x128xf32>
    %9 = tpu.iota {dimensions = array<i32: 0>} : vector<8x128xi32>
    %c2_i32 = arith.constant 2 : i32
    %10 = vector.broadcast %c2_i32 : i32 to vector<8x128xi32>
    %11 = arith.cmpi slt, %9, %10 : vector<8x128xi32>
    %cst_5 = arith.constant 0.000000e+00 : f32
    %12 = vector.broadcast %cst_5 : f32 to vector<8x128xf32>
    %13 = arith.select %11, %8, %12 : vector<8x128xi1>, vector<8x128xf32>
    %14 = arith.mulf %13, %13 : vector<8x128xf32>
    %cst_6 = arith.constant dense<0.000000e+00> : vector<128xf32>
    %15 = vector.multi_reduction <add>, %14, %cst_6 [0] : vector<8x128xf32> to vector<128xf32>
    %16 = vector.shape_cast %15 : vector<128xf32> to vector<1x128xf32>
    %cst_7 = arith.constant 5.000000e-01 : f32
    %17 = vector.broadcast %cst_7 : f32 to vector<1x128xf32>
    %18 = arith.mulf %16, %17 : vector<1x128xf32>
    %c0_8 = arith.constant 0 : index
    %c0_9 = arith.constant 0 : index
    %19 = vector.load %arg3[%c0_8, %c0_9] : memref<1x128xf32, #tpu.memory_space<vmem>>, vector<1x128xf32>
    %cst_10 = arith.constant 9.99999974E-6 : f32
    %20 = vector.broadcast %cst_10 : f32 to vector<1x128xf32>
    %21 = arith.addf %18, %20 : vector<1x128xf32>
    %22 = math.rsqrt %21 : vector<1x128xf32>
    %23 = arith.mulf %19, %22 : vector<1x128xf32>
    %24 = vector.broadcast %23 : vector<1x128xf32> to vector<8x128xf32>
    %25 = arith.mulf %13, %24 : vector<8x128xf32>
    %c0_11 = arith.constant 0 : index
    %c0_12 = arith.constant 0 : index
    %26 = vector.load %arg4[%c0_11, %c0_12] : memref<1x128xf32, #tpu.memory_space<vmem>>, vector<1x128xf32>
    %27 = vector.broadcast %26 : vector<1x128xf32> to vector<8x128xf32>
    %28 = arith.addf %25, %27 : vector<8x128xf32>
    %cst_13 = arith.constant 0.000000e+00 : f32
    %29 = vector.broadcast %cst_13 : f32 to vector<8x128xf32>
    %30 = arith.maximumf %28, %29 : vector<8x128xf32>
    %cst_14 = arith.constant 0.000000e+00 : f32
    %31 = vector.broadcast %cst_14 : f32 to vector<8x128xf32>
    %32 = arith.select %11, %30, %31 : vector<8x128xi1>, vector<8x128xf32>
    %c0_15 = arith.constant 0 : index
    %c0_16 = arith.constant 0 : index
    %33 = vector.load %arg5[%c0_15, %c0_16] : memref<8x128xf32, #tpu.memory_space<vmem>>, vector<8x128xf32>
    tpu.vector_store %arg5[%c0_15, %c0_16], %32 {strides = array<i32>} : memref<8x128xf32, #tpu.memory_space<vmem>>, vector<8x128xf32>,
    return
  }
  func.func @transform_0(%arg0: i32) -> (i32, i32) {
    %c0_i32 = arith.constant 0 : i32
    %c0_i32_0 = arith.constant 0 : i32
    %c0_i32_1 = arith.constant 0 : i32
    return %c0_i32, %c0_i32_0 : i32, i32
  }
  func.func @transform_1(%arg0: i32) -> (i32, i32) {
    %c0_i32 = arith.constant 0 : i32
    %c0_i32_0 = arith.constant 0 : i32
    %c0_i32_1 = arith.constant 0 : i32
    return %c0_i32, %c0_i32_0 : i32, i32
  }
  func.func @transform_2(%arg0: i32) -> (i32, i32) {
    %c0_i32 = arith.constant 0 : i32
    %c0_i32_0 = arith.constant 0 : i32
    %c0_i32_1 = arith.constant 0 : i32
    return %c0_i32, %c0_i32_0 : i32, i32
  }
  func.func @transform_3(%arg0: i32) -> (i32, i32) {
    %c0_i32 = arith.constant 0 : i32
    %c0_i32_0 = arith.constant 0 : i32
    %c0_i32_1 = arith.constant 0 : i32
    return %c0_i32, %c0_i32_0 : i32, i32
  }
  func.func @transform_4(%arg0: i32) -> (i32, i32) {
    %c0_i32 = arith.constant 0 : i32
    %c0_i32_0 = arith.constant 0 : i32
    %c0_i32_1 = arith.constant 0 : i32
    return %c0_i32, %c0_i32_0 : i32, i32
  }
}

module attributes {stable_mosaic.version = 11 : i64} {
  func.func @kernel(%arg0: i32, %arg1: memref<8x128xf32, #tpu.memory_space<vmem>>, %arg2: memref<128x128xbf16, #tpu.memory_space<vmem>>, %arg3: memref<1x128xf32, #tpu.memory_space<vmem>>, %arg4: memref<1x128xf32, #tpu.memory_space<vmem>>, %arg5: memref<8x128xf32, #tpu.memory_space<vmem>>) attributes {dimension_semantics = [#tpu.dimension_semantics<arbitrary>], iteration_bounds = array<i64: 1>, scalar_prefetch = 0 : i64, scratch_operands = 0 : i64, tpu.core_type = #tpu.core_type<tc>, window_params = [{pipeline_mode = #tpu.pipeline_mode<synchronous>, transform_indices = @transform_0, window_bounds = array<i64: 8, 128>}, {pipeline_mode = #tpu.pipeline_mode<synchronous>, transform_indices = @transform_1, window_bounds = array<i64: 128, 128>}, {pipeline_mode = #tpu.pipeline_mode<synchronous>, transform_indices = @transform_2, window_bounds = array<i64: 1, 128>}, {pipeline_mode = #tpu.pipeline_mode<synchronous>, transform_indices = @transform_3, window_bounds = array<i64: 1, 128>}, {pipeline_mode = #tpu.pipeline_mode<synchronous>, transform_indices = @transform_4, window_bounds = array<i64: 8, 128>}]} {
    %c0 = arith.constant 0 : index
    %c0_0 = arith.constant 0 : index
    %0 = vector.load %arg1[%c0, %c0_0] : memref<8x128xf32, #tpu.memory_space<vmem>>, vector<8x128xf32>
    %1 = arith.truncf %0 : vector<8x128xf32> to vector<8x128xbf16>
    %c0_1 = arith.constant 0 : index
    %c0_2 = arith.constant 0 : index
    %2 = vector.load %arg2[%c0_1, %c0_2] : memref<128x128xbf16, #tpu.memory_space<vmem>>, vector<128x128xbf16>
    %cst = arith.constant dense<0.000000e+00> : vector<8x128xf32>
    %3 = tpu.matmul %1, %2, %cst {dimension_numbers = #tpu.dot_dimension_numbers<[1], [0], [0], [1], [0, 0, 1, 1], [], []>} : vector<8x128xbf16>, vector<128x128xbf16>, vector<8x128xf32> -> vector<8x128xf32>
    %cst_3 = arith.constant dense<0.000000e+00> : vector<128xf32>
    %4 = vector.multi_reduction <add>, %3, %cst_3 [0] : vector<8x128xf32> to vector<128xf32>
    %5 = vector.shape_cast %4 : vector<128xf32> to vector<1x128xf32>
    %cst_4 = arith.constant 5.000000e-01 : f32
    %6 = vector.broadcast %cst_4 : f32 to vector<1x128xf32>
    %7 = arith.mulf %5, %6 : vector<1x128xf32>
    %8 = vector.broadcast %7 : vector<1x128xf32> to vector<8x128xf32>
    %9 = arith.subf %3, %8 : vector<8x128xf32>
    %10 = tpu.iota {dimensions = array<i32: 0>} : vector<8x128xi32>
    %c2_i32 = arith.constant 2 : i32
    %11 = vector.broadcast %c2_i32 : i32 to vector<8x128xi32>
    %12 = arith.cmpi slt, %10, %11 : vector<8x128xi32>
    %cst_5 = arith.constant 0.000000e+00 : f32
    %13 = vector.broadcast %cst_5 : f32 to vector<8x128xf32>
    %14 = arith.select %12, %9, %13 : vector<8x128xi1>, vector<8x128xf32>
    %15 = arith.mulf %14, %14 : vector<8x128xf32>
    %cst_6 = arith.constant dense<0.000000e+00> : vector<128xf32>
    %16 = vector.multi_reduction <add>, %15, %cst_6 [0] : vector<8x128xf32> to vector<128xf32>
    %17 = vector.shape_cast %16 : vector<128xf32> to vector<1x128xf32>
    %cst_7 = arith.constant 5.000000e-01 : f32
    %18 = vector.broadcast %cst_7 : f32 to vector<1x128xf32>
    %19 = arith.mulf %17, %18 : vector<1x128xf32>
    %c0_8 = arith.constant 0 : index
    %c0_9 = arith.constant 0 : index
    %20 = vector.load %arg3[%c0_8, %c0_9] : memref<1x128xf32, #tpu.memory_space<vmem>>, vector<1x128xf32>
    %cst_10 = arith.constant 9.99999974E-6 : f32
    %21 = vector.broadcast %cst_10 : f32 to vector<1x128xf32>
    %22 = arith.addf %19, %21 : vector<1x128xf32>
    %23 = math.rsqrt %22 : vector<1x128xf32>
    %24 = arith.mulf %20, %23 : vector<1x128xf32>
    %25 = vector.broadcast %24 : vector<1x128xf32> to vector<8x128xf32>
    %26 = arith.mulf %14, %25 : vector<8x128xf32>
    %c0_11 = arith.constant 0 : index
    %c0_12 = arith.constant 0 : index
    %27 = vector.load %arg4[%c0_11, %c0_12] : memref<1x128xf32, #tpu.memory_space<vmem>>, vector<1x128xf32>
    %28 = vector.broadcast %27 : vector<1x128xf32> to vector<8x128xf32>
    %29 = arith.addf %26, %28 : vector<8x128xf32>
    %cst_13 = arith.constant 0.000000e+00 : f32
    %30 = vector.broadcast %cst_13 : f32 to vector<8x128xf32>
    %31 = arith.maximumf %29, %30 : vector<8x128xf32>
    %cst_14 = arith.constant 0.000000e+00 : f32
    %32 = vector.broadcast %cst_14 : f32 to vector<8x128xf32>
    %33 = arith.select %12, %31, %32 : vector<8x128xi1>, vector<8x128xf32>
    %c0_15 = arith.constant 0 : index
    %c0_16 = arith.constant 0 : index
    %34 = vector.load %arg5[%c0_15, %c0_16] : memref<8x128xf32, #tpu.memory_space<vmem>>, vector<8x128xf32>
    tpu.vector_store %arg5[%c0_15, %c0_16], %33 {strides = array<i32>} : memref<8x128xf32, #tpu.memory_space<vmem>>, vector<8x128xf32>,
    return
  }
  func.func @transform_0(%arg0: i32) -> (i32, i32) {
    %c0_i32 = arith.constant 0 : i32
    %c0_i32_0 = arith.constant 0 : i32
    %c0_i32_1 = arith.constant 0 : i32
    return %c0_i32, %c0_i32_0 : i32, i32
  }
  func.func @transform_1(%arg0: i32) -> (i32, i32) {
    %c0_i32 = arith.constant 0 : i32
    %c0_i32_0 = arith.constant 0 : i32
    %c0_i32_1 = arith.constant 0 : i32
    return %c0_i32, %c0_i32_0 : i32, i32
  }
  func.func @transform_2(%arg0: i32) -> (i32, i32) {
    %c0_i32 = arith.constant 0 : i32
    %c0_i32_0 = arith.constant 0 : i32
    %c0_i32_1 = arith.constant 0 : i32
    return %c0_i32, %c0_i32_0 : i32, i32
  }
  func.func @transform_3(%arg0: i32) -> (i32, i32) {
    %c0_i32 = arith.constant 0 : i32
    %c0_i32_0 = arith.constant 0 : i32
    %c0_i32_1 = arith.constant 0 : i32
    return %c0_i32, %c0_i32_0 : i32, i32
  }
  func.func @transform_4(%arg0: i32) -> (i32, i32) {
    %c0_i32 = arith.constant 0 : i32
    %c0_i32_0 = arith.constant 0 : i32
    %c0_i32_1 = arith.constant 0 : i32
    return %c0_i32, %c0_i32_0 : i32, i32
  }
}

module attributes {stable_mosaic.version = 11 : i64} {
  func.func @kernel(%arg0: i32, %arg1: memref<8x128xf32, #tpu.memory_space<vmem>>, %arg2: memref<128x128xbf16, #tpu.memory_space<vmem>>, %arg3: memref<1x128xf32, #tpu.memory_space<vmem>>, %arg4: memref<1x128xf32, #tpu.memory_space<vmem>>, %arg5: memref<8x128xf32, #tpu.memory_space<vmem>>, %arg6: memref<8x128xf32, #tpu.memory_space<vmem>>) attributes {dimension_semantics = [#tpu.dimension_semantics<arbitrary>], iteration_bounds = array<i64: 1>, scalar_prefetch = 0 : i64, scratch_operands = 0 : i64, tpu.core_type = #tpu.core_type<tc>, window_params = [{pipeline_mode = #tpu.pipeline_mode<synchronous>, transform_indices = @transform_0, window_bounds = array<i64: 8, 128>}, {pipeline_mode = #tpu.pipeline_mode<synchronous>, transform_indices = @transform_1, window_bounds = array<i64: 128, 128>}, {pipeline_mode = #tpu.pipeline_mode<synchronous>, transform_indices = @transform_2, window_bounds = array<i64: 1, 128>}, {pipeline_mode = #tpu.pipeline_mode<synchronous>, transform_indices = @transform_3, window_bounds = array<i64: 1, 128>}, {pipeline_mode = #tpu.pipeline_mode<synchronous>, transform_indices = @transform_4, window_bounds = array<i64: 8, 128>}, {pipeline_mode = #tpu.pipeline_mode<synchronous>, transform_indices = @transform_5, window_bounds = array<i64: 8, 128>}]} {
    %c0 = arith.constant 0 : index
    %c0_0 = arith.constant 0 : index
    %0 = vector.load %arg1[%c0, %c0_0] : memref<8x128xf32, #tpu.memory_space<vmem>>, vector<8x128xf32>
    %1 = arith.truncf %0 : vector<8x128xf32> to vector<8x128xbf16>
    %c0_1 = arith.constant 0 : index
    %c0_2 = arith.constant 0 : index
    %2 = vector.load %arg2[%c0_1, %c0_2] : memref<128x128xbf16, #tpu.memory_space<vmem>>, vector<128x128xbf16>
    %cst = arith.constant dense<0.000000e+00> : vector<8x128xf32>
    %3 = tpu.matmul %1, %2, %cst {dimension_numbers = #tpu.dot_dimension_numbers<[1], [0], [0], [1], [0, 0, 1, 1], [], []>} : vector<8x128xbf16>, vector<128x128xbf16>, vector<8x128xf32> -> vector<8x128xf32>
    %cst_3 = arith.constant dense<0.000000e+00> : vector<128xf32>
    %4 = vector.multi_reduction <add>, %3, %cst_3 [0] : vector<8x128xf32> to vector<128xf32>
    %5 = vector.shape_cast %4 : vector<128xf32> to vector<1x128xf32>
    %cst_4 = arith.constant 5.000000e-01 : f32
    %6 = vector.broadcast %cst_4 : f32 to vector<1x128xf32>
    %7 = arith.mulf %5, %6 : vector<1x128xf32>
    %8 = vector.broadcast %7 : vector<1x128xf32> to vector<8x128xf32>
    %9 = arith.subf %3, %8 : vector<8x128xf32>
    %10 = tpu.iota {dimensions = array<i32: 0>} : vector<8x128xi32>
    %c2_i32 = arith.constant 2 : i32
    %11 = vector.broadcast %c2_i32 : i32 to vector<8x128xi32>
    %12 = arith.cmpi slt, %10, %11 : vector<8x128xi32>
    %cst_5 = arith.constant 0.000000e+00 : f32
    %13 = vector.broadcast %cst_5 : f32 to vector<8x128xf32>
    %14 = arith.select %12, %9, %13 : vector<8x128xi1>, vector<8x128xf32>
    %15 = arith.mulf %14, %14 : vector<8x128xf32>
    %cst_6 = arith.constant dense<0.000000e+00> : vector<128xf32>
    %16 = vector.multi_reduction <add>, %15, %cst_6 [0] : vector<8x128xf32> to vector<128xf32>
    %17 = vector.shape_cast %16 : vector<128xf32> to vector<1x128xf32>
    %cst_7 = arith.constant 5.000000e-01 : f32
    %18 = vector.broadcast %cst_7 : f32 to vector<1x128xf32>
    %19 = arith.mulf %17, %18 : vector<1x128xf32>
    %c0_8 = arith.constant 0 : index
    %c0_9 = arith.constant 0 : index
    %20 = vector.load %arg3[%c0_8, %c0_9] : memref<1x128xf32, #tpu.memory_space<vmem>>, vector<1x128xf32>
    %cst_10 = arith.constant 9.99999974E-6 : f32
    %21 = vector.broadcast %cst_10 : f32 to vector<1x128xf32>
    %22 = arith.addf %19, %21 : vector<1x128xf32>
    %23 = math.rsqrt %22 : vector<1x128xf32>
    %24 = arith.mulf %20, %23 : vector<1x128xf32>
    %25 = vector.broadcast %24 : vector<1x128xf32> to vector<8x128xf32>
    %26 = arith.mulf %14, %25 : vector<8x128xf32>
    %c0_11 = arith.constant 0 : index
    %c0_12 = arith.constant 0 : index
    %27 = vector.load %arg4[%c0_11, %c0_12] : memref<1x128xf32, #tpu.memory_space<vmem>>, vector<1x128xf32>
    %28 = vector.broadcast %27 : vector<1x128xf32> to vector<8x128xf32>
    %29 = arith.addf %26, %28 : vector<8x128xf32>
    %c0_13 = arith.constant 0 : index
    %c0_14 = arith.constant 0 : index
    %30 = vector.load %arg5[%c0_13, %c0_14] : memref<8x128xf32, #tpu.memory_space<vmem>>, vector<8x128xf32>
    %31 = arith.addf %29, %30 : vector<8x128xf32>
    %cst_15 = arith.constant 0.000000e+00 : f32
    %32 = vector.broadcast %cst_15 : f32 to vector<8x128xf32>
    %33 = arith.maximumf %31, %32 : vector<8x128xf32>
    %cst_16 = arith.constant 0.000000e+00 : f32
    %34 = vector.broadcast %cst_16 : f32 to vector<8x128xf32>
    %35 = arith.select %12, %33, %34 : vector<8x128xi1>, vector<8x128xf32>
    %c0_17 = arith.constant 0 : index
    %c0_18 = arith.constant 0 : index
    %36 = vector.load %arg6[%c0_17, %c0_18] : memref<8x128xf32, #tpu.memory_space<vmem>>, vector<8x128xf32>
    tpu.vector_store %arg6[%c0_17, %c0_18], %35 {strides = array<i32>} : memref<8x128xf32, #tpu.memory_space<vmem>>, vector<8x128xf32>,
    return
  }
  func.func @transform_0(%arg0: i32) -> (i32, i32) {
    %c0_i32 = arith.constant 0 : i32
    %c0_i32_0 = arith.constant 0 : i32
    %c0_i32_1 = arith.constant 0 : i32
    return %c0_i32, %c0_i32_0 : i32, i32
  }
  func.func @transform_1(%arg0: i32) -> (i32, i32) {
    %c0_i32 = arith.constant 0 : i32
    %c0_i32_0 = arith.constant 0 : i32
    %c0_i32_1 = arith.constant 0 : i32
    return %c0_i32, %c0_i32_0 : i32, i32
  }
  func.func @transform_2(%arg0: i32) -> (i32, i32) {
    %c0_i32 = arith.constant 0 : i32
    %c0_i32_0 = arith.constant 0 : i32
    %c0_i32_1 = arith.constant 0 : i32
    return %c0_i32, %c0_i32_0 : i32, i32
  }
  func.func @transform_3(%arg0: i32) -> (i32, i32) {
    %c0_i32 = arith.constant 0 : i32
    %c0_i32_0 = arith.constant 0 : i32
    %c0_i32_1 = arith.constant 0 : i32
    return %c0_i32, %c0_i32_0 : i32, i32
  }
  func.func @transform_4(%arg0: i32) -> (i32, i32) {
    %c0_i32 = arith.constant 0 : i32
    %c0_i32_0 = arith.constant 0 : i32
    %c0_i32_1 = arith.constant 0 : i32
    return %c0_i32, %c0_i32_0 : i32, i32
  }
  func.func @transform_5(%arg0: i32) -> (i32, i32) {
    %c0_i32 = arith.constant 0 : i32
    %c0_i32_0 = arith.constant 0 : i32
    %c0_i32_1 = arith.constant 0 : i32
    return %c0_i32, %c0_i32_0 : i32, i32
  }
}

module attributes {stable_mosaic.version = 11 : i64} {
  func.func @kernel(%arg0: i32, %arg1: memref<8x128xf32, #tpu.memory_space<vmem>>, %arg2: memref<128x256xbf16, #tpu.memory_space<vmem>>, %arg3: memref<1x256xf32, #tpu.memory_space<vmem>>, %arg4: memref<1x256xf32, #tpu.memory_space<vmem>>, %arg5: memref<8x256xf32, #tpu.memory_space<vmem>>) attributes {dimension_semantics = [#tpu.dimension_semantics<arbitrary>], iteration_bounds = array<i64: 1>, scalar_prefetch = 0 : i64, scratch_operands = 0 : i64, tpu.core_type = #tpu.core_type<tc>, window_params = [{pipeline_mode = #tpu.pipeline_mode<synchronous>, transform_indices = @transform_0, window_bounds = array<i64: 8, 128>}, {pipeline_mode = #tpu.pipeline_mode<synchronous>, transform_indices = @transform_1, window_bounds = array<i64: 128, 256>}, {pipeline_mode = #tpu.pipeline_mode<synchronous>, transform_indices = @transform_2, window_bounds = array<i64: 1, 256>}, {pipeline_mode = #tpu.pipeline_mode<synchronous>, transform_indices = @transform_3, window_bounds = array<i64: 1, 256>}, {pipeline_mode = #tpu.pipeline_mode<synchronous>, transform_indices = @transform_4, window_bounds = array<i64: 8, 256>}]} {
    %c0 = arith.constant 0 : index
    %c0_0 = arith.constant 0 : index
    %0 = vector.load %arg1[%c0, %c0_0] : memref<8x128xf32, #tpu.memory_space<vmem>>, vector<8x128xf32>
    %1 = arith.truncf %0 : vector<8x128xf32> to vector<8x128xbf16>
    %c0_1 = arith.constant 0 : index
    %c0_2 = arith.constant 0 : index
    %2 = vector.load %arg2[%c0_1, %c0_2] : memref<128x256xbf16, #tpu.memory_space<vmem>>, vector<128x256xbf16>
    %cst = arith.constant dense<0.000000e+00> : vector<8x256xf32>
    %3 = tpu.matmul %1, %2, %cst {dimension_numbers = #tpu.dot_dimension_numbers<[1], [0], [0], [1], [0, 0, 1, 1], [], []>} : vector<8x128xbf16>, vector<128x256xbf16>, vector<8x256xf32> -> vector<8x256xf32>
    %cst_3 = arith.constant dense<0.000000e+00> : vector<256xf32>
    %4 = vector.multi_reduction <add>, %3, %cst_3 [0] : vector<8x256xf32> to vector<256xf32>
    %5 = vector.shape_cast %4 : vector<256xf32> to vector<1x256xf32>
    %cst_4 = arith.constant 5.000000e-01 : f32
    %6 = vector.broadcast %cst_4 : f32 to vector<1x256xf32>
    %7 = arith.mulf %5, %6 : vector<1x256xf32>
    %8 = vector.broadcast %7 : vector<1x256xf32> to vector<8x256xf32>
    %9 = arith.subf %3, %8 : vector<8x256xf32>
    %10 = tpu.iota {dimensions = array<i32: 0>} : vector<8x256xi32>
    %c2_i32 = arith.constant 2 : i32
    %11 = vector.broadcast %c2_i32 : i32 to vector<8x256xi32>
    %12 = arith.cmpi slt, %10, %11 : vector<8x256xi32>
    %cst_5 = arith.constant 0.000000e+00 : f32
    %13 = vector.broadcast %cst_5 : f32 to vector<8x256xf32>
    %14 = arith.select %12, %9, %13 : vector<8x256xi1>, vector<8x256xf32>
    %15 = arith.mulf %14, %14 : vector<8x256xf32>
    %cst_6 = arith.constant dense<0.000000e+00> : vector<256xf32>
    %16 = vector.multi_reduction <add>, %15, %cst_6 [0] : vector<8x256xf32> to vector<256xf32>
    %17 = vector.shape_cast %16 : vector<256xf32> to vector<1x256xf32>
    %cst_7 = arith.constant 5.000000e-01 : f32
    %18 = vector.broadcast %cst_7 : f32 to vector<1x256xf32>
    %19 = arith.mulf %17, %18 : vector<1x256xf32>
    %c0_8 = arith.constant 0 : index
    %c0_9 = arith.constant 0 : index
    %20 = vector.load %arg3[%c0_8, %c0_9] : memref<1x256xf32, #tpu.memory_space<vmem>>, vector<1x256xf32>
    %cst_10 = arith.constant 9.99999974E-6 : f32
    %21 = vector.broadcast %cst_10 : f32 to vector<1x256xf32>
    %22 = arith.addf %19, %21 : vector<1x256xf32>
    %23 = math.rsqrt %22 : vector<1x256xf32>
    %24 = arith.mulf %20, %23 : vector<1x256xf32>
    %25 = vector.broadcast %24 : vector<1x256xf32> to vector<8x256xf32>
    %26 = arith.mulf %14, %25 : vector<8x256xf32>
    %c0_11 = arith.constant 0 : index
    %c0_12 = arith.constant 0 : index
    %27 = vector.load %arg4[%c0_11, %c0_12] : memref<1x256xf32, #tpu.memory_space<vmem>>, vector<1x256xf32>
    %28 = vector.broadcast %27 : vector<1x256xf32> to vector<8x256xf32>
    %29 = arith.addf %26, %28 : vector<8x256xf32>
    %cst_13 = arith.constant 0.000000e+00 : f32
    %30 = vector.broadcast %cst_13 : f32 to vector<8x256xf32>
    %31 = arith.maximumf %29, %30 : vector<8x256xf32>
    %cst_14 = arith.constant 0.000000e+00 : f32
    %32 = vector.broadcast %cst_14 : f32 to vector<8x256xf32>
    %33 = arith.select %12, %31, %32 : vector<8x256xi1>, vector<8x256xf32>
    %c0_15 = arith.constant 0 : index
    %c0_16 = arith.constant 0 : index
    %34 = vector.load %arg5[%c0_15, %c0_16] : memref<8x256xf32, #tpu.memory_space<vmem>>, vector<8x256xf32>
    tpu.vector_store %arg5[%c0_15, %c0_16], %33 {strides = array<i32>} : memref<8x256xf32, #tpu.memory_space<vmem>>, vector<8x256xf32>,
    return
  }
  func.func @transform_0(%arg0: i32) -> (i32, i32) {
    %c0_i32 = arith.constant 0 : i32
    %c0_i32_0 = arith.constant 0 : i32
    %c0_i32_1 = arith.constant 0 : i32
    return %c0_i32, %c0_i32_0 : i32, i32
  }
  func.func @transform_1(%arg0: i32) -> (i32, i32) {
    %c0_i32 = arith.constant 0 : i32
    %c0_i32_0 = arith.constant 0 : i32
    %c0_i32_1 = arith.constant 0 : i32
    return %c0_i32, %c0_i32_0 : i32, i32
  }
  func.func @transform_2(%arg0: i32) -> (i32, i32) {
    %c0_i32 = arith.constant 0 : i32
    %c0_i32_0 = arith.constant 0 : i32
    %c0_i32_1 = arith.constant 0 : i32
    return %c0_i32, %c0_i32_0 : i32, i32
  }
  func.func @transform_3(%arg0: i32) -> (i32, i32) {
    %c0_i32 = arith.constant 0 : i32
    %c0_i32_0 = arith.constant 0 : i32
    %c0_i32_1 = arith.constant 0 : i32
    return %c0_i32, %c0_i32_0 : i32, i32
  }
  func.func @transform_4(%arg0: i32) -> (i32, i32) {
    %c0_i32 = arith.constant 0 : i32
    %c0_i32_0 = arith.constant 0 : i32
    %c0_i32_1 = arith.constant 0 : i32
    return %c0_i32, %c0_i32_0 : i32, i32
  }
}

module attributes {stable_mosaic.version = 11 : i64} {
  func.func @kernel(%arg0: i32, %arg1: memref<8x256xf32, #tpu.memory_space<vmem>>, %arg2: memref<256x256xbf16, #tpu.memory_space<vmem>>, %arg3: memref<1x256xf32, #tpu.memory_space<vmem>>, %arg4: memref<1x256xf32, #tpu.memory_space<vmem>>, %arg5: memref<8x256xf32, #tpu.memory_space<vmem>>) attributes {dimension_semantics = [#tpu.dimension_semantics<arbitrary>], iteration_bounds = array<i64: 1>, scalar_prefetch = 0 : i64, scratch_operands = 0 : i64, tpu.core_type = #tpu.core_type<tc>, window_params = [{pipeline_mode = #tpu.pipeline_mode<synchronous>, transform_indices = @transform_0, window_bounds = array<i64: 8, 256>}, {pipeline_mode = #tpu.pipeline_mode<synchronous>, transform_indices = @transform_1, window_bounds = array<i64: 256, 256>}, {pipeline_mode = #tpu.pipeline_mode<synchronous>, transform_indices = @transform_2, window_bounds = array<i64: 1, 256>}, {pipeline_mode = #tpu.pipeline_mode<synchronous>, transform_indices = @transform_3, window_bounds = array<i64: 1, 256>}, {pipeline_mode = #tpu.pipeline_mode<synchronous>, transform_indices = @transform_4, window_bounds = array<i64: 8, 256>}]} {
    %c0 = arith.constant 0 : index
    %c0_0 = arith.constant 0 : index
    %0 = vector.load %arg1[%c0, %c0_0] : memref<8x256xf32, #tpu.memory_space<vmem>>, vector<8x256xf32>
    %1 = arith.truncf %0 : vector<8x256xf32> to vector<8x256xbf16>
    %c0_1 = arith.constant 0 : index
    %c0_2 = arith.constant 0 : index
    %2 = vector.load %arg2[%c0_1, %c0_2] : memref<256x256xbf16, #tpu.memory_space<vmem>>, vector<256x256xbf16>
    %cst = arith.constant dense<0.000000e+00> : vector<8x256xf32>
    %3 = tpu.matmul %1, %2, %cst {dimension_numbers = #tpu.dot_dimension_numbers<[1], [0], [0], [1], [0, 0, 1, 1], [], []>} : vector<8x256xbf16>, vector<256x256xbf16>, vector<8x256xf32> -> vector<8x256xf32>
    %cst_3 = arith.constant dense<0.000000e+00> : vector<256xf32>
    %4 = vector.multi_reduction <add>, %3, %cst_3 [0] : vector<8x256xf32> to vector<256xf32>
    %5 = vector.shape_cast %4 : vector<256xf32> to vector<1x256xf32>
    %cst_4 = arith.constant 5.000000e-01 : f32
    %6 = vector.broadcast %cst_4 : f32 to vector<1x256xf32>
    %7 = arith.mulf %5, %6 : vector<1x256xf32>
    %8 = vector.broadcast %7 : vector<1x256xf32> to vector<8x256xf32>
    %9 = arith.subf %3, %8 : vector<8x256xf32>
    %10 = tpu.iota {dimensions = array<i32: 0>} : vector<8x256xi32>
    %c2_i32 = arith.constant 2 : i32
    %11 = vector.broadcast %c2_i32 : i32 to vector<8x256xi32>
    %12 = arith.cmpi slt, %10, %11 : vector<8x256xi32>
    %cst_5 = arith.constant 0.000000e+00 : f32
    %13 = vector.broadcast %cst_5 : f32 to vector<8x256xf32>
    %14 = arith.select %12, %9, %13 : vector<8x256xi1>, vector<8x256xf32>
    %15 = arith.mulf %14, %14 : vector<8x256xf32>
    %cst_6 = arith.constant dense<0.000000e+00> : vector<256xf32>
    %16 = vector.multi_reduction <add>, %15, %cst_6 [0] : vector<8x256xf32> to vector<256xf32>
    %17 = vector.shape_cast %16 : vector<256xf32> to vector<1x256xf32>
    %cst_7 = arith.constant 5.000000e-01 : f32
    %18 = vector.broadcast %cst_7 : f32 to vector<1x256xf32>
    %19 = arith.mulf %17, %18 : vector<1x256xf32>
    %c0_8 = arith.constant 0 : index
    %c0_9 = arith.constant 0 : index
    %20 = vector.load %arg3[%c0_8, %c0_9] : memref<1x256xf32, #tpu.memory_space<vmem>>, vector<1x256xf32>
    %cst_10 = arith.constant 9.99999974E-6 : f32
    %21 = vector.broadcast %cst_10 : f32 to vector<1x256xf32>
    %22 = arith.addf %19, %21 : vector<1x256xf32>
    %23 = math.rsqrt %22 : vector<1x256xf32>
    %24 = arith.mulf %20, %23 : vector<1x256xf32>
    %25 = vector.broadcast %24 : vector<1x256xf32> to vector<8x256xf32>
    %26 = arith.mulf %14, %25 : vector<8x256xf32>
    %c0_11 = arith.constant 0 : index
    %c0_12 = arith.constant 0 : index
    %27 = vector.load %arg4[%c0_11, %c0_12] : memref<1x256xf32, #tpu.memory_space<vmem>>, vector<1x256xf32>
    %28 = vector.broadcast %27 : vector<1x256xf32> to vector<8x256xf32>
    %29 = arith.addf %26, %28 : vector<8x256xf32>
    %cst_13 = arith.constant 0.000000e+00 : f32
    %30 = vector.broadcast %cst_13 : f32 to vector<8x256xf32>
    %31 = arith.maximumf %29, %30 : vector<8x256xf32>
    %cst_14 = arith.constant 0.000000e+00 : f32
    %32 = vector.broadcast %cst_14 : f32 to vector<8x256xf32>
    %33 = arith.select %12, %31, %32 : vector<8x256xi1>, vector<8x256xf32>
    %c0_15 = arith.constant 0 : index
    %c0_16 = arith.constant 0 : index
    %34 = vector.load %arg5[%c0_15, %c0_16] : memref<8x256xf32, #tpu.memory_space<vmem>>, vector<8x256xf32>
    tpu.vector_store %arg5[%c0_15, %c0_16], %33 {strides = array<i32>} : memref<8x256xf32, #tpu.memory_space<vmem>>, vector<8x256xf32>,
    return
  }
  func.func @transform_0(%arg0: i32) -> (i32, i32) {
    %c0_i32 = arith.constant 0 : i32
    %c0_i32_0 = arith.constant 0 : i32
    %c0_i32_1 = arith.constant 0 : i32
    return %c0_i32, %c0_i32_0 : i32, i32
  }
  func.func @transform_1(%arg0: i32) -> (i32, i32) {
    %c0_i32 = arith.constant 0 : i32
    %c0_i32_0 = arith.constant 0 : i32
    %c0_i32_1 = arith.constant 0 : i32
    return %c0_i32, %c0_i32_0 : i32, i32
  }
  func.func @transform_2(%arg0: i32) -> (i32, i32) {
    %c0_i32 = arith.constant 0 : i32
    %c0_i32_0 = arith.constant 0 : i32
    %c0_i32_1 = arith.constant 0 : i32
    return %c0_i32, %c0_i32_0 : i32, i32
  }
  func.func @transform_3(%arg0: i32) -> (i32, i32) {
    %c0_i32 = arith.constant 0 : i32
    %c0_i32_0 = arith.constant 0 : i32
    %c0_i32_1 = arith.constant 0 : i32
    return %c0_i32, %c0_i32_0 : i32, i32
  }
  func.func @transform_4(%arg0: i32) -> (i32, i32) {
    %c0_i32 = arith.constant 0 : i32
    %c0_i32_0 = arith.constant 0 : i32
    %c0_i32_1 = arith.constant 0 : i32
    return %c0_i32, %c0_i32_0 : i32, i32
  }
}

module attributes {stable_mosaic.version = 11 : i64} {
  func.func @kernel(%arg0: i32, %arg1: memref<8x256xf32, #tpu.memory_space<vmem>>, %arg2: memref<256x256xbf16, #tpu.memory_space<vmem>>, %arg3: memref<1x256xf32, #tpu.memory_space<vmem>>, %arg4: memref<1x256xf32, #tpu.memory_space<vmem>>, %arg5: memref<8x256xf32, #tpu.memory_space<vmem>>, %arg6: memref<8x256xf32, #tpu.memory_space<vmem>>) attributes {dimension_semantics = [#tpu.dimension_semantics<arbitrary>], iteration_bounds = array<i64: 1>, scalar_prefetch = 0 : i64, scratch_operands = 0 : i64, tpu.core_type = #tpu.core_type<tc>, window_params = [{pipeline_mode = #tpu.pipeline_mode<synchronous>, transform_indices = @transform_0, window_bounds = array<i64: 8, 256>}, {pipeline_mode = #tpu.pipeline_mode<synchronous>, transform_indices = @transform_1, window_bounds = array<i64: 256, 256>}, {pipeline_mode = #tpu.pipeline_mode<synchronous>, transform_indices = @transform_2, window_bounds = array<i64: 1, 256>}, {pipeline_mode = #tpu.pipeline_mode<synchronous>, transform_indices = @transform_3, window_bounds = array<i64: 1, 256>}, {pipeline_mode = #tpu.pipeline_mode<synchronous>, transform_indices = @transform_4, window_bounds = array<i64: 8, 256>}, {pipeline_mode = #tpu.pipeline_mode<synchronous>, transform_indices = @transform_5, window_bounds = array<i64: 8, 256>}]} {
    %c0 = arith.constant 0 : index
    %c0_0 = arith.constant 0 : index
    %0 = vector.load %arg1[%c0, %c0_0] : memref<8x256xf32, #tpu.memory_space<vmem>>, vector<8x256xf32>
    %1 = arith.truncf %0 : vector<8x256xf32> to vector<8x256xbf16>
    %c0_1 = arith.constant 0 : index
    %c0_2 = arith.constant 0 : index
    %2 = vector.load %arg2[%c0_1, %c0_2] : memref<256x256xbf16, #tpu.memory_space<vmem>>, vector<256x256xbf16>
    %cst = arith.constant dense<0.000000e+00> : vector<8x256xf32>
    %3 = tpu.matmul %1, %2, %cst {dimension_numbers = #tpu.dot_dimension_numbers<[1], [0], [0], [1], [0, 0, 1, 1], [], []>} : vector<8x256xbf16>, vector<256x256xbf16>, vector<8x256xf32> -> vector<8x256xf32>
    %cst_3 = arith.constant dense<0.000000e+00> : vector<256xf32>
    %4 = vector.multi_reduction <add>, %3, %cst_3 [0] : vector<8x256xf32> to vector<256xf32>
    %5 = vector.shape_cast %4 : vector<256xf32> to vector<1x256xf32>
    %cst_4 = arith.constant 5.000000e-01 : f32
    %6 = vector.broadcast %cst_4 : f32 to vector<1x256xf32>
    %7 = arith.mulf %5, %6 : vector<1x256xf32>
    %8 = vector.broadcast %7 : vector<1x256xf32> to vector<8x256xf32>
    %9 = arith.subf %3, %8 : vector<8x256xf32>
    %10 = tpu.iota {dimensions = array<i32: 0>} : vector<8x256xi32>
    %c2_i32 = arith.constant 2 : i32
    %11 = vector.broadcast %c2_i32 : i32 to vector<8x256xi32>
    %12 = arith.cmpi slt, %10, %11 : vector<8x256xi32>
    %cst_5 = arith.constant 0.000000e+00 : f32
    %13 = vector.broadcast %cst_5 : f32 to vector<8x256xf32>
    %14 = arith.select %12, %9, %13 : vector<8x256xi1>, vector<8x256xf32>
    %15 = arith.mulf %14, %14 : vector<8x256xf32>
    %cst_6 = arith.constant dense<0.000000e+00> : vector<256xf32>
    %16 = vector.multi_reduction <add>, %15, %cst_6 [0] : vector<8x256xf32> to vector<256xf32>
    %17 = vector.shape_cast %16 : vector<256xf32> to vector<1x256xf32>
    %cst_7 = arith.constant 5.000000e-01 : f32
    %18 = vector.broadcast %cst_7 : f32 to vector<1x256xf32>
    %19 = arith.mulf %17, %18 : vector<1x256xf32>
    %c0_8 = arith.constant 0 : index
    %c0_9 = arith.constant 0 : index
    %20 = vector.load %arg3[%c0_8, %c0_9] : memref<1x256xf32, #tpu.memory_space<vmem>>, vector<1x256xf32>
    %cst_10 = arith.constant 9.99999974E-6 : f32
    %21 = vector.broadcast %cst_10 : f32 to vector<1x256xf32>
    %22 = arith.addf %19, %21 : vector<1x256xf32>
    %23 = math.rsqrt %22 : vector<1x256xf32>
    %24 = arith.mulf %20, %23 : vector<1x256xf32>
    %25 = vector.broadcast %24 : vector<1x256xf32> to vector<8x256xf32>
    %26 = arith.mulf %14, %25 : vector<8x256xf32>
    %c0_11 = arith.constant 0 : index
    %c0_12 = arith.constant 0 : index
    %27 = vector.load %arg4[%c0_11, %c0_12] : memref<1x256xf32, #tpu.memory_space<vmem>>, vector<1x256xf32>
    %28 = vector.broadcast %27 : vector<1x256xf32> to vector<8x256xf32>
    %29 = arith.addf %26, %28 : vector<8x256xf32>
    %c0_13 = arith.constant 0 : index
    %c0_14 = arith.constant 0 : index
    %30 = vector.load %arg5[%c0_13, %c0_14] : memref<8x256xf32, #tpu.memory_space<vmem>>, vector<8x256xf32>
    %31 = arith.addf %29, %30 : vector<8x256xf32>
    %cst_15 = arith.constant 0.000000e+00 : f32
    %32 = vector.broadcast %cst_15 : f32 to vector<8x256xf32>
    %33 = arith.maximumf %31, %32 : vector<8x256xf32>
    %cst_16 = arith.constant 0.000000e+00 : f32
    %34 = vector.broadcast %cst_16 : f32 to vector<8x256xf32>
    %35 = arith.select %12, %33, %34 : vector<8x256xi1>, vector<8x256xf32>
    %c0_17 = arith.constant 0 : index
    %c0_18 = arith.constant 0 : index
    %36 = vector.load %arg6[%c0_17, %c0_18] : memref<8x256xf32, #tpu.memory_space<vmem>>, vector<8x256xf32>
    tpu.vector_store %arg6[%c0_17, %c0_18], %35 {strides = array<i32>} : memref<8x256xf32, #tpu.memory_space<vmem>>, vector<8x256xf32>,
    return
  }
  func.func @transform_0(%arg0: i32) -> (i32, i32) {
    %c0_i32 = arith.constant 0 : i32
    %c0_i32_0 = arith.constant 0 : i32
    %c0_i32_1 = arith.constant 0 : i32
    return %c0_i32, %c0_i32_0 : i32, i32
  }
  func.func @transform_1(%arg0: i32) -> (i32, i32) {
    %c0_i32 = arith.constant 0 : i32
    %c0_i32_0 = arith.constant 0 : i32
    %c0_i32_1 = arith.constant 0 : i32
    return %c0_i32, %c0_i32_0 : i32, i32
  }
  func.func @transform_2(%arg0: i32) -> (i32, i32) {
    %c0_i32 = arith.constant 0 : i32
    %c0_i32_0 = arith.constant 0 : i32
    %c0_i32_1 = arith.constant 0 : i32
    return %c0_i32, %c0_i32_0 : i32, i32
  }
  func.func @transform_3(%arg0: i32) -> (i32, i32) {
    %c0_i32 = arith.constant 0 : i32
    %c0_i32_0 = arith.constant 0 : i32
    %c0_i32_1 = arith.constant 0 : i32
    return %c0_i32, %c0_i32_0 : i32, i32
  }
  func.func @transform_4(%arg0: i32) -> (i32, i32) {
    %c0_i32 = arith.constant 0 : i32
    %c0_i32_0 = arith.constant 0 : i32
    %c0_i32_1 = arith.constant 0 : i32
    return %c0_i32, %c0_i32_0 : i32, i32
  }
  func.func @transform_5(%arg0: i32) -> (i32, i32) {
    %c0_i32 = arith.constant 0 : i32
    %c0_i32_0 = arith.constant 0 : i32
    %c0_i32_1 = arith.constant 0 : i32
    return %c0_i32, %c0_i32_0 : i32, i32
  }
}

module attributes {stable_mosaic.version = 11 : i64} {
  func.func @kernel(%arg0: i32, %arg1: memref<8x256xf32, #tpu.memory_space<vmem>>, %arg2: memref<256x512xbf16, #tpu.memory_space<vmem>>, %arg3: memref<1x512xf32, #tpu.memory_space<vmem>>, %arg4: memref<1x512xf32, #tpu.memory_space<vmem>>, %arg5: memref<8x512xf32, #tpu.memory_space<vmem>>) attributes {dimension_semantics = [#tpu.dimension_semantics<arbitrary>], iteration_bounds = array<i64: 1>, scalar_prefetch = 0 : i64, scratch_operands = 0 : i64, tpu.core_type = #tpu.core_type<tc>, window_params = [{pipeline_mode = #tpu.pipeline_mode<synchronous>, transform_indices = @transform_0, window_bounds = array<i64: 8, 256>}, {pipeline_mode = #tpu.pipeline_mode<synchronous>, transform_indices = @transform_1, window_bounds = array<i64: 256, 512>}, {pipeline_mode = #tpu.pipeline_mode<synchronous>, transform_indices = @transform_2, window_bounds = array<i64: 1, 512>}, {pipeline_mode = #tpu.pipeline_mode<synchronous>, transform_indices = @transform_3, window_bounds = array<i64: 1, 512>}, {pipeline_mode = #tpu.pipeline_mode<synchronous>, transform_indices = @transform_4, window_bounds = array<i64: 8, 512>}]} {
    %c0 = arith.constant 0 : index
    %c0_0 = arith.constant 0 : index
    %0 = vector.load %arg1[%c0, %c0_0] : memref<8x256xf32, #tpu.memory_space<vmem>>, vector<8x256xf32>
    %1 = arith.truncf %0 : vector<8x256xf32> to vector<8x256xbf16>
    %c0_1 = arith.constant 0 : index
    %c0_2 = arith.constant 0 : index
    %2 = vector.load %arg2[%c0_1, %c0_2] : memref<256x512xbf16, #tpu.memory_space<vmem>>, vector<256x512xbf16>
    %cst = arith.constant dense<0.000000e+00> : vector<8x512xf32>
    %3 = tpu.matmul %1, %2, %cst {dimension_numbers = #tpu.dot_dimension_numbers<[1], [0], [0], [1], [0, 0, 1, 1], [], []>} : vector<8x256xbf16>, vector<256x512xbf16>, vector<8x512xf32> -> vector<8x512xf32>
    %cst_3 = arith.constant dense<0.000000e+00> : vector<512xf32>
    %4 = vector.multi_reduction <add>, %3, %cst_3 [0] : vector<8x512xf32> to vector<512xf32>
    %5 = vector.shape_cast %4 : vector<512xf32> to vector<1x512xf32>
    %cst_4 = arith.constant 5.000000e-01 : f32
    %6 = vector.broadcast %cst_4 : f32 to vector<1x512xf32>
    %7 = arith.mulf %5, %6 : vector<1x512xf32>
    %8 = vector.broadcast %7 : vector<1x512xf32> to vector<8x512xf32>
    %9 = arith.subf %3, %8 : vector<8x512xf32>
    %10 = tpu.iota {dimensions = array<i32: 0>} : vector<8x512xi32>
    %c2_i32 = arith.constant 2 : i32
    %11 = vector.broadcast %c2_i32 : i32 to vector<8x512xi32>
    %12 = arith.cmpi slt, %10, %11 : vector<8x512xi32>
    %cst_5 = arith.constant 0.000000e+00 : f32
    %13 = vector.broadcast %cst_5 : f32 to vector<8x512xf32>
    %14 = arith.select %12, %9, %13 : vector<8x512xi1>, vector<8x512xf32>
    %15 = arith.mulf %14, %14 : vector<8x512xf32>
    %cst_6 = arith.constant dense<0.000000e+00> : vector<512xf32>
    %16 = vector.multi_reduction <add>, %15, %cst_6 [0] : vector<8x512xf32> to vector<512xf32>
    %17 = vector.shape_cast %16 : vector<512xf32> to vector<1x512xf32>
    %cst_7 = arith.constant 5.000000e-01 : f32
    %18 = vector.broadcast %cst_7 : f32 to vector<1x512xf32>
    %19 = arith.mulf %17, %18 : vector<1x512xf32>
    %c0_8 = arith.constant 0 : index
    %c0_9 = arith.constant 0 : index
    %20 = vector.load %arg3[%c0_8, %c0_9] : memref<1x512xf32, #tpu.memory_space<vmem>>, vector<1x512xf32>
    %cst_10 = arith.constant 9.99999974E-6 : f32
    %21 = vector.broadcast %cst_10 : f32 to vector<1x512xf32>
    %22 = arith.addf %19, %21 : vector<1x512xf32>
    %23 = math.rsqrt %22 : vector<1x512xf32>
    %24 = arith.mulf %20, %23 : vector<1x512xf32>
    %25 = vector.broadcast %24 : vector<1x512xf32> to vector<8x512xf32>
    %26 = arith.mulf %14, %25 : vector<8x512xf32>
    %c0_11 = arith.constant 0 : index
    %c0_12 = arith.constant 0 : index
    %27 = vector.load %arg4[%c0_11, %c0_12] : memref<1x512xf32, #tpu.memory_space<vmem>>, vector<1x512xf32>
    %28 = vector.broadcast %27 : vector<1x512xf32> to vector<8x512xf32>
    %29 = arith.addf %26, %28 : vector<8x512xf32>
    %cst_13 = arith.constant 0.000000e+00 : f32
    %30 = vector.broadcast %cst_13 : f32 to vector<8x512xf32>
    %31 = arith.maximumf %29, %30 : vector<8x512xf32>
    %cst_14 = arith.constant 0.000000e+00 : f32
    %32 = vector.broadcast %cst_14 : f32 to vector<8x512xf32>
    %33 = arith.select %12, %31, %32 : vector<8x512xi1>, vector<8x512xf32>
    %c0_15 = arith.constant 0 : index
    %c0_16 = arith.constant 0 : index
    %34 = vector.load %arg5[%c0_15, %c0_16] : memref<8x512xf32, #tpu.memory_space<vmem>>, vector<8x512xf32>
    tpu.vector_store %arg5[%c0_15, %c0_16], %33 {strides = array<i32>} : memref<8x512xf32, #tpu.memory_space<vmem>>, vector<8x512xf32>,
    return
  }
  func.func @transform_0(%arg0: i32) -> (i32, i32) {
    %c0_i32 = arith.constant 0 : i32
    %c0_i32_0 = arith.constant 0 : i32
    %c0_i32_1 = arith.constant 0 : i32
    return %c0_i32, %c0_i32_0 : i32, i32
  }
  func.func @transform_1(%arg0: i32) -> (i32, i32) {
    %c0_i32 = arith.constant 0 : i32
    %c0_i32_0 = arith.constant 0 : i32
    %c0_i32_1 = arith.constant 0 : i32
    return %c0_i32, %c0_i32_0 : i32, i32
  }
  func.func @transform_2(%arg0: i32) -> (i32, i32) {
    %c0_i32 = arith.constant 0 : i32
    %c0_i32_0 = arith.constant 0 : i32
    %c0_i32_1 = arith.constant 0 : i32
    return %c0_i32, %c0_i32_0 : i32, i32
  }
  func.func @transform_3(%arg0: i32) -> (i32, i32) {
    %c0_i32 = arith.constant 0 : i32
    %c0_i32_0 = arith.constant 0 : i32
    %c0_i32_1 = arith.constant 0 : i32
    return %c0_i32, %c0_i32_0 : i32, i32
  }
  func.func @transform_4(%arg0: i32) -> (i32, i32) {
    %c0_i32 = arith.constant 0 : i32
    %c0_i32_0 = arith.constant 0 : i32
    %c0_i32_1 = arith.constant 0 : i32
    return %c0_i32, %c0_i32_0 : i32, i32
  }
}

module attributes {stable_mosaic.version = 11 : i64} {
  func.func @kernel(%arg0: i32, %arg1: memref<8x512xf32, #tpu.memory_space<vmem>>, %arg2: memref<512x512xbf16, #tpu.memory_space<vmem>>, %arg3: memref<1x512xf32, #tpu.memory_space<vmem>>, %arg4: memref<1x512xf32, #tpu.memory_space<vmem>>, %arg5: memref<8x512xf32, #tpu.memory_space<vmem>>) attributes {dimension_semantics = [#tpu.dimension_semantics<arbitrary>], iteration_bounds = array<i64: 1>, scalar_prefetch = 0 : i64, scratch_operands = 0 : i64, tpu.core_type = #tpu.core_type<tc>, window_params = [{pipeline_mode = #tpu.pipeline_mode<synchronous>, transform_indices = @transform_0, window_bounds = array<i64: 8, 512>}, {pipeline_mode = #tpu.pipeline_mode<synchronous>, transform_indices = @transform_1, window_bounds = array<i64: 512, 512>}, {pipeline_mode = #tpu.pipeline_mode<synchronous>, transform_indices = @transform_2, window_bounds = array<i64: 1, 512>}, {pipeline_mode = #tpu.pipeline_mode<synchronous>, transform_indices = @transform_3, window_bounds = array<i64: 1, 512>}, {pipeline_mode = #tpu.pipeline_mode<synchronous>, transform_indices = @transform_4, window_bounds = array<i64: 8, 512>}]} {
    %c0 = arith.constant 0 : index
    %c0_0 = arith.constant 0 : index
    %0 = vector.load %arg1[%c0, %c0_0] : memref<8x512xf32, #tpu.memory_space<vmem>>, vector<8x512xf32>
    %1 = arith.truncf %0 : vector<8x512xf32> to vector<8x512xbf16>
    %c0_1 = arith.constant 0 : index
    %c0_2 = arith.constant 0 : index
    %2 = vector.load %arg2[%c0_1, %c0_2] : memref<512x512xbf16, #tpu.memory_space<vmem>>, vector<512x512xbf16>
    %cst = arith.constant dense<0.000000e+00> : vector<8x512xf32>
    %3 = tpu.matmul %1, %2, %cst {dimension_numbers = #tpu.dot_dimension_numbers<[1], [0], [0], [1], [0, 0, 1, 1], [], []>} : vector<8x512xbf16>, vector<512x512xbf16>, vector<8x512xf32> -> vector<8x512xf32>
    %cst_3 = arith.constant dense<0.000000e+00> : vector<512xf32>
    %4 = vector.multi_reduction <add>, %3, %cst_3 [0] : vector<8x512xf32> to vector<512xf32>
    %5 = vector.shape_cast %4 : vector<512xf32> to vector<1x512xf32>
    %cst_4 = arith.constant 5.000000e-01 : f32
    %6 = vector.broadcast %cst_4 : f32 to vector<1x512xf32>
    %7 = arith.mulf %5, %6 : vector<1x512xf32>
    %8 = vector.broadcast %7 : vector<1x512xf32> to vector<8x512xf32>
    %9 = arith.subf %3, %8 : vector<8x512xf32>
    %10 = tpu.iota {dimensions = array<i32: 0>} : vector<8x512xi32>
    %c2_i32 = arith.constant 2 : i32
    %11 = vector.broadcast %c2_i32 : i32 to vector<8x512xi32>
    %12 = arith.cmpi slt, %10, %11 : vector<8x512xi32>
    %cst_5 = arith.constant 0.000000e+00 : f32
    %13 = vector.broadcast %cst_5 : f32 to vector<8x512xf32>
    %14 = arith.select %12, %9, %13 : vector<8x512xi1>, vector<8x512xf32>
    %15 = arith.mulf %14, %14 : vector<8x512xf32>
    %cst_6 = arith.constant dense<0.000000e+00> : vector<512xf32>
    %16 = vector.multi_reduction <add>, %15, %cst_6 [0] : vector<8x512xf32> to vector<512xf32>
    %17 = vector.shape_cast %16 : vector<512xf32> to vector<1x512xf32>
    %cst_7 = arith.constant 5.000000e-01 : f32
    %18 = vector.broadcast %cst_7 : f32 to vector<1x512xf32>
    %19 = arith.mulf %17, %18 : vector<1x512xf32>
    %c0_8 = arith.constant 0 : index
    %c0_9 = arith.constant 0 : index
    %20 = vector.load %arg3[%c0_8, %c0_9] : memref<1x512xf32, #tpu.memory_space<vmem>>, vector<1x512xf32>
    %cst_10 = arith.constant 9.99999974E-6 : f32
    %21 = vector.broadcast %cst_10 : f32 to vector<1x512xf32>
    %22 = arith.addf %19, %21 : vector<1x512xf32>
    %23 = math.rsqrt %22 : vector<1x512xf32>
    %24 = arith.mulf %20, %23 : vector<1x512xf32>
    %25 = vector.broadcast %24 : vector<1x512xf32> to vector<8x512xf32>
    %26 = arith.mulf %14, %25 : vector<8x512xf32>
    %c0_11 = arith.constant 0 : index
    %c0_12 = arith.constant 0 : index
    %27 = vector.load %arg4[%c0_11, %c0_12] : memref<1x512xf32, #tpu.memory_space<vmem>>, vector<1x512xf32>
    %28 = vector.broadcast %27 : vector<1x512xf32> to vector<8x512xf32>
    %29 = arith.addf %26, %28 : vector<8x512xf32>
    %cst_13 = arith.constant 0.000000e+00 : f32
    %30 = vector.broadcast %cst_13 : f32 to vector<8x512xf32>
    %31 = arith.maximumf %29, %30 : vector<8x512xf32>
    %cst_14 = arith.constant 0.000000e+00 : f32
    %32 = vector.broadcast %cst_14 : f32 to vector<8x512xf32>
    %33 = arith.select %12, %31, %32 : vector<8x512xi1>, vector<8x512xf32>
    %c0_15 = arith.constant 0 : index
    %c0_16 = arith.constant 0 : index
    %34 = vector.load %arg5[%c0_15, %c0_16] : memref<8x512xf32, #tpu.memory_space<vmem>>, vector<8x512xf32>
    tpu.vector_store %arg5[%c0_15, %c0_16], %33 {strides = array<i32>} : memref<8x512xf32, #tpu.memory_space<vmem>>, vector<8x512xf32>,
    return
  }
  func.func @transform_0(%arg0: i32) -> (i32, i32) {
    %c0_i32 = arith.constant 0 : i32
    %c0_i32_0 = arith.constant 0 : i32
    %c0_i32_1 = arith.constant 0 : i32
    return %c0_i32, %c0_i32_0 : i32, i32
  }
  func.func @transform_1(%arg0: i32) -> (i32, i32) {
    %c0_i32 = arith.constant 0 : i32
    %c0_i32_0 = arith.constant 0 : i32
    %c0_i32_1 = arith.constant 0 : i32
    return %c0_i32, %c0_i32_0 : i32, i32
  }
  func.func @transform_2(%arg0: i32) -> (i32, i32) {
    %c0_i32 = arith.constant 0 : i32
    %c0_i32_0 = arith.constant 0 : i32
    %c0_i32_1 = arith.constant 0 : i32
    return %c0_i32, %c0_i32_0 : i32, i32
  }
  func.func @transform_3(%arg0: i32) -> (i32, i32) {
    %c0_i32 = arith.constant 0 : i32
    %c0_i32_0 = arith.constant 0 : i32
    %c0_i32_1 = arith.constant 0 : i32
    return %c0_i32, %c0_i32_0 : i32, i32
  }
  func.func @transform_4(%arg0: i32) -> (i32, i32) {
    %c0_i32 = arith.constant 0 : i32
    %c0_i32_0 = arith.constant 0 : i32
    %c0_i32_1 = arith.constant 0 : i32
    return %c0_i32, %c0_i32_0 : i32, i32
  }
}

module attributes {stable_mosaic.version = 11 : i64} {
  func.func @kernel(%arg0: i32, %arg1: memref<8x512xf32, #tpu.memory_space<vmem>>, %arg2: memref<512x512xbf16, #tpu.memory_space<vmem>>, %arg3: memref<1x512xf32, #tpu.memory_space<vmem>>, %arg4: memref<1x512xf32, #tpu.memory_space<vmem>>, %arg5: memref<8x512xf32, #tpu.memory_space<vmem>>, %arg6: memref<8x512xf32, #tpu.memory_space<vmem>>) attributes {dimension_semantics = [#tpu.dimension_semantics<arbitrary>], iteration_bounds = array<i64: 1>, scalar_prefetch = 0 : i64, scratch_operands = 0 : i64, tpu.core_type = #tpu.core_type<tc>, window_params = [{pipeline_mode = #tpu.pipeline_mode<synchronous>, transform_indices = @transform_0, window_bounds = array<i64: 8, 512>}, {pipeline_mode = #tpu.pipeline_mode<synchronous>, transform_indices = @transform_1, window_bounds = array<i64: 512, 512>}, {pipeline_mode = #tpu.pipeline_mode<synchronous>, transform_indices = @transform_2, window_bounds = array<i64: 1, 512>}, {pipeline_mode = #tpu.pipeline_mode<synchronous>, transform_indices = @transform_3, window_bounds = array<i64: 1, 512>}, {pipeline_mode = #tpu.pipeline_mode<synchronous>, transform_indices = @transform_4, window_bounds = array<i64: 8, 512>}, {pipeline_mode = #tpu.pipeline_mode<synchronous>, transform_indices = @transform_5, window_bounds = array<i64: 8, 512>}]} {
    %c0 = arith.constant 0 : index
    %c0_0 = arith.constant 0 : index
    %0 = vector.load %arg1[%c0, %c0_0] : memref<8x512xf32, #tpu.memory_space<vmem>>, vector<8x512xf32>
    %1 = arith.truncf %0 : vector<8x512xf32> to vector<8x512xbf16>
    %c0_1 = arith.constant 0 : index
    %c0_2 = arith.constant 0 : index
    %2 = vector.load %arg2[%c0_1, %c0_2] : memref<512x512xbf16, #tpu.memory_space<vmem>>, vector<512x512xbf16>
    %cst = arith.constant dense<0.000000e+00> : vector<8x512xf32>
    %3 = tpu.matmul %1, %2, %cst {dimension_numbers = #tpu.dot_dimension_numbers<[1], [0], [0], [1], [0, 0, 1, 1], [], []>} : vector<8x512xbf16>, vector<512x512xbf16>, vector<8x512xf32> -> vector<8x512xf32>
    %cst_3 = arith.constant dense<0.000000e+00> : vector<512xf32>
    %4 = vector.multi_reduction <add>, %3, %cst_3 [0] : vector<8x512xf32> to vector<512xf32>
    %5 = vector.shape_cast %4 : vector<512xf32> to vector<1x512xf32>
    %cst_4 = arith.constant 5.000000e-01 : f32
    %6 = vector.broadcast %cst_4 : f32 to vector<1x512xf32>
    %7 = arith.mulf %5, %6 : vector<1x512xf32>
    %8 = vector.broadcast %7 : vector<1x512xf32> to vector<8x512xf32>
    %9 = arith.subf %3, %8 : vector<8x512xf32>
    %10 = tpu.iota {dimensions = array<i32: 0>} : vector<8x512xi32>
    %c2_i32 = arith.constant 2 : i32
    %11 = vector.broadcast %c2_i32 : i32 to vector<8x512xi32>
    %12 = arith.cmpi slt, %10, %11 : vector<8x512xi32>
    %cst_5 = arith.constant 0.000000e+00 : f32
    %13 = vector.broadcast %cst_5 : f32 to vector<8x512xf32>
    %14 = arith.select %12, %9, %13 : vector<8x512xi1>, vector<8x512xf32>
    %15 = arith.mulf %14, %14 : vector<8x512xf32>
    %cst_6 = arith.constant dense<0.000000e+00> : vector<512xf32>
    %16 = vector.multi_reduction <add>, %15, %cst_6 [0] : vector<8x512xf32> to vector<512xf32>
    %17 = vector.shape_cast %16 : vector<512xf32> to vector<1x512xf32>
    %cst_7 = arith.constant 5.000000e-01 : f32
    %18 = vector.broadcast %cst_7 : f32 to vector<1x512xf32>
    %19 = arith.mulf %17, %18 : vector<1x512xf32>
    %c0_8 = arith.constant 0 : index
    %c0_9 = arith.constant 0 : index
    %20 = vector.load %arg3[%c0_8, %c0_9] : memref<1x512xf32, #tpu.memory_space<vmem>>, vector<1x512xf32>
    %cst_10 = arith.constant 9.99999974E-6 : f32
    %21 = vector.broadcast %cst_10 : f32 to vector<1x512xf32>
    %22 = arith.addf %19, %21 : vector<1x512xf32>
    %23 = math.rsqrt %22 : vector<1x512xf32>
    %24 = arith.mulf %20, %23 : vector<1x512xf32>
    %25 = vector.broadcast %24 : vector<1x512xf32> to vector<8x512xf32>
    %26 = arith.mulf %14, %25 : vector<8x512xf32>
    %c0_11 = arith.constant 0 : index
    %c0_12 = arith.constant 0 : index
    %27 = vector.load %arg4[%c0_11, %c0_12] : memref<1x512xf32, #tpu.memory_space<vmem>>, vector<1x512xf32>
    %28 = vector.broadcast %27 : vector<1x512xf32> to vector<8x512xf32>
    %29 = arith.addf %26, %28 : vector<8x512xf32>
    %c0_13 = arith.constant 0 : index
    %c0_14 = arith.constant 0 : index
    %30 = vector.load %arg5[%c0_13, %c0_14] : memref<8x512xf32, #tpu.memory_space<vmem>>, vector<8x512xf32>
    %31 = arith.addf %29, %30 : vector<8x512xf32>
    %cst_15 = arith.constant 0.000000e+00 : f32
    %32 = vector.broadcast %cst_15 : f32 to vector<8x512xf32>
    %33 = arith.maximumf %31, %32 : vector<8x512xf32>
    %cst_16 = arith.constant 0.000000e+00 : f32
    %34 = vector.broadcast %cst_16 : f32 to vector<8x512xf32>
    %35 = arith.select %12, %33, %34 : vector<8x512xi1>, vector<8x512xf32>
    %c0_17 = arith.constant 0 : index
    %c0_18 = arith.constant 0 : index
    %36 = vector.load %arg6[%c0_17, %c0_18] : memref<8x512xf32, #tpu.memory_space<vmem>>, vector<8x512xf32>
    tpu.vector_store %arg6[%c0_17, %c0_18], %35 {strides = array<i32>} : memref<8x512xf32, #tpu.memory_space<vmem>>, vector<8x512xf32>,
    return
  }
  func.func @transform_0(%arg0: i32) -> (i32, i32) {
    %c0_i32 = arith.constant 0 : i32
    %c0_i32_0 = arith.constant 0 : i32
    %c0_i32_1 = arith.constant 0 : i32
    return %c0_i32, %c0_i32_0 : i32, i32
  }
  func.func @transform_1(%arg0: i32) -> (i32, i32) {
    %c0_i32 = arith.constant 0 : i32
    %c0_i32_0 = arith.constant 0 : i32
    %c0_i32_1 = arith.constant 0 : i32
    return %c0_i32, %c0_i32_0 : i32, i32
  }
  func.func @transform_2(%arg0: i32) -> (i32, i32) {
    %c0_i32 = arith.constant 0 : i32
    %c0_i32_0 = arith.constant 0 : i32
    %c0_i32_1 = arith.constant 0 : i32
    return %c0_i32, %c0_i32_0 : i32, i32
  }
  func.func @transform_3(%arg0: i32) -> (i32, i32) {
    %c0_i32 = arith.constant 0 : i32
    %c0_i32_0 = arith.constant 0 : i32
    %c0_i32_1 = arith.constant 0 : i32
    return %c0_i32, %c0_i32_0 : i32, i32
  }
  func.func @transform_4(%arg0: i32) -> (i32, i32) {
    %c0_i32 = arith.constant 0 : i32
    %c0_i32_0 = arith.constant 0 : i32
    %c0_i32_1 = arith.constant 0 : i32
    return %c0_i32, %c0_i32_0 : i32, i32
  }
  func.func @transform_5(%arg0: i32) -> (i32, i32) {
    %c0_i32 = arith.constant 0 : i32
    %c0_i32_0 = arith.constant 0 : i32
    %c0_i32_1 = arith.constant 0 : i32
    return %c0_i32, %c0_i32_0 : i32, i32
  }
}

module attributes {stable_mosaic.version = 11 : i64} {
  func.func @_fc_kernel(%arg0: i32, %arg1: memref<8x512xf32, #tpu.memory_space<vmem>>, %arg2: memref<512x10xbf16, #tpu.memory_space<vmem>>, %arg3: memref<1x10xf32, #tpu.memory_space<vmem>>, %arg4: memref<8x10xf32, #tpu.memory_space<vmem>>) attributes {dimension_semantics = [#tpu.dimension_semantics<arbitrary>], iteration_bounds = array<i64: 1>, scalar_prefetch = 0 : i64, scratch_operands = 0 : i64, tpu.core_type = #tpu.core_type<tc>, window_params = [{pipeline_mode = #tpu.pipeline_mode<synchronous>, transform_indices = @transform_0, window_bounds = array<i64: 8, 512>}, {pipeline_mode = #tpu.pipeline_mode<synchronous>, transform_indices = @transform_1, window_bounds = array<i64: 512, 10>}, {pipeline_mode = #tpu.pipeline_mode<synchronous>, transform_indices = @transform_2, window_bounds = array<i64: 1, 10>}, {pipeline_mode = #tpu.pipeline_mode<synchronous>, transform_indices = @transform_3, window_bounds = array<i64: 8, 10>}]} {
    %c0 = arith.constant 0 : index
    %c0_0 = arith.constant 0 : index
    %0 = vector.load %arg1[%c0, %c0_0] : memref<8x512xf32, #tpu.memory_space<vmem>>, vector<8x512xf32>
    %1 = arith.truncf %0 : vector<8x512xf32> to vector<8x512xbf16>
    %c0_1 = arith.constant 0 : index
    %c0_2 = arith.constant 0 : index
    %2 = vector.load %arg2[%c0_1, %c0_2] : memref<512x10xbf16, #tpu.memory_space<vmem>>, vector<512x10xbf16>
    %cst = arith.constant dense<0.000000e+00> : vector<8x10xf32>
    %3 = tpu.matmul %1, %2, %cst {dimension_numbers = #tpu.dot_dimension_numbers<[1], [0], [0], [1], [0, 0, 1, 1], [], []>} : vector<8x512xbf16>, vector<512x10xbf16>, vector<8x10xf32> -> vector<8x10xf32>
    %c0_3 = arith.constant 0 : index
    %c0_4 = arith.constant 0 : index
    %4 = vector.load %arg3[%c0_3, %c0_4] : memref<1x10xf32, #tpu.memory_space<vmem>>, vector<1x10xf32>
    %5 = vector.broadcast %4 : vector<1x10xf32> to vector<8x10xf32>
    %6 = arith.addf %3, %5 : vector<8x10xf32>
    %c0_5 = arith.constant 0 : index
    %c0_6 = arith.constant 0 : index
    %7 = vector.load %arg4[%c0_5, %c0_6] : memref<8x10xf32, #tpu.memory_space<vmem>>, vector<8x10xf32>
    tpu.vector_store %arg4[%c0_5, %c0_6], %6 {strides = array<i32>} : memref<8x10xf32, #tpu.memory_space<vmem>>, vector<8x10xf32>,
    return
  }
  func.func @transform_0(%arg0: i32) -> (i32, i32) {
    %c0_i32 = arith.constant 0 : i32
    %c0_i32_0 = arith.constant 0 : i32
    %c0_i32_1 = arith.constant 0 : i32
    return %c0_i32, %c0_i32_0 : i32, i32
  }
  func.func @transform_1(%arg0: i32) -> (i32, i32) {
    %c0_i32 = arith.constant 0 : i32
    %c0_i32_0 = arith.constant 0 : i32
    %c0_i32_1 = arith.constant 0 : i32
    return %c0_i32, %c0_i32_0 : i32, i32
  }
  func.func @transform_2(%arg0: i32) -> (i32, i32) {
    %c0_i32 = arith.constant 0 : i32
    %c0_i32_0 = arith.constant 0 : i32
    %c0_i32_1 = arith.constant 0 : i32
    return %c0_i32, %c0_i32_0 : i32, i32
  }
  func.func @transform_3(%arg0: i32) -> (i32, i32) {
    %c0_i32 = arith.constant 0 : i32
    %c0_i32_0 = arith.constant 0 : i32
    %c0_i32_1 = arith.constant 0 : i32
    return %c0_i32, %c0_i32_0 : i32, i32
  }
}

</mosaic_0001>

<bundles_post_ra>
// kernel: resnet18_forward.20
= control target key start
LH: loop header
LB: loop body
LE: loop exit
PB: predicated region body
PF: predicated region fallthrough
CT: control target
= control target key end

     0   :  { %vm282_vm0 = vcmask 523264   ;;  %s777_s0 = inlined_call_operand.vmem [shape: f32[2,10,10,64], index: 0, kind: input, shape index: {}]   ;;  %s778_s1 = inlined_call_operand.vmem [shape: f32[2,8,8,64], index: 1, kind: output, shape index: {}]  }
   0x1   :  { %v8_v0 = vld [vmem:[%s777_s0] sm:$0xff]  ;;  %v303_v4 = vld [vmem:[%s777_s0 + $0x10] sm:$0xff] }
   0x2   :  { %v24_v1 = vld [vmem:[%s777_s0 + $0x1] sm:$0xff]  ;;  %v319_v5 = vld [vmem:[%s777_s0 + $0x11] sm:$0xff] }
   0x3   :  { %v56_v2 = vld [vmem:[%s777_s0 + $0x2] sm:$0xff]  ;;  %v40_v3 = vmax.f32 %v8_v0, %v24_v1  ;;  %v335_v6 = vld [vmem:[%s777_s0 + $0x12] sm:$0xff]  ;;  %v41_v10 = vmax.f32 %v303_v4, %v319_v5 }
   0x4   :  { %v351_v7 = vld [vmem:[%s777_s0 + $0x20] sm:$0xff]  ;;  %v352_v12 = vld [vmem:[%s777_s0 + $0x30] sm:$0xff] }
   0x5   :  { %v433_v8 = vld [vmem:[%s777_s0 + $0x21] sm:$0xff]  ;;  %v72_v11 = vmax.f32 %v40_v3, %v56_v2  ;;  %v446_v13 = vld [vmem:[%s777_s0 + $0x31] sm:$0xff]  ;;  %v73_v16 = vmax.f32 %v41_v10, %v335_v6 }
   0x6   :  { %v438_v9 = vld [vmem:[%s777_s0 + $0x22] sm:$0xff]  ;;  %v451_v14 = vld [vmem:[%s777_s0 + $0x32] sm:$0xff]  ;;  %v42_v15 = vmax.f32 %v351_v7, %v433_v8  ;;  %v43_v20 = vmax.f32 %v352_v12, %v446_v13 }
   0x7   :  { %v353_v17 = vld [vmem:[%s777_s0 + $0x40] sm:$0xff]  ;;  %v105_v21 = vmax.f32 %v72_v11, %v303_v4  ;;  %v354_v23 = vld [vmem:[%s777_s0 + $0x50] sm:$0xff]  ;;  %v106_v27 = vmax.f32 %v73_v16, %v351_v7 }
   0x8   :  { %v460_v18 = vld [vmem:[%s777_s0 + $0x41] sm:$0xff]  ;;  %v74_v22 = vmax.f32 %v42_v15, %v438_v9  ;;  %v475_v24 = vld [vmem:[%s777_s0 + $0x51] sm:$0xff]  ;;  %v75_v28 = vmax.f32 %v43_v20, %v451_v14 }
   0x9   :  { %v465_v19 = vld [vmem:[%s777_s0 + $0x42] sm:$0xff]  ;;  %v480_v25 = vld [vmem:[%s777_s0 + $0x52] sm:$0xff]  ;;  %v44_v26 = vmax.f32 %v353_v17, %v460_v18  ;;  %v45_v32 = vmax.f32 %v354_v23, %v475_v24  ;;  %v137_v33 = vmax.f32 %v105_v21, %v319_v5  ;;  %v138_v40 = vmax.f32 %v106_v27, %v433_v8 }
   0xa   :  { %v355_v29 = vld [vmem:[%s777_s0 + $0x60] sm:$0xff]  ;;  %v107_v34 = vmax.f32 %v74_v22, %v352_v12  ;;  %v356_v36 = vld [vmem:[%s777_s0 + $0x70] sm:$0xff]  ;;  %v108_v41 = vmax.f32 %v75_v28, %v353_v17 }
   0xb   :  { %v490_v30 = vld [vmem:[%s777_s0 + $0x61] sm:$0xff]  ;;  %v76_v35 = vmax.f32 %v44_v26, %v465_v19  ;;  %v505_v37 = vld [vmem:[%s777_s0 + $0x71] sm:$0xff]  ;;  %v77_v42 = vmax.f32 %v45_v32, %v480_v25  ;;  %v169_v44 = vmax.f32 %v137_v33, %v335_v6  ;;  %v170_v49 = vmax.f32 %v138_v40, %v438_v9 }
   0xc   :  { %v495_v31 = vld [vmem:[%s777_s0 + $0x62] sm:$0xff]  ;;  %v510_v38 = vld [vmem:[%s777_s0 + $0x72] sm:$0xff]  ;;  %v46_v39 = vmax.f32 %v355_v29, %v490_v30  ;;  %v47_v43 = vmax.f32 %v356_v36, %v505_v37  ;;  %v139_v45 = vmax.f32 %v107_v34, %v446_v13  ;;  %v140_v50 = vmax.f32 %v108_v41, %v460_v18 }
   0xd   :  { %v109_v46 = vmax.f32 %v76_v35, %v354_v23  ;;  %v357_v48 = vld [vmem:[%s777_s0 + $0x80] sm:$0xff]  ;;  %v110_v51 = vmax.f32 %v77_v42, %v355_v29  ;;  %v202_v53 = vmax.f32 %v169_v44, %v351_v7  ;;  %v203_v58 = vmax.f32 %v170_v49, %v352_v12  ;;  %v358_v7 = vld [vmem:[%s777_s0 + $0x90] sm:$0xff] }
   0xe   :  { %v78_v47 = vmax.f32 %v46_v39, %v495_v31  ;;  %v79_v52 = vmax.f32 %v47_v43, %v510_v38  ;;  %v171_v54 = vmax.f32 %v139_v45, %v451_v14  ;;  %v529_v57 = vld [vmem:[%s777_s0 + $0x81] sm:$0xff]  ;;  %v172_v59 = vmax.f32 %v140_v50, %v465_v19  ;;  %v374_v16 = vld [vmem:[%s777_s0 + $0x91] sm:$0xff] }
   0xf   :  { %v141_v55 = vmax.f32 %v109_v46, %v475_v24  ;;  %v142_v60 = vmax.f32 %v110_v51, %v490_v30  ;;  %v234_v62 = vmax.f32 %v202_v53, %v433_v8  ;;  %v389_v2 = vld [vmem:[%s777_s0 + $0x82] sm:$0xff]  ;;  %v235_v3 = vmax.f32 %v203_v58, %v446_v13  ;;  %v327_v20 = vld [vmem:[%s777_s0 + $0xb1] sm:$0xff] }
  0x10   :  { %v111_v56 = vmax.f32 %v78_v47, %v356_v36  ;;  %v112_v61 = vmax.f32 %v79_v52, %v357_v48  ;;  %v204_v63 = vmax.f32 %v171_v54, %v353_v17  ;;  %v205_v4 = vmax.f32 %v172_v59, %v354_v23  ;;  %v16_v8 = vld [vmem:[%s777_s0 + $0xa0] sm:$0xff]  ;;  %v311_v17 = vld [vmem:[%s777_s0 + $0xb0] sm:$0xff] }
  0x11   :  { %v173_v0 = vmax.f32 %v141_v55, %v480_v25  ;;  %v174_v5 = vmax.f32 %v142_v60, %v495_v31  ;;  %v32_v10 = vld [vmem:[%s777_s0 + $0xa1] sm:$0xff]  ;;  %v266_v11 = vmax.f32 %v234_v62, %v438_v9  ;;  %v267_v21 = vmax.f32 %v235_v3, %v451_v14  ;;  %v343_v33 = vld [vmem:[%s777_s0 + $0xb2] sm:$0xff] }
  0x12   :  { %v143_v1 = vmax.f32 %v111_v56, %v505_v37  ;;  %v144_v6 = vmax.f32 %v112_v61, %v529_v57  ;;  %v236_v12 = vmax.f32 %v204_v63, %v460_v18  ;;  %v237_v9 = vmax.f32 %v205_v4, %v475_v24  ;;  %v64_v23 = vld [vmem:[%s777_s0 + $0xa2] sm:$0xff]  ;;  %v593_v34 = vld [vmem:[%s777_s0 + $0xd0] sm:$0xff] }
  0x13   :  { %v206_v13 = vmax.f32 %v173_v0, %v355_v29  ;;  %v207_v18 = vmax.f32 %v174_v5, %v356_v36  ;;  %v571_v26 = vld [vmem:[%s777_s0 + $0xc0] sm:$0xff]  ;;  %283 = vst.msk [vmem:[%s778_s1] sm:$0xff] %vm282_vm0, %v266_v11  ;;  %v390_v29 = vld [vmem:[%s777_s0 + $0x92] sm:$0xff]  ;;  %v48_v32 = vmax.f32 %v16_v8, %v32_v10  ;;  %284 = vst.msk [vmem:[%s778_s1 + $0x8] sm:$0xff] %vm282_vm0, %v267_v21 }
  0x14   :  { %v175_v15 = vmax.f32 %v143_v1, %v510_v38  ;;  %v176_v22 = vmax.f32 %v144_v6, %v389_v2  ;;  %v576_v27 = vld [vmem:[%s777_s0 + $0xc1] sm:$0xff]  ;;  %v268_v14 = vmax.f32 %v236_v12, %v465_v19  ;;  %v598_v19 = vld [vmem:[%s777_s0 + $0xd1] sm:$0xff]  ;;  %v49_v40 = vmax.f32 %v311_v17, %v327_v20 }
  0x15   :  { %v238_v24 = vmax.f32 %v206_v13, %v490_v30  ;;  %v269_v30 = vmax.f32 %v237_v9, %v480_v25  ;;  %v239_v35 = vmax.f32 %v207_v18, %v505_v37  ;;  %v609_v39 = vld [vmem:[%s777_s0 + $0xc2] sm:$0xff]  ;;  %v80_v43 = vmax.f32 %v48_v32, %v64_v23  ;;  %v628_v44 = vld [vmem:[%s777_s0 + $0xd2] sm:$0xff] }
  0x16   :  { %v208_v28 = vmax.f32 %v175_v15, %v357_v48  ;;  %v209_v36 = vmax.f32 %v176_v22, %v358_v7  ;;  %v361_v41 = vld [vmem:[%s777_s0 + $0xe0] sm:$0xff]  ;;  %285 = vst.msk [vmem:[%s778_s1 + $0x10] sm:$0xff] %vm282_vm0, %v268_v14  ;;  %v50_v45 = vmax.f32 %v571_v26, %v576_v27  ;;  %v362_v46 = vld [vmem:[%s777_s0 + $0xf0] sm:$0xff]  ;;  %v81_v49 = vmax.f32 %v49_v40, %v343_v33 }
  0x17   :  { %v617_v42 = vld [vmem:[%s777_s0 + $0xe1] sm:$0xff]  ;;  %v270_v25 = vmax.f32 %v238_v24, %v495_v31  ;;  %v638_v47 = vld [vmem:[%s777_s0 + $0xf1] sm:$0xff]  ;;  %286 = vst.msk [vmem:[%s778_s1 + $0x18] sm:$0xff] %vm282_vm0, %v269_v30  ;;  %v271_v31 = vmax.f32 %v239_v35, %v510_v38  ;;  %v51_v51 = vmax.f32 %v593_v34, %v598_v19  ;;  %v113_v54 = vmax.f32 %v80_v43, %v311_v17 }
  0x18   :  { %v240_v37 = vmax.f32 %v208_v28, %v529_v57  ;;  %v241_v48 = vmax.f32 %v209_v36, %v374_v16  ;;  %v648_v50 = vld [vmem:[%s777_s0 + $0xe2] sm:$0xff]  ;;  %v82_v55 = vmax.f32 %v50_v45, %v609_v39  ;;  %v668_v56 = vld [vmem:[%s777_s0 + $0xf2] sm:$0xff]  ;;  %v52_v57 = vmax.f32 %v361_v41, %v617_v42 }
  0x19   :  { %v363_v52 = vld [vmem:[%s777_s0 + $0x100] sm:$0xff]  ;;  %287 = vst.msk [vmem:[%s778_s1 + $0x20] sm:$0xff] %vm282_vm0, %v270_v25  ;;  %v364_v58 = vld [vmem:[%s777_s0 + $0x110] sm:$0xff]  ;;  %288 = vst.msk [vmem:[%s778_s1 + $0x28] sm:$0xff] %vm282_vm0, %v271_v31  ;;  %v114_v61 = vmax.f32 %v81_v49, %v571_v26  ;;  %v83_v62 = vmax.f32 %v51_v51, %v628_v44  ;;  %v53_v0 = vmax.f32 %v362_v46, %v638_v47 }
  0x1a   :  { %v658_v53 = vld [vmem:[%s777_s0 + $0x101] sm:$0xff]  ;;  %v272_v38 = vmax.f32 %v240_v37, %v389_v2  ;;  %v677_v59 = vld [vmem:[%s777_s0 + $0x111] sm:$0xff]  ;;  %v273_v60 = vmax.f32 %v241_v48, %v390_v29  ;;  %v145_v1 = vmax.f32 %v113_v54, %v327_v20  ;;  %v115_v2 = vmax.f32 %v82_v55, %v593_v34 }
  0x1b   :  { %v395_v63 = vld [vmem:[%s777_s0 + $0x102] sm:$0xff]  ;;  %v84_v3 = vmax.f32 %v52_v57, %v648_v50  ;;  %v396_v4 = vld [vmem:[%s777_s0 + $0x112] sm:$0xff]  ;;  %v54_v5 = vmax.f32 %v363_v52, %v658_v53  ;;  %v146_v6 = vmax.f32 %v114_v61, %v576_v27  ;;  %v116_v7 = vmax.f32 %v83_v62, %v361_v41 }
  0x1c   :  { %289 = vst.msk [vmem:[%s778_s1 + $0x30] sm:$0xff] %vm282_vm0, %v272_v38  ;;  %290 = vst.msk [vmem:[%s778_s1 + $0x38] sm:$0xff] %vm282_vm0, %v273_v60  ;;  %v85_v8 = vmax.f32 %v53_v0, %v668_v56  ;;  %v55_v10 = vmax.f32 %v364_v58, %v677_v59  ;;  %v177_v11 = vmax.f32 %v145_v1, %v343_v33  ;;  %v365_v16 = vld [vmem:[%s777_s0 + $0x120] sm:$0xff]  ;;  %v398_v55 = vld [vmem:[%s777_s0 + $0x132] sm:$0xff] }
  0x1d   :  { %v147_v12 = vmax.f32 %v115_v2, %v598_v19  ;;  %v117_v13 = vmax.f32 %v84_v3, %v362_v46  ;;  %v86_v15 = vmax.f32 %v54_v5, %v395_v63  ;;  %v178_v17 = vmax.f32 %v146_v6, %v609_v39  ;;  %v381_v24 = vld [vmem:[%s777_s0 + $0x121] sm:$0xff] }
  0x1e   :  { %v148_v20 = vmax.f32 %v116_v7, %v617_v42  ;;  %v118_v21 = vmax.f32 %v85_v8, %v363_v52  ;;  %v87_v9 = vmax.f32 %v55_v10, %v396_v4  ;;  %v210_v18 = vmax.f32 %v177_v11, %v571_v26  ;;  %v397_v40 = vld [vmem:[%s777_s0 + $0x122] sm:$0xff] }
  0x1f   :  { %v179_v22 = vmax.f32 %v147_v12, %v628_v44  ;;  %v149_v23 = vmax.f32 %v117_v13, %v638_v47  ;;  %v119_v14 = vmax.f32 %v86_v15, %v364_v58  ;;  %v211_v28 = vmax.f32 %v178_v17, %v593_v34 }
  0x20   :  { %v180_v29 = vmax.f32 %v148_v20, %v648_v50  ;;  %v150_v32 = vmax.f32 %v118_v21, %v658_v53  ;;  %v120_v33 = vmax.f32 %v87_v9, %v365_v16  ;;  %v242_v30 = vmax.f32 %v210_v18, %v576_v27 }
  0x21   :  { %v212_v35 = vmax.f32 %v179_v22, %v361_v41  ;;  %v181_v26 = vmax.f32 %v149_v23, %v668_v56  ;;  %v151_v36 = vmax.f32 %v119_v14, %v677_v59  ;;  %v243_v25 = vmax.f32 %v211_v28, %v598_v19  ;;  %v366_v41 = vld [vmem:[%s777_s0 + $0x130] sm:$0xff] }
  0x22   :  { %v213_v37 = vmax.f32 %v180_v29, %v362_v46  ;;  %v182_v34 = vmax.f32 %v150_v32, %v395_v63  ;;  %v152_v43 = vmax.f32 %v120_v33, %v381_v24  ;;  %v274_v45 = vmax.f32 %v242_v30, %v609_v39  ;;  %v382_v46 = vld [vmem:[%s777_s0 + $0x131] sm:$0xff] }
  0x23   :  { %v244_v31 = vmax.f32 %v212_v35, %v617_v42  ;;  %v214_v48 = vmax.f32 %v181_v26, %v363_v52  ;;  %v183_v27 = vmax.f32 %v151_v36, %v396_v4  ;;  %v275_v49 = vmax.f32 %v243_v25, %v628_v44 }
  0x24   :  { %v245_v51 = vmax.f32 %v213_v37, %v638_v47  ;;  %v215_v38 = vmax.f32 %v182_v34, %v364_v58  ;;  %v184_v54 = vmax.f32 %v152_v43, %v397_v40  ;;  %291 = vst.msk [vmem:[%s778_s1 + $0x40] sm:$0xff] %vm282_vm0, %v274_v45 }
  0x25   :  { %v276_v19 = vmax.f32 %v244_v31, %v648_v50  ;;  %v246_v39 = vmax.f32 %v214_v48, %v658_v53  ;;  %v216_v42 = vmax.f32 %v183_v27, %v365_v16  ;;  %292 = vst.msk [vmem:[%s778_s1 + $0x48] sm:$0xff] %vm282_vm0, %v275_v49 }
  0x26   :  { %v277_v44 = vmax.f32 %v245_v51, %v668_v56  ;;  %v247_v47 = vmax.f32 %v215_v38, %v677_v59  ;;  %v217_v52 = vmax.f32 %v184_v54, %v366_v41 }
  0x27   :  { %293 = vst.msk [vmem:[%s778_s1 + $0x50] sm:$0xff] %vm282_vm0, %v276_v19  ;;  %v278_v50 = vmax.f32 %v246_v39, %v395_v63  ;;  %v248_v53 = vmax.f32 %v216_v42, %v381_v24 }
  0x28   :  { %294 = vst.msk [vmem:[%s778_s1 + $0x58] sm:$0xff] %vm282_vm0, %v277_v44  ;;  %v279_v56 = vmax.f32 %v247_v47, %v396_v4  ;;  %v249_v57 = vmax.f32 %v217_v52, %v382_v46 }
  0x29   :  { %295 = vst.msk [vmem:[%s778_s1 + $0x60] sm:$0xff] %vm282_vm0, %v278_v50  ;;  %v280_v58 = vmax.f32 %v248_v53, %v397_v40 }
  0x2a   :  { %296 = vst.msk [vmem:[%s778_s1 + $0x68] sm:$0xff] %vm282_vm0, %v279_v56  ;;  %v281_v59 = vmax.f32 %v249_v57, %v398_v55 }
  0x2b   :  { %297 = vst.msk [vmem:[%s778_s1 + $0x70] sm:$0xff] %vm282_vm0, %v280_v58 }
  0x2c   :  { %298 = vst.msk [vmem:[%s778_s1 + $0x78] sm:$0xff] %vm282_vm0, %v281_v59 }

// kernel: resnet18_forward.19
= control target key start
LH: loop header
LB: loop body
LE: loop exit
PB: predicated region body
PF: predicated region fallthrough
CT: control target
= control target key end

     0   :  { %vm339_vm0 = vcmask 523264   ;;  %s986_s1 = inlined_call_operand.vmem [shape: bf16[256,64], index: 1, kind: input, shape index: {}]   ;;  %s987_s0 = inlined_call_operand.vmem [shape: bf16[128,256], index: 0, kind: input, shape index: {}]   ;;  %s988_s2 = inlined_call_operand.vmem [shape: f32[1,64], index: 2, kind: input, shape index: {}]   ;;  %s989_s3 = inlined_call_operand.vmem [shape: f32[1,64], index: 3, kind: input, shape index: {}]   ;;  %s990_s4 = inlined_call_operand.vmem [shape: f32[128,64], index: 4, kind: output, shape index: {}]  }
   0x1   :  { %v646_v0 = vld [vmem:[%s986_s1 + $0x78] sm:$0xff]   ;;  %v648_v2 = vld [vmem:[%s986_s1 + $0x70] sm:$0xff]   ;;  %v650_v4 = vld [vmem:[%s986_s1 + $0x68] sm:$0xff]  }
   0x2   :  { %v647_v1 = vld [vmem:[%s986_s1 + $0x38] sm:$0xff]   ;;  %566 = vmatprep.subr.bf16.mxu0 %v646_v0  ;;  %630 = vmatprep.subr.bf16.mxu1 %v646_v0  ;;  %v649_v3 = vld [vmem:[%s986_s1 + $0x30] sm:$0xff]   ;;  %v651_v5 = vld [vmem:[%s986_s1 + $0x28] sm:$0xff]  }
   0x3   :  { %567 = vmatpush3.bf16.msra.mxu0 %v647_v1  ;;  %638 = vmatpush3.bf16.msra.mxu1 %v647_v1  ;;  %v652_v6 = vld [vmem:[%s986_s1 + $0x60] sm:$0xff]   ;;  %v654_v8 = vld [vmem:[%s986_s1 + $0x58] sm:$0xff]   ;;  %v656_v10 = vld [vmem:[%s986_s1 + $0x50] sm:$0xff]  }
   0x4   :  { %568 = vmatprep.subr.bf16.mxu0 %v648_v2  ;;  %631 = vmatprep.subr.bf16.mxu1 %v648_v2  ;;  %v653_v7 = vld [vmem:[%s986_s1 + $0x20] sm:$0xff]   ;;  %v655_v9 = vld [vmem:[%s986_s1 + $0x18] sm:$0xff]   ;;  %v657_v12 = vld [vmem:[%s986_s1 + $0x10] sm:$0xff]  }
   0x5   :  { %v664_v11 = vld [vmem:[%s987_s0 + $0x4] ss:$8 sps:$4 sm:$0xff]   ;;  %v662_v18 = vld [vmem:[%s987_s0] ss:$8 sps:$4 sm:$0xff]   ;;  %v665_v20 = vld [vmem:[%s987_s0 + $0x14] ss:$8 sps:$4 sm:$0xff]  }
   0x6   :  { %v670_v13 = vld [vmem:[%s987_s0 + $0x44] ss:$8 sps:$4 sm:$0xff]   ;;  %274 = vmatprep.mubr.bf16.mxu0 %v664_v11  ;;  %v668_v19 = vld [vmem:[%s987_s0 + $0x40] ss:$8 sps:$4 sm:$0xff]   ;;  %v674_v21 = vld [vmem:[%s987_s0 + $0x54] ss:$8 sps:$4 sm:$0xff]  }
   0x7   :  { %569 = vmatpush3.bf16.msra.mxu0 %v649_v3  ;;  %639 = vmatpush3.bf16.msra.mxu1 %v649_v3  ;;  %v658_v14 = vld [vmem:[%s986_s1 + $0x48] sm:$0xff]   ;;  %v660_v16 = vld [vmem:[%s986_s1 + $0x40] sm:$0xff]   ;;  %v667_v22 = vld [vmem:[%s987_s0 + $0x10] ss:$8 sps:$4 sm:$0xff]  }
   0x8   :  { %570 = vmatprep.subr.bf16.mxu0 %v650_v4  ;;  %632 = vmatprep.subr.bf16.mxu1 %v650_v4  ;;  %v659_v15 = vld [vmem:[%s986_s1 + $0x8] sm:$0xff]   ;;  %v661_v17 = vld [vmem:[%s986_s1] sm:$0xff]   ;;  %v676_v23 = vld [vmem:[%s987_s0 + $0x50] ss:$8 sps:$4 sm:$0xff]  }
   0x9   :  { %306 = vmatprep.mubr.bf16.mxu1 %v670_v13  ;;  %v671_v24 = vld [vmem:[%s987_s0 + $0x24] ss:$8 sps:$4 sm:$0xff]   ;;  %v673_v26 = vld [vmem:[%s987_s0 + $0x20] ss:$8 sps:$4 sm:$0xff]   ;;  %v677_v28 = vld [vmem:[%s987_s0 + $0x34] ss:$8 sps:$4 sm:$0xff]  }
   0xa   :  { %v680_v25 = vld [vmem:[%s987_s0 + $0x64] ss:$8 sps:$4 sm:$0xff]   ;;  %v682_v27 = vld [vmem:[%s987_s0 + $0x60] ss:$8 sps:$4 sm:$0xff]   ;;  %v683_v29 = vld [vmem:[%s987_s0 + $0x74] ss:$8 sps:$4 sm:$0xff]  }
   0xb   :  { %571 = vmatpush3.bf16.msra.mxu0 %v651_v5  ;;  %640 = vmatpush3.bf16.msra.mxu1 %v651_v5  ;;  %v679_v30 = vld [vmem:[%s987_s0 + $0x30] ss:$8 sps:$4 sm:$0xff]  }
   0xc   :  { %572 = vmatprep.subr.bf16.mxu0 %v652_v6  ;;  %633 = vmatprep.subr.bf16.mxu1 %v652_v6  ;;  %v685_v31 = vld [vmem:[%s987_s0 + $0x70] ss:$8 sps:$4 sm:$0xff]  }
   0xf   :  { %573 = vmatpush3.bf16.msra.mxu0 %v653_v7  ;;  %641 = vmatpush3.bf16.msra.mxu1 %v653_v7 }
  0x10   :  { %574 = vmatprep.subr.bf16.mxu0 %v654_v8  ;;  %634 = vmatprep.subr.bf16.mxu1 %v654_v8 }
  0x13   :  { %575 = vmatpush3.bf16.msra.mxu0 %v655_v9  ;;  %642 = vmatpush3.bf16.msra.mxu1 %v655_v9 }
  0x14   :  { %576 = vmatprep.subr.bf16.mxu0 %v656_v10  ;;  %635 = vmatprep.subr.bf16.mxu1 %v656_v10 }
  0x17   :  { %577 = vmatpush3.bf16.msra.mxu0 %v657_v12  ;;  %643 = vmatpush3.bf16.msra.mxu1 %v657_v12 }
  0x18   :  { %578 = vmatprep.subr.bf16.mxu0 %v658_v14  ;;  %636 = vmatprep.subr.bf16.mxu1 %v658_v14 }
  0x1b   :  { %579 = vmatpush3.bf16.msra.mxu0 %v659_v15  ;;  %644 = vmatpush3.bf16.msra.mxu1 %v659_v15 }
  0x1c   :  { %580 = vmatprep.subr.bf16.mxu0 %v660_v16  ;;  %637 = vmatprep.subr.bf16.mxu1 %v660_v16 }
  0x1f   :  { %581 = vmatpush3.bf16.msra.mxu0 %v661_v17  ;;  %645 = vmatpush3.bf16.msra.mxu1 %v661_v17 }
  0x22   :  { %275 = vmatmul.mubr.bf16.vlgmr.msra.gmra.mxu0 %v662_v18  ;;  %307 = vmatmul.mubr.bf16.vlgmr.msra.gmra.mxu1 %v668_v19 }
  0x23   :  { %282 = vmatprep.mubr.bf16.mxu0 %v665_v20  ;;  %314 = vmatprep.mubr.bf16.mxu1 %v674_v21 }
  0x2a   :  { %283 = vmatmul.mubr.bf16.gmra.mxu0 %v667_v22  ;;  %315 = vmatmul.mubr.bf16.gmra.mxu1 %v676_v23 }
  0x2b   :  { %290 = vmatprep.mubr.bf16.mxu0 %v671_v24  ;;  %322 = vmatprep.mubr.bf16.mxu1 %v680_v25 }
  0x32   :  { %291 = vmatmul.mubr.bf16.gmra.mxu0 %v673_v26  ;;  %323 = vmatmul.mubr.bf16.gmra.mxu1 %v682_v27 }
  0x33   :  { %298 = vmatprep.mubr.bf16.mxu0 %v677_v28  ;;  %330 = vmatprep.mubr.bf16.mxu1 %v683_v29 }
  0x3a   :  { %299 = vmatmul.mubr.bf16.gmra.mxu0 %v679_v30  ;;  %331 = vmatmul.mubr.bf16.gmra.mxu1 %v685_v31 }
  0xe2   :  { %v582_v32 = vpop.f32.mrf.mxu0  ;;  %v606_v33 = vpop.f32.mrf.mxu1 }
  0xe4   :  { %v583_v34 = vpop.f32.mrf.mxu0  ;;  %v607_v35 = vpop.f32.mrf.mxu1 }
  0xe5   :  { %v811_v51 = vadd.f32 %v583_v34, %v582_v32  ;;  %v608_v16 = vadd.f32 %v607_v35, %v606_v33 }
  0xe6   :  { %v585_v36 = vpop.f32.mrf.mxu0  ;;  %v609_v37 = vpop.f32.mrf.mxu1 }
  0xe7   :  { %v340_v58 = vsel %vm339_vm0, %v811_v51, 0.0  ;;  %v355_v23 = vsel %vm339_vm0, %v608_v16, 0.0 }
  0xe8   :  { %v586_v38 = vpop.f32.mrf.mxu0  ;;  %v610_v39 = vpop.f32.mrf.mxu1 }
  0xe9   :  { %v809_v48 = vadd.f32 %v586_v38, %v585_v36  ;;  %v611_v19 = vadd.f32 %v610_v39, %v609_v37 }
  0xea   :  { %v588_v40 = vpop.f32.mrf.mxu0  ;;  %v612_v41 = vpop.f32.mrf.mxu1 }
  0xeb   :  { %v341_v55 = vsel %vm339_vm0, %v809_v48, 0.0  ;;  %v357_v26 = vsel %vm339_vm0, %v611_v19, 0.0 }
  0xec   :  { %v589_v42 = vpop.f32.mrf.mxu0  ;;  %v613_v43 = vpop.f32.mrf.mxu1  ;;  %v342_v61 = vadd.f32 %v341_v55, %v340_v58 }
  0xed   :  { %v813_v52 = vadd.f32 %v589_v42, %v588_v40  ;;  %v614_v24 = vadd.f32 %v613_v43, %v612_v41 }
  0xee   :  { %v591_v44 = vpop.f32.mrf.mxu0  ;;  %v615_v45 = vpop.f32.mrf.mxu1 }
  0xef   :  { %v343_v59 = vsel %vm339_vm0, %v813_v52, 0.0  ;;  %v359_v30 = vsel %vm339_vm0, %v614_v24, 0.0 }
  0xf0   :  { %v592_v46 = vpop.f32.mrf.mxu0  ;;  %v616_v47 = vpop.f32.mrf.mxu1  ;;  %v344_v2 = vadd.f32 %v343_v59, %v342_v61 }
  0xf1   :  { %v817_v56 = vadd.f32 %v592_v46, %v591_v44  ;;  %v617_v27 = vadd.f32 %v616_v47, %v615_v45 }
  0xf2   :  { %v594_v49 = vpop.f32.mrf.mxu0  ;;  %v618_v50 = vpop.f32.mrf.mxu1 }
  0xf3   :  { %v345_v0 = vsel %vm339_vm0, %v817_v56, 0.0  ;;  %v361_v33 = vsel %vm339_vm0, %v617_v27, 0.0 }
  0xf4   :  { %v595_v53 = vpop.f32.mrf.mxu0  ;;  %v619_v54 = vpop.f32.mrf.mxu1  ;;  %v346_v5 = vadd.f32 %v345_v0, %v344_v2 }
  0xf5   :  { %v823_v60 = vadd.f32 %v595_v53, %v594_v49  ;;  %v620_v31 = vadd.f32 %v619_v54, %v618_v50 }
  0xf6   :  { %v597_v57 = vpop.f32.mrf.mxu0  ;;  %v621_v63 = vpop.f32.mrf.mxu1 }
  0xf7   :  { %v347_v4 = vsel %vm339_vm0, %v823_v60, 0.0  ;;  %v363_v37 = vsel %vm339_vm0, %v620_v31, 0.0 }
  0xf8   :  { %v598_v62 = vpop.f32.mrf.mxu0  ;;  %v622_v7 = vpop.f32.mrf.mxu1  ;;  %v348_v10 = vadd.f32 %v347_v4, %v346_v5 }
  0xf9   :  { %v599_v1 = vadd.f32 %v598_v62, %v597_v57  ;;  %v623_v34 = vadd.f32 %v622_v7, %v621_v63 }
  0xfa   :  { %v600_v3 = vpop.f32.mrf.mxu0  ;;  %v624_v15 = vpop.f32.mrf.mxu1 }
  0xfb   :  { %v349_v8 = vsel %vm339_vm0, %v599_v1, 0.0  ;;  %v365_v40 = vsel %vm339_vm0, %v623_v34, 0.0 }
  0xfc   :  { %v601_v6 = vpop.f32.mrf.mxu0  ;;  %v350_v13 = vadd.f32 %v349_v8, %v348_v10  ;;  %v625_v22 = vpop.f32.mrf.mxu1 }
  0xfd   :  { %v602_v9 = vadd.f32 %v601_v6, %v600_v3  ;;  %v626_v38 = vadd.f32 %v625_v22, %v624_v15 }
  0xfe   :  { %v603_v11 = vpop.f32.mrf.mxu0  ;;  %v627_v29 = vpop.f32.mrf.mxu1 }
  0xff   :  { %v351_v12 = vsel %vm339_vm0, %v602_v9, 0.0  ;;  %v367_v43 = vsel %vm339_vm0, %v626_v38, 0.0 }
 0x100   :  { %v604_v14 = vpop.f32.mrf.mxu0  ;;  %v352_v18 = vadd.f32 %v351_v12, %v350_v13  ;;  %v628_v36 = vpop.f32.mrf.mxu1 }
 0x101   :  { %v605_v17 = vadd.f32 %v604_v14, %v603_v11  ;;  %v629_v41 = vadd.f32 %v628_v36, %v627_v29 }
 0x103   :  { %v353_v20 = vsel %vm339_vm0, %v605_v17, 0.0  ;;  %v369_v45 = vsel %vm339_vm0, %v629_v41, 0.0 }
 0x104   :  { %v354_v21 = vadd.f32 %v353_v20, %v352_v18 }
 0x106   :  { %v356_v25 = vadd.f32 %v355_v23, %v354_v21 }
 0x108   :  { %v358_v28 = vadd.f32 %v357_v26, %v356_v25 }
 0x10a   :  { %v360_v32 = vadd.f32 %v359_v30, %v358_v28 }
 0x10c   :  { %v362_v35 = vadd.f32 %v361_v33, %v360_v32 }
 0x10e   :  { %v364_v39 = vadd.f32 %v363_v37, %v362_v35 }
 0x110   :  { %v366_v42 = vadd.f32 %v365_v40, %v364_v39 }
 0x112   :  { %v368_v44 = vadd.f32 %v367_v43, %v366_v42 }
 0x114   :  { %v370_v46 = vadd.f32 %v369_v45, %v368_v44 }
 0x116   :  { %v371_v47 = vrot.slane %v370_v46, 4 }
 0x118   :  { %v372_v49 = vadd.f32 %v371_v47, %v370_v46 }
 0x11a   :  { %v373_v50 = vrot.slane %v372_v49, 2 }
 0x11c   :  { %v374_v53 = vadd.f32 %v373_v50, %v372_v49 }
 0x11e   :  { %v375_v54 = vrot.slane %v374_v53, 1 }
 0x120   :  { %v376_v55 = vadd.f32 %v375_v54, %v374_v53 }
 0x122   :  { %v377_v57 = vmul.f32 0.0078125, %v376_v55 }
 0x124   :  { %v841_v58 = vsub.f32 %v811_v51, %v377_v57  ;;  %v844_v59 = vsub.f32 %v809_v48, %v377_v57  ;;  %v847_v61 = vsub.f32 %v813_v52, %v377_v57  ;;  %v850_v62 = vsub.f32 %v817_v56, %v377_v57 }
 0x125   :  { %v857_v2 = vsub.f32 %v823_v60, %v377_v57  ;;  %v861_v48 = vsub.f32 %v599_v1, %v377_v57  ;;  %v867_v5 = vsub.f32 %v602_v9, %v377_v57  ;;  %v872_v8 = vsub.f32 %v605_v17, %v377_v57 }
 0x126   :  { %v394_v63 = vmul.f32 %v841_v58, %v841_v58  ;;  %v395_v0 = vmul.f32 %v844_v59, %v844_v59  ;;  %v396_v51 = vmul.f32 %v847_v61, %v847_v61  ;;  %v397_v52 = vmul.f32 %v850_v62, %v850_v62 }
 0x127   :  { %v398_v6 = vmul.f32 %v857_v2, %v857_v2  ;;  %v399_v1 = vmul.f32 %v861_v48, %v861_v48  ;;  %v877_v12 = vsub.f32 %v608_v16, %v377_v57  ;;  %v400_v9 = vmul.f32 %v867_v5, %v867_v5 }
 0x128   :  { %v410_v56 = vsel %vm339_vm0, %v394_v63, 0.0  ;;  %v411_v3 = vsel %vm339_vm0, %v395_v0, 0.0  ;;  %v413_v60 = vsel %vm339_vm0, %v396_v51, 0.0  ;;  %v415_v10 = vsel %vm339_vm0, %v397_v52, 0.0 }
 0x129   :  { %v412_v4 = vadd.f32 %v411_v3, %v410_v56  ;;  %v417_v13 = vsel %vm339_vm0, %v398_v6, 0.0  ;;  %v882_v15 = vsub.f32 %v611_v19, %v377_v57  ;;  %v401_v17 = vmul.f32 %v872_v8, %v872_v8 }
 0x12a   :  { %v419_v18 = vsel %vm339_vm0, %v399_v1, 0.0  ;;  %v887_v21 = vsub.f32 %v614_v24, %v377_v57  ;;  %v402_v16 = vmul.f32 %v877_v12, %v877_v12  ;;  %v421_v22 = vsel %vm339_vm0, %v400_v9, 0.0 }
 0x12b   :  { %v414_v7 = vadd.f32 %v413_v60, %v412_v4  ;;  %v389_v25 = vsub.f32 %v617_v27, %v377_v57  ;;  %v403_v26 = vmul.f32 %v882_v15, %v882_v15  ;;  %v423_v19 = vsel %vm339_vm0, %v401_v17, 0.0 }
 0x12c   :  { %v390_v29 = vsub.f32 %v620_v31, %v377_v57  ;;  %v404_v30 = vmul.f32 %v887_v21, %v887_v21  ;;  %v425_v24 = vsel %vm339_vm0, %v402_v16, 0.0  ;;  %v391_v33 = vsub.f32 %v623_v34, %v377_v57 }
 0x12d   :  { %v416_v11 = vadd.f32 %v415_v10, %v414_v7  ;;  %v405_v35 = vmul.f32 %v389_v25, %v389_v25  ;;  %v427_v36 = vsel %vm339_vm0, %v403_v26, 0.0  ;;  %v392_v39 = vsub.f32 %v626_v38, %v377_v57  ;;  %v448_v7 = vld [vmem:[%s988_s2] sm:$0x1] }
 0x12e   :  { %v406_v27 = vmul.f32 %v390_v29, %v390_v29  ;;  %v429_v40 = vsel %vm339_vm0, %v404_v30, 0.0  ;;  %v393_v43 = vsub.f32 %v629_v41, %v377_v57  ;;  %v407_v44 = vmul.f32 %v391_v33, %v391_v33  ;;  %v565_v26 = vld [vmem:[%s989_s3] ss:$0 sm:$0xff] }
 0x12f   :  { %v418_v14 = vadd.f32 %v417_v13, %v416_v11  ;;  %v431_v31 = vsel %vm339_vm0, %v405_v35, 0.0  ;;  %v408_v46 = vmul.f32 %v392_v39, %v392_v39  ;;  %v453_v6 = vlaneseq }
 0x130   :  { %v433_v47 = vsel %vm339_vm0, %v406_v27, 0.0  ;;  %v409_v50 = vmul.f32 %v393_v43, %v393_v43  ;;  %v435_v34 = vsel %vm339_vm0, %v407_v44, 0.0 }
 0x131   :  { %v420_v20 = vadd.f32 %v419_v18, %v418_v14  ;;  %v437_v54 = vsel %vm339_vm0, %v408_v46, 0.0  ;;  %v454_v60 = vshrl.u32 %v453_v6, 7 }
 0x132   :  { %v439_v55 = vsel %vm339_vm0, %v409_v50, 0.0 }
 0x133   :  { %v422_v23 = vadd.f32 %v421_v22, %v420_v20  ;;  %v455_v1 = vsub.s32 0, %v454_v60 }
 0x135   :  { %v424_v28 = vadd.f32 %v423_v19, %v422_v23 }
 0x137   :  { %v426_v32 = vadd.f32 %v425_v24, %v424_v28 }
 0x139   :  { %v428_v37 = vadd.f32 %v427_v36, %v426_v32 }
 0x13b   :  { %v430_v42 = vadd.f32 %v429_v40, %v428_v37 }
 0x13d   :  { %v432_v45 = vadd.f32 %v431_v31, %v430_v42 }
 0x13f   :  { %v434_v49 = vadd.f32 %v433_v47, %v432_v45 }
 0x141   :  { %v436_v53 = vadd.f32 %v435_v34, %v434_v49 }
 0x143   :  { %v438_v38 = vadd.f32 %v437_v54, %v436_v53 }
 0x145   :  { %v440_v63 = vadd.f32 %v439_v55, %v438_v38 }
 0x147   :  { %v441_v0 = vrot.slane %v440_v63, 4 }
 0x149   :  { %v442_v41 = vadd.f32 %v441_v0, %v440_v63 }
 0x14b   :  { %v443_v57 = vrot.slane %v442_v41, 2 }
 0x14d   :  { %v444_v51 = vadd.f32 %v443_v57, %v442_v41 }
 0x14f   :  { %v445_v52 = vrot.slane %v444_v51, 1 }
 0x151   :  { %v446_v56 = vadd.f32 %v445_v52, %v444_v51 }
 0x153   :  { %v447_v3 = vmul.f32 0.0078125, %v446_v56 }
 0x155   :  { %v449_v4 = vadd.f32 1e-05, %v447_v3 }
 0x157   :  { %686 = vrsqrt.f32 %v449_v4 }
 0x164   :  { %v687_v10 = vpop.eup %686 }
 0x165   :  { %v451_v11 = vmul.f32 %v687_v10, %v448_v7 }
 0x167   :  { %v456_v9 = vrot.slane %v451_v11, %v455_v1 }
 0x169   :  { %v458_v13 = vmul.f32 %v456_v9, %v841_v58  ;;  %v459_v14 = vmul.f32 %v456_v9, %v844_v59  ;;  %v460_v17 = vmul.f32 %v456_v9, %v847_v61  ;;  %v461_v18 = vmul.f32 %v456_v9, %v850_v62 }
 0x16a   :  { %v462_v20 = vmul.f32 %v456_v9, %v857_v2  ;;  %v463_v16 = vmul.f32 %v456_v9, %v861_v48  ;;  %v464_v22 = vmul.f32 %v456_v9, %v867_v5  ;;  %v465_v23 = vmul.f32 %v456_v9, %v872_v8 }
 0x16b   :  { %v466_v58 = vmul.f32 %v456_v9, %v877_v12  ;;  %v467_v59 = vmul.f32 %v456_v9, %v882_v15  ;;  %v468_v61 = vmul.f32 %v456_v9, %v887_v21  ;;  %v469_v19 = vmul.f32 %v456_v9, %v389_v25 }
 0x16c   :  { %v470_v62 = vmul.f32 %v456_v9, %v390_v29  ;;  %v471_v28 = vmul.f32 %v456_v9, %v391_v33  ;;  %v472_v2 = vmul.f32 %v456_v9, %v392_v39  ;;  %v473_v30 = vmul.f32 %v456_v9, %v393_v43 }
 0x16d   :  { %v481_v48 = vadd.f32 %v565_v26, %v458_v13  ;;  %v482_v24 = vadd.f32 %v565_v26, %v459_v14  ;;  %v483_v5 = vadd.f32 %v565_v26, %v460_v17  ;;  %v484_v32 = vadd.f32 %v565_v26, %v461_v18 }
 0x16e   :  { %v485_v8 = vadd.f32 %v565_v26, %v462_v20  ;;  %v486_v35 = vadd.f32 %v565_v26, %v463_v16  ;;  %v487_v36 = vadd.f32 %v565_v26, %v464_v22  ;;  %v488_v37 = vadd.f32 %v565_v26, %v465_v23 }
 0x16f   :  { %v489_v27 = vadd.f32 %v565_v26, %v466_v58  ;;  %v490_v40 = vadd.f32 %v565_v26, %v467_v59  ;;  %v491_v12 = vadd.f32 %v565_v26, %v468_v61  ;;  %v492_v42 = vadd.f32 %v565_v26, %v469_v19 }
 0x170   :  { %v493_v15 = vadd.f32 %v565_v26, %v470_v62  ;;  %v494_v44 = vadd.f32 %v565_v26, %v471_v28  ;;  %v495_v21 = vadd.f32 %v565_v26, %v472_v2  ;;  %v496_v25 = vadd.f32 %v565_v26, %v473_v30 }
 0x171   :  { %v497_v29 = vmax.f32 %v481_v48, 0.0  ;;  %v498_v33 = vmax.f32 %v482_v24, 0.0  ;;  %v499_v39 = vmax.f32 %v483_v5, 0.0  ;;  %v500_v43 = vmax.f32 %v484_v32, 0.0 }
 0x172   :  { %v501_v31 = vmax.f32 %v485_v8, 0.0  ;;  %v502_v45 = vmax.f32 %v486_v35, 0.0  ;;  %v503_v46 = vmax.f32 %v487_v36, 0.0  ;;  %v504_v47 = vmax.f32 %v488_v37, 0.0 }
 0x173   :  { %v505_v49 = vmax.f32 %v489_v27, 0.0  ;;  %v506_v50 = vmax.f32 %v490_v40, 0.0  ;;  %v507_v34 = vmax.f32 %v491_v12, 0.0  ;;  %v508_v53 = vmax.f32 %v492_v42, 0.0  ;;  %513 = vst.msk [vmem:[%s990_s4] sm:$0xff] %vm339_vm0, %v497_v29  ;;  %514 = vst.msk [vmem:[%s990_s4 + $0x8] sm:$0xff] %vm339_vm0, %v498_v33 }
 0x174   :  { %515 = vst.msk [vmem:[%s990_s4 + $0x10] sm:$0xff] %vm339_vm0, %v499_v39  ;;  %516 = vst.msk [vmem:[%s990_s4 + $0x18] sm:$0xff] %vm339_vm0, %v500_v43  ;;  %v509_v54 = vmax.f32 %v493_v15, 0.0  ;;  %v510_v38 = vmax.f32 %v494_v44, 0.0  ;;  %v511_v55 = vmax.f32 %v495_v21, 0.0  ;;  %v512_v63 = vmax.f32 %v496_v25, 0.0 }
 0x175   :  { %517 = vst.msk [vmem:[%s990_s4 + $0x20] sm:$0xff] %vm339_vm0, %v501_v31  ;;  %518 = vst.msk [vmem:[%s990_s4 + $0x28] sm:$0xff] %vm339_vm0, %v502_v45 }
 0x176   :  { %519 = vst.msk [vmem:[%s990_s4 + $0x30] sm:$0xff] %vm339_vm0, %v503_v46  ;;  %520 = vst.msk [vmem:[%s990_s4 + $0x38] sm:$0xff] %vm339_vm0, %v504_v47 }
 0x177   :  { %521 = vst.msk [vmem:[%s990_s4 + $0x40] sm:$0xff] %vm339_vm0, %v505_v49  ;;  %522 = vst.msk [vmem:[%s990_s4 + $0x48] sm:$0xff] %vm339_vm0, %v506_v50 }
 0x178   :  { %523 = vst.msk [vmem:[%s990_s4 + $0x50] sm:$0xff] %vm339_vm0, %v507_v34  ;;  %524 = vst.msk [vmem:[%s990_s4 + $0x58] sm:$0xff] %vm339_vm0, %v508_v53 }
 0x179   :  { %525 = vst.msk [vmem:[%s990_s4 + $0x60] sm:$0xff] %vm339_vm0, %v509_v54  ;;  %526 = vst.msk [vmem:[%s990_s4 + $0x68] sm:$0xff] %vm339_vm0, %v510_v38 }
 0x17a   :  { %527 = vst.msk [vmem:[%s990_s4 + $0x70] sm:$0xff] %vm339_vm0, %v511_v55  ;;  %528 = vst.msk [vmem:[%s990_s4 + $0x78] sm:$0xff] %vm339_vm0, %v512_v63 }

// kernel: resnet18_forward.21
= control target key start
LH: loop header
LB: loop body
LE: loop exit
PB: predicated region body
PF: predicated region fallthrough
CT: control target
= control target key end

     0   :  { %v691_v36 = vmov 0.0   ;;  %vm692_vm0 = vmmov 0   ;;  %vm479_vm1 = vcmask 523264   ;;  %s859_s1 = inlined_call_operand.vmem [shape: bf16[640,64], index: 1, kind: input, shape index: {}]   ;;  %s860_s0 = inlined_call_operand.vmem [shape: bf16[8,640], index: 0, kind: input, shape index: {}]   ;;  %s861_s2 = inlined_call_operand.vmem [shape: f32[1,64], index: 2, kind: input, shape index: {}]   ;;  %s862_s3 = inlined_call_operand.vmem [shape: f32[1,64], index: 3, kind: input, shape index: {}]   ;;  %s863_s4 = inlined_call_operand.vmem [shape: f32[8,64], index: 4, kind: output, shape index: {}]  }
   0x1   :  { %v644_v0 = vld [vmem:[%s859_s1 + $0x78] sm:$0xff]   ;;  %v648_v4 = vld [vmem:[%s859_s1 + $0x70] sm:$0xff]   ;;  %v652_v8 = vld [vmem:[%s859_s1 + $0x68] sm:$0xff]  }
   0x2   :  { %v645_v1 = vld [vmem:[%s859_s1 + $0xf8] sm:$0xff]   ;;  %569 = vmatprep.subr.bf16.mxu0 %v644_v0  ;;  %v649_v5 = vld [vmem:[%s859_s1 + $0xf0] sm:$0xff]   ;;  %v653_v9 = vld [vmem:[%s859_s1 + $0xe8] sm:$0xff]  }
   0x3   :  { %v646_v2 = vld [vmem:[%s859_s1 + $0x38] sm:$0xff]   ;;  %591 = vmatprep.subr.bf16.mxu1 %v645_v1  ;;  %v650_v6 = vld [vmem:[%s859_s1 + $0x30] sm:$0xff]   ;;  %v654_v10 = vld [vmem:[%s859_s1 + $0x28] sm:$0xff]  }
   0x4   :  { %v647_v3 = vld [vmem:[%s859_s1 + $0xb8] sm:$0xff]   ;;  %570 = vmatpush3.bf16.msra.mxu0 %v646_v2  ;;  %v651_v7 = vld [vmem:[%s859_s1 + $0xb0] sm:$0xff]   ;;  %v655_v11 = vld [vmem:[%s859_s1 + $0xa8] sm:$0xff]  }
   0x5   :  { %592 = vmatpush3.bf16.msra.mxu1 %v647_v3  ;;  %571 = vmatprep.subr.bf16.mxu0 %v648_v4  ;;  %v656_v12 = vld [vmem:[%s859_s1 + $0x60] sm:$0xff]   ;;  %v660_v16 = vld [vmem:[%s859_s1 + $0x58] sm:$0xff]   ;;  %v664_v20 = vld [vmem:[%s859_s1 + $0x50] sm:$0xff]  }
   0x6   :  { %593 = vmatprep.subr.bf16.mxu1 %v649_v5  ;;  %v657_v13 = vld [vmem:[%s859_s1 + $0xe0] sm:$0xff]   ;;  %v661_v17 = vld [vmem:[%s859_s1 + $0xd8] sm:$0xff]   ;;  %v665_v21 = vld [vmem:[%s859_s1 + $0xd0] sm:$0xff]  }
   0x7   :  { %v658_v14 = vld [vmem:[%s859_s1 + $0x20] sm:$0xff]   ;;  %v662_v18 = vld [vmem:[%s859_s1 + $0x18] sm:$0xff]   ;;  %v666_v22 = vld [vmem:[%s859_s1 + $0x10] sm:$0xff]  }
   0x8   :  { %572 = vmatpush3.bf16.msra.mxu0 %v650_v6  ;;  %v659_v15 = vld [vmem:[%s859_s1 + $0xa0] sm:$0xff]   ;;  %v663_v19 = vld [vmem:[%s859_s1 + $0x98] sm:$0xff]   ;;  %v667_v23 = vld [vmem:[%s859_s1 + $0x90] sm:$0xff]  }
   0x9   :  { %594 = vmatpush3.bf16.msra.mxu1 %v651_v7  ;;  %573 = vmatprep.subr.bf16.mxu0 %v652_v8  ;;  %v668_v24 = vld [vmem:[%s859_s1 + $0x48] sm:$0xff]   ;;  %v672_v28 = vld [vmem:[%s859_s1 + $0x40] sm:$0xff]   ;;  %v681_v39 = vld [vmem:[%s859_s1 + $0x138] sm:$0xff]  }
   0xa   :  { %595 = vmatprep.subr.bf16.mxu1 %v653_v9  ;;  %v669_v25 = vld [vmem:[%s859_s1 + $0xc8] sm:$0xff]   ;;  %v673_v29 = vld [vmem:[%s859_s1 + $0xc0] sm:$0xff]   ;;  %v682_v40 = vld [vmem:[%s859_s1 + $0x130] sm:$0xff]  }
   0xb   :  { %v670_v26 = vld [vmem:[%s859_s1 + $0x8] sm:$0xff]   ;;  %v674_v30 = vld [vmem:[%s859_s1] sm:$0xff]   ;;  %v685_v43 = vld [vmem:[%s859_s1 + $0x118] sm:$0xff]  }
   0xc   :  { %574 = vmatpush3.bf16.msra.mxu0 %v654_v10  ;;  %v671_v27 = vld [vmem:[%s859_s1 + $0x88] sm:$0xff]   ;;  %v675_v31 = vld [vmem:[%s859_s1 + $0x80] sm:$0xff]   ;;  %v686_v44 = vld [vmem:[%s859_s1 + $0x110] sm:$0xff]  }
   0xd   :  { %596 = vmatpush3.bf16.msra.mxu1 %v655_v11  ;;  %575 = vmatprep.subr.bf16.mxu0 %v656_v12  ;;  %v18_v32 = vld [vmem:[%s860_s0] sm:$0xff]  ;;  %v19_v35 = vld [vmem:[%s860_s0 + $0x8] sm:$0xff]  ;;  %v678_v47 = vld [vmem:[%s860_s0 + $0x10] ss:$0 sps:$4 sm:$0xff]  }
   0xe   :  { %597 = vmatprep.subr.bf16.mxu1 %v657_v13  ;;  %v523_v33 = vcombine.low %v18_v32, %v18_v32  ;;  %v524_v34 = vcombine.high %v18_v32, %v18_v32  ;;  %v525_v37 = vcombine.low %v19_v35, %v19_v35  ;;  %v526_v38 = vcombine.high %v19_v35, %v19_v35  ;;  %v683_v41 = vld [vmem:[%s859_s1 + $0x128] sm:$0xff]   ;;  %v684_v42 = vld [vmem:[%s859_s1 + $0x120] sm:$0xff]  }
   0xf   :  { %v687_v45 = vld [vmem:[%s859_s1 + $0x108] sm:$0xff]   ;;  %v688_v46 = vld [vmem:[%s859_s1 + $0x100] sm:$0xff]  }
  0x10   :  { %576 = vmatpush3.bf16.msra.mxu0 %v658_v14  ;;  %391 = vmatprep.mubr.bf16.mxu0 %v524_v34 }
  0x11   :  { %598 = vmatpush3.bf16.msra.mxu1 %v659_v15  ;;  %577 = vmatprep.subr.bf16.mxu0 %v660_v16 }
  0x12   :  { %599 = vmatprep.subr.bf16.mxu1 %v661_v17  ;;  %431 = vmatprep.mubr.bf16.mxu1 %v526_v38 }
  0x14   :  { %578 = vmatpush3.bf16.msra.mxu0 %v662_v18 }
  0x15   :  { %600 = vmatpush3.bf16.msra.mxu1 %v663_v19  ;;  %579 = vmatprep.subr.bf16.mxu0 %v664_v20  ;;  %v503_v19 = vlaneseq }
  0x16   :  { %601 = vmatprep.subr.bf16.mxu1 %v665_v21  ;;  %v498_v21 = vld [vmem:[%s861_s2] sm:$0x1] }
  0x17   :  { %v504_v20 = vshrl.u32 %v503_v19, 7 }
  0x18   :  { %580 = vmatpush3.bf16.msra.mxu0 %v666_v22 }
  0x19   :  { %602 = vmatpush3.bf16.msra.mxu1 %v667_v23  ;;  %581 = vmatprep.subr.bf16.mxu0 %v668_v24  ;;  %v505_v22 = vsub.s32 0, %v504_v20 }
  0x1a   :  { %603 = vmatprep.subr.bf16.mxu1 %v669_v25 }
  0x1c   :  { %582 = vmatpush3.bf16.msra.mxu0 %v670_v26  ;;  %v568_v26 = vld [vmem:[%s862_s3] ss:$0 sm:$0xff] }
  0x1d   :  { %604 = vmatpush3.bf16.msra.mxu1 %v671_v27  ;;  %583 = vmatprep.subr.bf16.mxu0 %v672_v28 }
  0x1e   :  { %605 = vmatprep.subr.bf16.mxu1 %v673_v29 }
  0x20   :  { %584 = vmatpush3.bf16.msra.mxu0 %v674_v30 }
  0x21   :  { %606 = vmatpush3.bf16.msra.mxu1 %v675_v31  ;;  %622 = vmatprep.subr.bf16.mxu0 %v691_v36 }
  0x23   :  { %392 = vmatmul.mubr.bf16.vlgmr.msra.gmra.mxu0 %v523_v33 }
  0x24   :  { %432 = vmatmul.mubr.bf16.vlgmr.msra.gmra.mxu1 %v525_v37  ;;  %623 = vmatpush3.bf16.msra.mxu0 %v681_v39 }
  0x25   :  { %624 = vmatprep.subr.bf16.mxu0 %v691_v36  ;;  %638 = vmatprep.mubr.msk.bf16.mxu0 %vm692_vm0, %v691_v36 }
  0x28   :  { %625 = vmatpush3.bf16.msra.mxu0 %v682_v40 }
  0x29   :  { %626 = vmatprep.subr.bf16.mxu0 %v691_v36 }
  0x2c   :  { %627 = vmatpush3.bf16.msra.mxu0 %v683_v41 }
  0x2d   :  { %628 = vmatprep.subr.bf16.mxu0 %v691_v36 }
  0x30   :  { %629 = vmatpush3.bf16.msra.mxu0 %v684_v42 }
  0x31   :  { %630 = vmatprep.subr.bf16.mxu0 %v691_v36 }
  0x34   :  { %631 = vmatpush3.bf16.msra.mxu0 %v685_v43 }
  0x35   :  { %632 = vmatprep.subr.bf16.mxu0 %v691_v36 }
  0x38   :  { %633 = vmatpush3.bf16.msra.mxu0 %v686_v44 }
  0x39   :  { %634 = vmatprep.subr.bf16.mxu0 %v691_v36 }
  0x3c   :  { %635 = vmatpush3.bf16.msra.mxu0 %v687_v45 }
  0x3d   :  { %636 = vmatprep.subr.bf16.mxu0 %v691_v36 }
  0x40   :  { %637 = vmatpush3.bf16.msra.mxu0 %v688_v46 }
  0x43   :  { %639 = vmatmul.mubr.bf16.vlgmr.msra.gmra.mxu0 %v678_v47 }
  0xe3   :  { %v585_v48 = vpop.f32.mrf.mxu0 }
  0xe4   :  { %v607_v49 = vpop.f32.mrf.mxu1 }
  0xe5   :  { %v586_v50 = vpop.f32.mrf.mxu0 }
  0xe6   :  { %v608_v51 = vpop.f32.mrf.mxu1  ;;  %v587_v56 = vadd.f32 %v586_v50, %v585_v48 }
  0xe7   :  { %v588_v52 = vpop.f32.mrf.mxu0  ;;  %v609_v57 = vadd.f32 %v608_v51, %v607_v49 }
  0xe8   :  { %v610_v53 = vpop.f32.mrf.mxu1 }
  0xe9   :  { %v589_v54 = vpop.f32.mrf.mxu0  ;;  %v434_v58 = vadd.f32 %v609_v57, %v587_v56 }
  0xea   :  { %v611_v55 = vpop.f32.mrf.mxu1 }
 0x103   :  { %v473_v59 = vpop.f32.mrf.mxu0 }
 0x104   :  { %v474_v60 = vadd.f32 %v473_v59, %v434_v58 }
 0x105   :  { %v640_v61 = vpop.f32.mrf.mxu0 }
 0x106   :  { %v480_v62 = vsel %vm479_vm1, %v474_v60, 0.0 }
 0x107   :  { %v481_v63 = vrot.slane %v480_v62, 4  ;;  %v476_v0 = vpop.f32.mrf.mxu0 }
 0x109   :  { %v482_v1 = vadd.f32 %v481_v63, %v480_v62  ;;  %v641_v2 = vpop.f32.mrf.mxu0 }
 0x10b   :  { %v483_v3 = vrot.slane %v482_v1, 2 }
 0x10d   :  { %v484_v4 = vadd.f32 %v483_v3, %v482_v1 }
 0x10f   :  { %v485_v5 = vrot.slane %v484_v4, 1 }
 0x111   :  { %v486_v6 = vadd.f32 %v485_v5, %v484_v4 }
 0x113   :  { %v487_v7 = vmul.f32 0.125, %v486_v6 }
 0x115   :  { %v488_v8 = vsub.f32 %v474_v60, %v487_v7 }
 0x117   :  { %v489_v9 = vmul.f32 %v488_v8, %v488_v8 }
 0x119   :  { %v490_v10 = vsel %vm479_vm1, %v489_v9, 0.0 }
 0x11a   :  { %v491_v11 = vrot.slane %v490_v10, 4 }
 0x11c   :  { %v492_v12 = vadd.f32 %v491_v11, %v490_v10 }
 0x11e   :  { %v493_v13 = vrot.slane %v492_v12, 2 }
 0x120   :  { %v494_v14 = vadd.f32 %v493_v13, %v492_v12 }
 0x122   :  { %v495_v15 = vrot.slane %v494_v14, 1 }
 0x124   :  { %v496_v16 = vadd.f32 %v495_v15, %v494_v14 }
 0x126   :  { %v497_v17 = vmul.f32 0.125, %v496_v16 }
 0x128   :  { %v499_v18 = vadd.f32 1e-05, %v497_v17 }
 0x12a   :  { %689 = vrsqrt.f32 %v499_v18 }
 0x137   :  { %v690_v23 = vpop.eup %689 }
 0x138   :  { %v501_v24 = vmul.f32 %v690_v23, %v498_v21 }
 0x13a   :  { %v506_v25 = vrot.slane %v501_v24, %v505_v22 }
 0x13c   :  { %v508_v27 = vmul.f32 %v506_v25, %v488_v8 }
 0x13e   :  { %v516_v28 = vadd.f32 %v568_v26, %v508_v27 }
 0x140   :  { %v517_v29 = vmax.f32 %v516_v28, 0.0 }
 0x142   :  { %518 = vst.msk [vmem:[%s863_s4] sm:$0xff] %vm479_vm1, %v517_v29 }

// kernel: resnet18_forward.24
= control target key start
LH: loop header
LB: loop body
LE: loop exit
PB: predicated region body
PF: predicated region fallthrough
CT: control target
= control target key end

     0   :  { %v696_v36 = vmov 0.0   ;;  %vm697_vm0 = vmmov 0   ;;  %vm482_vm1 = vcmask 523264   ;;  %s872_s1 = inlined_call_operand.vmem [shape: bf16[640,64], index: 1, kind: input, shape index: {}]   ;;  %s873_s0 = inlined_call_operand.vmem [shape: bf16[8,640], index: 0, kind: input, shape index: {}]   ;;  %s874_s2 = inlined_call_operand.vmem [shape: f32[1,64], index: 2, kind: input, shape index: {}]   ;;  %s875_s3 = inlined_call_operand.vmem [shape: f32[1,64], index: 3, kind: input, shape index: {}]   ;;  %s876_s4 = inlined_call_operand.vmem [shape: f32[8,64], index: 4, kind: input, shape index: {}]   ;;  %s877_s5 = inlined_call_operand.vmem [shape: f32[8,64], index: 5, kind: output, shape index: {}]  }
   0x1   :  { %v649_v0 = vld [vmem:[%s872_s1 + $0x78] sm:$0xff]   ;;  %v653_v4 = vld [vmem:[%s872_s1 + $0x70] sm:$0xff]   ;;  %v657_v8 = vld [vmem:[%s872_s1 + $0x68] sm:$0xff]  }
   0x2   :  { %v650_v1 = vld [vmem:[%s872_s1 + $0xf8] sm:$0xff]   ;;  %574 = vmatprep.subr.bf16.mxu0 %v649_v0  ;;  %v654_v5 = vld [vmem:[%s872_s1 + $0xf0] sm:$0xff]   ;;  %v658_v9 = vld [vmem:[%s872_s1 + $0xe8] sm:$0xff]  }
   0x3   :  { %v651_v2 = vld [vmem:[%s872_s1 + $0x38] sm:$0xff]   ;;  %596 = vmatprep.subr.bf16.mxu1 %v650_v1  ;;  %v655_v6 = vld [vmem:[%s872_s1 + $0x30] sm:$0xff]   ;;  %v659_v10 = vld [vmem:[%s872_s1 + $0x28] sm:$0xff]  }
   0x4   :  { %v652_v3 = vld [vmem:[%s872_s1 + $0xb8] sm:$0xff]   ;;  %575 = vmatpush3.bf16.msra.mxu0 %v651_v2  ;;  %v656_v7 = vld [vmem:[%s872_s1 + $0xb0] sm:$0xff]   ;;  %v660_v11 = vld [vmem:[%s872_s1 + $0xa8] sm:$0xff]  }
   0x5   :  { %597 = vmatpush3.bf16.msra.mxu1 %v652_v3  ;;  %576 = vmatprep.subr.bf16.mxu0 %v653_v4  ;;  %v661_v12 = vld [vmem:[%s872_s1 + $0x60] sm:$0xff]   ;;  %v665_v16 = vld [vmem:[%s872_s1 + $0x58] sm:$0xff]   ;;  %v669_v20 = vld [vmem:[%s872_s1 + $0x50] sm:$0xff]  }
   0x6   :  { %598 = vmatprep.subr.bf16.mxu1 %v654_v5  ;;  %v662_v13 = vld [vmem:[%s872_s1 + $0xe0] sm:$0xff]   ;;  %v666_v17 = vld [vmem:[%s872_s1 + $0xd8] sm:$0xff]   ;;  %v670_v21 = vld [vmem:[%s872_s1 + $0xd0] sm:$0xff]  }
   0x7   :  { %v663_v14 = vld [vmem:[%s872_s1 + $0x20] sm:$0xff]   ;;  %v667_v18 = vld [vmem:[%s872_s1 + $0x18] sm:$0xff]   ;;  %v671_v22 = vld [vmem:[%s872_s1 + $0x10] sm:$0xff]  }
   0x8   :  { %577 = vmatpush3.bf16.msra.mxu0 %v655_v6  ;;  %v664_v15 = vld [vmem:[%s872_s1 + $0xa0] sm:$0xff]   ;;  %v668_v19 = vld [vmem:[%s872_s1 + $0x98] sm:$0xff]   ;;  %v672_v23 = vld [vmem:[%s872_s1 + $0x90] sm:$0xff]  }
   0x9   :  { %599 = vmatpush3.bf16.msra.mxu1 %v656_v7  ;;  %578 = vmatprep.subr.bf16.mxu0 %v657_v8  ;;  %v673_v24 = vld [vmem:[%s872_s1 + $0x48] sm:$0xff]   ;;  %v677_v28 = vld [vmem:[%s872_s1 + $0x40] sm:$0xff]   ;;  %v686_v39 = vld [vmem:[%s872_s1 + $0x138] sm:$0xff]  }
   0xa   :  { %600 = vmatprep.subr.bf16.mxu1 %v658_v9  ;;  %v674_v25 = vld [vmem:[%s872_s1 + $0xc8] sm:$0xff]   ;;  %v678_v29 = vld [vmem:[%s872_s1 + $0xc0] sm:$0xff]   ;;  %v687_v40 = vld [vmem:[%s872_s1 + $0x130] sm:$0xff]  }
   0xb   :  { %v675_v26 = vld [vmem:[%s872_s1 + $0x8] sm:$0xff]   ;;  %v679_v30 = vld [vmem:[%s872_s1] sm:$0xff]   ;;  %v690_v43 = vld [vmem:[%s872_s1 + $0x118] sm:$0xff]  }
   0xc   :  { %579 = vmatpush3.bf16.msra.mxu0 %v659_v10  ;;  %v676_v27 = vld [vmem:[%s872_s1 + $0x88] sm:$0xff]   ;;  %v680_v31 = vld [vmem:[%s872_s1 + $0x80] sm:$0xff]   ;;  %v691_v44 = vld [vmem:[%s872_s1 + $0x110] sm:$0xff]  }
   0xd   :  { %601 = vmatpush3.bf16.msra.mxu1 %v660_v11  ;;  %580 = vmatprep.subr.bf16.mxu0 %v661_v12  ;;  %v21_v32 = vld [vmem:[%s873_s0] sm:$0xff]  ;;  %v22_v35 = vld [vmem:[%s873_s0 + $0x8] sm:$0xff]  ;;  %v683_v47 = vld [vmem:[%s873_s0 + $0x10] ss:$0 sps:$4 sm:$0xff]  }
   0xe   :  { %602 = vmatprep.subr.bf16.mxu1 %v662_v13  ;;  %v528_v33 = vcombine.low %v21_v32, %v21_v32  ;;  %v529_v34 = vcombine.high %v21_v32, %v21_v32  ;;  %v530_v37 = vcombine.low %v22_v35, %v22_v35  ;;  %v531_v38 = vcombine.high %v22_v35, %v22_v35  ;;  %v688_v41 = vld [vmem:[%s872_s1 + $0x128] sm:$0xff]   ;;  %v689_v42 = vld [vmem:[%s872_s1 + $0x120] sm:$0xff]  }
   0xf   :  { %v692_v45 = vld [vmem:[%s872_s1 + $0x108] sm:$0xff]   ;;  %v693_v46 = vld [vmem:[%s872_s1 + $0x100] sm:$0xff]  }
  0x10   :  { %581 = vmatpush3.bf16.msra.mxu0 %v663_v14  ;;  %394 = vmatprep.mubr.bf16.mxu0 %v529_v34 }
  0x11   :  { %603 = vmatpush3.bf16.msra.mxu1 %v664_v15  ;;  %582 = vmatprep.subr.bf16.mxu0 %v665_v16 }
  0x12   :  { %604 = vmatprep.subr.bf16.mxu1 %v666_v17  ;;  %434 = vmatprep.mubr.bf16.mxu1 %v531_v38 }
  0x14   :  { %583 = vmatpush3.bf16.msra.mxu0 %v667_v18 }
  0x15   :  { %605 = vmatpush3.bf16.msra.mxu1 %v668_v19  ;;  %584 = vmatprep.subr.bf16.mxu0 %v669_v20  ;;  %v506_v19 = vlaneseq }
  0x16   :  { %606 = vmatprep.subr.bf16.mxu1 %v670_v21  ;;  %v501_v21 = vld [vmem:[%s874_s2] sm:$0x1] }
  0x17   :  { %v507_v20 = vshrl.u32 %v506_v19, 7 }
  0x18   :  { %585 = vmatpush3.bf16.msra.mxu0 %v671_v22 }
  0x19   :  { %607 = vmatpush3.bf16.msra.mxu1 %v672_v23  ;;  %586 = vmatprep.subr.bf16.mxu0 %v673_v24  ;;  %v508_v22 = vsub.s32 0, %v507_v20 }
  0x1a   :  { %608 = vmatprep.subr.bf16.mxu1 %v674_v25 }
  0x1c   :  { %587 = vmatpush3.bf16.msra.mxu0 %v675_v26  ;;  %v573_v26 = vld [vmem:[%s875_s3] ss:$0 sm:$0xff] }
  0x1d   :  { %609 = vmatpush3.bf16.msra.mxu1 %v676_v27  ;;  %588 = vmatprep.subr.bf16.mxu0 %v677_v28  ;;  %v520_v28 = vld [vmem:[%s876_s4] sm:$0xff] }
  0x1e   :  { %610 = vmatprep.subr.bf16.mxu1 %v678_v29 }
  0x20   :  { %589 = vmatpush3.bf16.msra.mxu0 %v679_v30 }
  0x21   :  { %611 = vmatpush3.bf16.msra.mxu1 %v680_v31  ;;  %627 = vmatprep.subr.bf16.mxu0 %v696_v36 }
  0x23   :  { %395 = vmatmul.mubr.bf16.vlgmr.msra.gmra.mxu0 %v528_v33 }
  0x24   :  { %435 = vmatmul.mubr.bf16.vlgmr.msra.gmra.mxu1 %v530_v37  ;;  %628 = vmatpush3.bf16.msra.mxu0 %v686_v39 }
  0x25   :  { %629 = vmatprep.subr.bf16.mxu0 %v696_v36  ;;  %643 = vmatprep.mubr.msk.bf16.mxu0 %vm697_vm0, %v696_v36 }
  0x28   :  { %630 = vmatpush3.bf16.msra.mxu0 %v687_v40 }
  0x29   :  { %631 = vmatprep.subr.bf16.mxu0 %v696_v36 }
  0x2c   :  { %632 = vmatpush3.bf16.msra.mxu0 %v688_v41 }
  0x2d   :  { %633 = vmatprep.subr.bf16.mxu0 %v696_v36 }
  0x30   :  { %634 = vmatpush3.bf16.msra.mxu0 %v689_v42 }
  0x31   :  { %635 = vmatprep.subr.bf16.mxu0 %v696_v36 }
  0x34   :  { %636 = vmatpush3.bf16.msra.mxu0 %v690_v43 }
  0x35   :  { %637 = vmatprep.subr.bf16.mxu0 %v696_v36 }
  0x38   :  { %638 = vmatpush3.bf16.msra.mxu0 %v691_v44 }
  0x39   :  { %639 = vmatprep.subr.bf16.mxu0 %v696_v36 }
  0x3c   :  { %640 = vmatpush3.bf16.msra.mxu0 %v692_v45 }
  0x3d   :  { %641 = vmatprep.subr.bf16.mxu0 %v696_v36 }
  0x40   :  { %642 = vmatpush3.bf16.msra.mxu0 %v693_v46 }
  0x43   :  { %644 = vmatmul.mubr.bf16.vlgmr.msra.gmra.mxu0 %v683_v47 }
  0xe3   :  { %v590_v48 = vpop.f32.mrf.mxu0 }
  0xe4   :  { %v612_v49 = vpop.f32.mrf.mxu1 }
  0xe5   :  { %v591_v50 = vpop.f32.mrf.mxu0 }
  0xe6   :  { %v613_v51 = vpop.f32.mrf.mxu1  ;;  %v592_v56 = vadd.f32 %v591_v50, %v590_v48 }
  0xe7   :  { %v593_v52 = vpop.f32.mrf.mxu0  ;;  %v614_v57 = vadd.f32 %v613_v51, %v612_v49 }
  0xe8   :  { %v615_v53 = vpop.f32.mrf.mxu1 }
  0xe9   :  { %v594_v54 = vpop.f32.mrf.mxu0  ;;  %v437_v58 = vadd.f32 %v614_v57, %v592_v56 }
  0xea   :  { %v616_v55 = vpop.f32.mrf.mxu1 }
 0x103   :  { %v476_v59 = vpop.f32.mrf.mxu0 }
 0x104   :  { %v477_v60 = vadd.f32 %v476_v59, %v437_v58 }
 0x105   :  { %v645_v61 = vpop.f32.mrf.mxu0 }
 0x106   :  { %v483_v62 = vsel %vm482_vm1, %v477_v60, 0.0 }
 0x107   :  { %v484_v63 = vrot.slane %v483_v62, 4  ;;  %v479_v0 = vpop.f32.mrf.mxu0 }
 0x109   :  { %v485_v1 = vadd.f32 %v484_v63, %v483_v62  ;;  %v646_v2 = vpop.f32.mrf.mxu0 }
 0x10b   :  { %v486_v3 = vrot.slane %v485_v1, 2 }
 0x10d   :  { %v487_v4 = vadd.f32 %v486_v3, %v485_v1 }
 0x10f   :  { %v488_v5 = vrot.slane %v487_v4, 1 }
 0x111   :  { %v489_v6 = vadd.f32 %v488_v5, %v487_v4 }
 0x113   :  { %v490_v7 = vmul.f32 0.125, %v489_v6 }
 0x115   :  { %v491_v8 = vsub.f32 %v477_v60, %v490_v7 }
 0x117   :  { %v492_v9 = vmul.f32 %v491_v8, %v491_v8 }
 0x119   :  { %v493_v10 = vsel %vm482_vm1, %v492_v9, 0.0 }
 0x11a   :  { %v494_v11 = vrot.slane %v493_v10, 4 }
 0x11c   :  { %v495_v12 = vadd.f32 %v494_v11, %v493_v10 }
 0x11e   :  { %v496_v13 = vrot.slane %v495_v12, 2 }
 0x120   :  { %v497_v14 = vadd.f32 %v496_v13, %v495_v12 }
 0x122   :  { %v498_v15 = vrot.slane %v497_v14, 1 }
 0x124   :  { %v499_v16 = vadd.f32 %v498_v15, %v497_v14 }
 0x126   :  { %v500_v17 = vmul.f32 0.125, %v499_v16 }
 0x128   :  { %v502_v18 = vadd.f32 1e-05, %v500_v17 }
 0x12a   :  { %694 = vrsqrt.f32 %v502_v18 }
 0x137   :  { %v695_v23 = vpop.eup %694 }
 0x138   :  { %v504_v24 = vmul.f32 %v695_v23, %v501_v21 }
 0x13a   :  { %v509_v25 = vrot.slane %v504_v24, %v508_v22 }
 0x13c   :  { %v511_v27 = vmul.f32 %v509_v25, %v491_v8 }
 0x13e   :  { %v519_v29 = vadd.f32 %v573_v26, %v511_v27 }
 0x140   :  { %v521_v30 = vadd.f32 %v520_v28, %v519_v29 }
 0x142   :  { %v522_v31 = vmax.f32 %v521_v30, 0.0 }
 0x144   :  { %523 = vst.msk [vmem:[%s877_s5] sm:$0xff] %vm482_vm1, %v522_v31 }

// kernel: resnet18_forward.25
= control target key start
LH: loop header
LB: loop body
LE: loop exit
PB: predicated region body
PF: predicated region fallthrough
CT: control target
= control target key end

     0   :  { %v202_v27 = vlaneseq  ;;  %s388_s1 = inlined_call_operand.vmem [shape: bf16[256,128], index: 1, kind: input, shape index: {}]   ;;  %s389_s0 = inlined_call_operand.vmem [shape: bf16[8,256], index: 0, kind: input, shape index: {}]   ;;  %s390_s2 = inlined_call_operand.vmem [shape: f32[1,128], index: 2, kind: input, shape index: {}]   ;;  %s391_s3 = inlined_call_operand.vmem [shape: f32[1,128], index: 3, kind: input, shape index: {}]   ;;  %s392_s4 = inlined_call_operand.vmem [shape: f32[8,128], index: 4, kind: output, shape index: {}]  }
   0x1   :  { %v281_v0 = vld [vmem:[%s388_s1 + $0x78] sm:$0xff]   ;;  %v283_v2 = vld [vmem:[%s388_s1 + $0x70] sm:$0xff]   ;;  %v285_v4 = vld [vmem:[%s388_s1 + $0x68] sm:$0xff]  }
   0x2   :  { %v282_v1 = vld [vmem:[%s388_s1 + $0x38] sm:$0xff]   ;;  %259 = vmatprep.subr.bf16.mxu0 %v281_v0  ;;  %v284_v3 = vld [vmem:[%s388_s1 + $0x30] sm:$0xff]   ;;  %v286_v5 = vld [vmem:[%s388_s1 + $0x28] sm:$0xff]   ;;  %v203_v30 = vshrl.u32 %v202_v27, 7 }
   0x3   :  { %260 = vmatpush3.bf16.msra.mxu0 %v282_v1  ;;  %v287_v6 = vld [vmem:[%s388_s1 + $0x60] sm:$0xff]   ;;  %v289_v8 = vld [vmem:[%s388_s1 + $0x58] sm:$0xff]   ;;  %v291_v10 = vld [vmem:[%s388_s1 + $0x50] sm:$0xff]  }
   0x4   :  { %261 = vmatprep.subr.bf16.mxu0 %v283_v2  ;;  %v288_v7 = vld [vmem:[%s388_s1 + $0x20] sm:$0xff]   ;;  %v290_v9 = vld [vmem:[%s388_s1 + $0x18] sm:$0xff]   ;;  %v292_v13 = vld [vmem:[%s388_s1 + $0x10] sm:$0xff]   ;;  %vm204_vm0 = vcmp.lt.s32.totalorder %v203_v30, 2  ;;  %v221_v45 = vsub.s32 0, %v203_v30 }
   0x5   :  { %v18_v11 = vld [vmem:[%s389_s0] sm:$0xff]  ;;  %v293_v14 = vld [vmem:[%s388_s1 + $0x48] sm:$0xff]  }
   0x6   :  { %v241_v12 = vcombine.high %v18_v11, %v18_v11  ;;  %v294_v15 = vld [vmem:[%s388_s1 + $0x8] sm:$0xff]   ;;  %v295_v16 = vld [vmem:[%s388_s1 + $0x40] sm:$0xff]   ;;  %v240_v18 = vcombine.low %v18_v11, %v18_v11 }
   0x7   :  { %262 = vmatpush3.bf16.msra.mxu0 %v284_v3  ;;  %v296_v17 = vld [vmem:[%s388_s1] sm:$0xff]  }
   0x8   :  { %263 = vmatprep.subr.bf16.mxu0 %v285_v4  ;;  %186 = vmatprep.mubr.bf16.mxu0 %v241_v12  ;;  %v214_v44 = vld [vmem:[%s390_s2] sm:$0x1] }
   0x9   :  { %v258_v49 = vld [vmem:[%s391_s3] ss:$0 sm:$0xff] }
   0xb   :  { %264 = vmatpush3.bf16.msra.mxu0 %v286_v5 }
   0xc   :  { %265 = vmatprep.subr.bf16.mxu0 %v287_v6 }
   0xf   :  { %266 = vmatpush3.bf16.msra.mxu0 %v288_v7 }
  0x10   :  { %267 = vmatprep.subr.bf16.mxu0 %v289_v8 }
  0x13   :  { %268 = vmatpush3.bf16.msra.mxu0 %v290_v9 }
  0x14   :  { %269 = vmatprep.subr.bf16.mxu0 %v291_v10 }
  0x17   :  { %270 = vmatpush3.bf16.msra.mxu0 %v292_v13 }
  0x18   :  { %271 = vmatprep.subr.bf16.mxu0 %v293_v14 }
  0x1b   :  { %272 = vmatpush3.bf16.msra.mxu0 %v294_v15 }
  0x1c   :  { %273 = vmatprep.subr.bf16.mxu0 %v295_v16 }
  0x1f   :  { %274 = vmatpush3.bf16.msra.mxu0 %v296_v17 }
  0x22   :  { %187 = vmatmul.mubr.bf16.vlgmr.msra.gmra.mxu0 %v240_v18 }
  0xe2   :  { %v275_v19 = vpop.f32.mrf.mxu0 }
  0xe4   :  { %v276_v20 = vpop.f32.mrf.mxu0 }
  0xe5   :  { %v277_v21 = vadd.f32 %v276_v20, %v275_v19 }
  0xe6   :  { %v278_v22 = vpop.f32.mrf.mxu0 }
  0xe7   :  { %v194_v23 = vrot.slane %v277_v21, 4 }
  0xe8   :  { %v279_v24 = vpop.f32.mrf.mxu0 }
  0xe9   :  { %v195_v25 = vadd.f32 %v277_v21, %v194_v23 }
  0xeb   :  { %v196_v26 = vrot.slane %v195_v25, 2 }
  0xed   :  { %v197_v28 = vadd.f32 %v196_v26, %v195_v25 }
  0xef   :  { %v198_v29 = vrot.slane %v197_v28, 1 }
  0xf1   :  { %v199_v31 = vadd.f32 %v198_v29, %v197_v28 }
  0xf3   :  { %v200_v32 = vmul.f32 0.5, %v199_v31 }
  0xf5   :  { %v201_v33 = vsub.f32 %v277_v21, %v200_v32 }
  0xf7   :  { %v205_v34 = vsel %vm204_vm0, %v201_v33, 0.0 }
  0xf8   :  { %v206_v35 = vmul.f32 %v205_v34, %v205_v34 }
  0xfa   :  { %v207_v36 = vrot.slane %v206_v35, 4 }
  0xfc   :  { %v208_v37 = vadd.f32 %v207_v36, %v206_v35 }
  0xfe   :  { %v209_v38 = vrot.slane %v208_v37, 2 }
 0x100   :  { %v210_v39 = vadd.f32 %v209_v38, %v208_v37 }
 0x102   :  { %v211_v40 = vrot.slane %v210_v39, 1 }
 0x104   :  { %v212_v41 = vadd.f32 %v211_v40, %v210_v39 }
 0x106   :  { %v213_v42 = vmul.f32 0.5, %v212_v41 }
 0x108   :  { %v215_v43 = vadd.f32 1e-05, %v213_v42 }
 0x10a   :  { %299 = vrsqrt.f32 %v215_v43 }
 0x117   :  { %v300_v46 = vpop.eup %299 }
 0x118   :  { %v217_v47 = vmul.f32 %v300_v46, %v214_v44 }
 0x11a   :  { %v222_v48 = vrot.slane %v217_v47, %v221_v45 }
 0x11c   :  { %v224_v50 = vmul.f32 %v222_v48, %v205_v34 }
 0x11e   :  { %v232_v51 = vadd.f32 %v258_v49, %v224_v50 }
 0x120   :  { %v233_v52 = vmax.f32 %v232_v51, 0.0 }
 0x122   :  { %v234_v53 = vsel %vm204_vm0, %v233_v52, 0.0 }
 0x123   :  { %235 = vst [vmem:[%s392_s4] sm:$0xff] %v234_v53 }

// kernel: resnet18_forward.26
= control target key start
LH: loop header
LB: loop body
LE: loop exit
PB: predicated region body
PF: predicated region fallthrough
CT: control target
= control target key end

     0   :  { %v220_v0 = vmov 0.0   ;;  %vm221_vm0 = vmmov 0   ;;  %v132_v17 = vlaneseq  ;;  %s285_s1 = inlined_call_operand.vmem [shape: bf16[128,128], index: 1, kind: input, shape index: {}]   ;;  %s286_s0 = inlined_call_operand.vmem [shape: f32[8,128], index: 0, kind: input, shape index: {}]   ;;  %s287_s2 = inlined_call_operand.vmem [shape: f32[1,128], index: 2, kind: input, shape index: {}]   ;;  %s288_s3 = inlined_call_operand.vmem [shape: f32[1,128], index: 3, kind: input, shape index: {}]   ;;  %s289_s4 = inlined_call_operand.vmem [shape: f32[8,128], index: 4, kind: output, shape index: {}]  }
   0x1   :  { %188 = vmatprep.subr.bf16.mxu0 %v220_v0  ;;  %v210_v1 = vld [vmem:[%s285_s1 + $0x38] sm:$0xff]   ;;  %204 = vmatprep.mubr.msk.bf16.mxu0 %vm221_vm0, %v220_v0  ;;  %v211_v2 = vld [vmem:[%s285_s1 + $0x30] sm:$0xff]   ;;  %v212_v3 = vld [vmem:[%s285_s1 + $0x28] sm:$0xff]  }
   0x2   :  { %189 = vmatpush3.bf16.msra.mxu0 %v210_v1  ;;  %v213_v4 = vld [vmem:[%s285_s1 + $0x20] sm:$0xff]   ;;  %v214_v5 = vld [vmem:[%s285_s1 + $0x18] sm:$0xff]   ;;  %v215_v6 = vld [vmem:[%s285_s1 + $0x10] sm:$0xff]   ;;  %v133_v21 = vshrl.u32 %v132_v17, 7 }
   0x3   :  { %190 = vmatprep.subr.bf16.mxu0 %v220_v0  ;;  %v216_v7 = vld [vmem:[%s285_s1 + $0x8] sm:$0xff]   ;;  %v217_v8 = vld [vmem:[%s285_s1] sm:$0xff]  }
   0x4   :  { %v18_v9 = vld [vmem:[%s286_s0] sm:$0xff]  ;;  %vm134_vm1 = vcmp.lt.s32.totalorder %v133_v21, 2  ;;  %v151_v36 = vsub.s32 0, %v133_v21 }
   0x5   :  { %v19_v10 = vpack.c.bf16 %v18_v9, %v18_v9  ;;  %v144_v35 = vld [vmem:[%s287_s2] sm:$0x1] }
   0x6   :  { %191 = vmatpush3.bf16.msra.mxu0 %v211_v2  ;;  %v178_v40 = vld [vmem:[%s288_s3] ss:$0 sm:$0xff] }
   0x7   :  { %192 = vmatprep.subr.bf16.mxu0 %v220_v0 }
   0xa   :  { %193 = vmatpush3.bf16.msra.mxu0 %v212_v3 }
   0xb   :  { %194 = vmatprep.subr.bf16.mxu0 %v220_v0 }
   0xe   :  { %195 = vmatpush3.bf16.msra.mxu0 %v213_v4 }
   0xf   :  { %196 = vmatprep.subr.bf16.mxu0 %v220_v0 }
  0x12   :  { %197 = vmatpush3.bf16.msra.mxu0 %v214_v5 }
  0x13   :  { %198 = vmatprep.subr.bf16.mxu0 %v220_v0 }
  0x16   :  { %199 = vmatpush3.bf16.msra.mxu0 %v215_v6 }
  0x17   :  { %200 = vmatprep.subr.bf16.mxu0 %v220_v0 }
  0x1a   :  { %201 = vmatpush3.bf16.msra.mxu0 %v216_v7 }
  0x1b   :  { %202 = vmatprep.subr.bf16.mxu0 %v220_v0 }
  0x1e   :  { %203 = vmatpush3.bf16.msra.mxu0 %v217_v8 }
  0x21   :  { %205 = vmatmul.mubr.bf16.vlgmr.msra.gmra.mxu0 %v19_v10 }
  0xe1   :  { %v118_v11 = vpop.f32.mrf.mxu0 }
  0xe2   :  { %v124_v12 = vrot.slane %v118_v11, 4 }
  0xe3   :  { %v206_v13 = vpop.f32.mrf.mxu0 }
  0xe4   :  { %v125_v14 = vadd.f32 %v124_v12, %v118_v11 }
  0xe5   :  { %v121_v15 = vpop.f32.mrf.mxu0 }
  0xe6   :  { %v126_v16 = vrot.slane %v125_v14, 2 }
  0xe7   :  { %v207_v18 = vpop.f32.mrf.mxu0 }
  0xe8   :  { %v127_v19 = vadd.f32 %v126_v16, %v125_v14 }
  0xea   :  { %v128_v20 = vrot.slane %v127_v19, 1 }
  0xec   :  { %v129_v22 = vadd.f32 %v128_v20, %v127_v19 }
  0xee   :  { %v130_v23 = vmul.f32 0.5, %v129_v22 }
  0xf0   :  { %v131_v24 = vsub.f32 %v118_v11, %v130_v23 }
  0xf2   :  { %v135_v25 = vsel %vm134_vm1, %v131_v24, 0.0 }
  0xf3   :  { %v136_v26 = vmul.f32 %v135_v25, %v135_v25 }
  0xf5   :  { %v137_v27 = vrot.slane %v136_v26, 4 }
  0xf7   :  { %v138_v28 = vadd.f32 %v137_v27, %v136_v26 }
  0xf9   :  { %v139_v29 = vrot.slane %v138_v28, 2 }
  0xfb   :  { %v140_v30 = vadd.f32 %v139_v29, %v138_v28 }
  0xfd   :  { %v141_v31 = vrot.slane %v140_v30, 1 }
  0xff   :  { %v142_v32 = vadd.f32 %v141_v31, %v140_v30 }
 0x101   :  { %v143_v33 = vmul.f32 0.5, %v142_v32 }
 0x103   :  { %v145_v34 = vadd.f32 1e-05, %v143_v33 }
 0x105   :  { %218 = vrsqrt.f32 %v145_v34 }
 0x112   :  { %v219_v37 = vpop.eup %218 }
 0x113   :  { %v147_v38 = vmul.f32 %v219_v37, %v144_v35 }
 0x115   :  { %v152_v39 = vrot.slane %v147_v38, %v151_v36 }
 0x117   :  { %v154_v41 = vmul.f32 %v152_v39, %v135_v25 }
 0x119   :  { %v162_v42 = vadd.f32 %v178_v40, %v154_v41 }
 0x11b   :  { %v163_v43 = vmax.f32 %v162_v42, 0.0 }
 0x11d   :  { %v164_v44 = vsel %vm134_vm1, %v163_v43, 0.0 }
 0x11e   :  { %165 = vst [vmem:[%s289_s4] sm:$0xff] %v164_v44 }

// kernel: resnet18_forward.28
= control target key start
LH: loop header
LB: loop body
LE: loop exit
PB: predicated region body
PF: predicated region fallthrough
CT: control target
= control target key end

     0   :  { %v225_v0 = vmov 0.0   ;;  %vm226_vm0 = vmmov 0   ;;  %v135_v17 = vlaneseq  ;;  %s298_s1 = inlined_call_operand.vmem [shape: bf16[128,128], index: 1, kind: input, shape index: {}]   ;;  %s299_s0 = inlined_call_operand.vmem [shape: f32[8,128], index: 0, kind: input, shape index: {}]   ;;  %s300_s2 = inlined_call_operand.vmem [shape: f32[1,128], index: 2, kind: input, shape index: {}]   ;;  %s301_s3 = inlined_call_operand.vmem [shape: f32[1,128], index: 3, kind: input, shape index: {}]   ;;  %s302_s4 = inlined_call_operand.vmem [shape: f32[8,128], index: 4, kind: input, shape index: {}]   ;;  %s303_s5 = inlined_call_operand.vmem [shape: f32[8,128], index: 5, kind: output, shape index: {}]  }
   0x1   :  { %193 = vmatprep.subr.bf16.mxu0 %v225_v0  ;;  %v215_v1 = vld [vmem:[%s298_s1 + $0x38] sm:$0xff]   ;;  %209 = vmatprep.mubr.msk.bf16.mxu0 %vm226_vm0, %v225_v0  ;;  %v216_v2 = vld [vmem:[%s298_s1 + $0x30] sm:$0xff]   ;;  %v217_v3 = vld [vmem:[%s298_s1 + $0x28] sm:$0xff]  }
   0x2   :  { %194 = vmatpush3.bf16.msra.mxu0 %v215_v1  ;;  %v218_v4 = vld [vmem:[%s298_s1 + $0x20] sm:$0xff]   ;;  %v219_v5 = vld [vmem:[%s298_s1 + $0x18] sm:$0xff]   ;;  %v220_v6 = vld [vmem:[%s298_s1 + $0x10] sm:$0xff]   ;;  %v136_v21 = vshrl.u32 %v135_v17, 7 }
   0x3   :  { %195 = vmatprep.subr.bf16.mxu0 %v225_v0  ;;  %v221_v7 = vld [vmem:[%s298_s1 + $0x8] sm:$0xff]   ;;  %v222_v8 = vld [vmem:[%s298_s1] sm:$0xff]  }
   0x4   :  { %v21_v9 = vld [vmem:[%s299_s0] sm:$0xff]  ;;  %vm137_vm1 = vcmp.lt.s32.totalorder %v136_v21, 2  ;;  %v154_v36 = vsub.s32 0, %v136_v21 }
   0x5   :  { %v22_v10 = vpack.c.bf16 %v21_v9, %v21_v9  ;;  %v147_v35 = vld [vmem:[%s300_s2] sm:$0x1] }
   0x6   :  { %196 = vmatpush3.bf16.msra.mxu0 %v216_v2  ;;  %v183_v40 = vld [vmem:[%s301_s3] ss:$0 sm:$0xff] }
   0x7   :  { %197 = vmatprep.subr.bf16.mxu0 %v225_v0  ;;  %v166_v42 = vld [vmem:[%s302_s4] sm:$0xff] }
   0xa   :  { %198 = vmatpush3.bf16.msra.mxu0 %v217_v3 }
   0xb   :  { %199 = vmatprep.subr.bf16.mxu0 %v225_v0 }
   0xe   :  { %200 = vmatpush3.bf16.msra.mxu0 %v218_v4 }
   0xf   :  { %201 = vmatprep.subr.bf16.mxu0 %v225_v0 }
  0x12   :  { %202 = vmatpush3.bf16.msra.mxu0 %v219_v5 }
  0x13   :  { %203 = vmatprep.subr.bf16.mxu0 %v225_v0 }
  0x16   :  { %204 = vmatpush3.bf16.msra.mxu0 %v220_v6 }
  0x17   :  { %205 = vmatprep.subr.bf16.mxu0 %v225_v0 }
  0x1a   :  { %206 = vmatpush3.bf16.msra.mxu0 %v221_v7 }
  0x1b   :  { %207 = vmatprep.subr.bf16.mxu0 %v225_v0 }
  0x1e   :  { %208 = vmatpush3.bf16.msra.mxu0 %v222_v8 }
  0x21   :  { %210 = vmatmul.mubr.bf16.vlgmr.msra.gmra.mxu0 %v22_v10 }
  0xe1   :  { %v121_v11 = vpop.f32.mrf.mxu0 }
  0xe2   :  { %v127_v12 = vrot.slane %v121_v11, 4 }
  0xe3   :  { %v211_v13 = vpop.f32.mrf.mxu0 }
  0xe4   :  { %v128_v14 = vadd.f32 %v127_v12, %v121_v11 }
  0xe5   :  { %v124_v15 = vpop.f32.mrf.mxu0 }
  0xe6   :  { %v129_v16 = vrot.slane %v128_v14, 2 }
  0xe7   :  { %v212_v18 = vpop.f32.mrf.mxu0 }
  0xe8   :  { %v130_v19 = vadd.f32 %v129_v16, %v128_v14 }
  0xea   :  { %v131_v20 = vrot.slane %v130_v19, 1 }
  0xec   :  { %v132_v22 = vadd.f32 %v131_v20, %v130_v19 }
  0xee   :  { %v133_v23 = vmul.f32 0.5, %v132_v22 }
  0xf0   :  { %v134_v24 = vsub.f32 %v121_v11, %v133_v23 }
  0xf2   :  { %v138_v25 = vsel %vm137_vm1, %v134_v24, 0.0 }
  0xf3   :  { %v139_v26 = vmul.f32 %v138_v25, %v138_v25 }
  0xf5   :  { %v140_v27 = vrot.slane %v139_v26, 4 }
  0xf7   :  { %v141_v28 = vadd.f32 %v140_v27, %v139_v26 }
  0xf9   :  { %v142_v29 = vrot.slane %v141_v28, 2 }
  0xfb   :  { %v143_v30 = vadd.f32 %v142_v29, %v141_v28 }
  0xfd   :  { %v144_v31 = vrot.slane %v143_v30, 1 }
  0xff   :  { %v145_v32 = vadd.f32 %v144_v31, %v143_v30 }
 0x101   :  { %v146_v33 = vmul.f32 0.5, %v145_v32 }
 0x103   :  { %v148_v34 = vadd.f32 1e-05, %v146_v33 }
 0x105   :  { %223 = vrsqrt.f32 %v148_v34 }
 0x112   :  { %v224_v37 = vpop.eup %223 }
 0x113   :  { %v150_v38 = vmul.f32 %v224_v37, %v147_v35 }
 0x115   :  { %v155_v39 = vrot.slane %v150_v38, %v154_v36 }
 0x117   :  { %v157_v41 = vmul.f32 %v155_v39, %v138_v25 }
 0x119   :  { %v165_v43 = vadd.f32 %v183_v40, %v157_v41 }
 0x11b   :  { %v167_v44 = vadd.f32 %v166_v42, %v165_v43 }
 0x11d   :  { %v168_v45 = vmax.f32 %v167_v44, 0.0 }
 0x11f   :  { %v169_v46 = vsel %vm137_vm1, %v168_v45, 0.0 }
 0x120   :  { %170 = vst [vmem:[%s303_s5] sm:$0xff] %v169_v46 }

// kernel: resnet18_forward.29
= control target key start
LH: loop header
LB: loop body
LE: loop exit
PB: predicated region body
PF: predicated region fallthrough
CT: control target
= control target key end

     0   :  { %v301_v1 = vmov 0   ;;  %v173_v27 = vlaneseq  ;;  %v302_v61 = vmov 1966171168   ;;  %s395_s1 = inlined_call_operand.vmem [shape: bf16[128,256], index: 1, kind: input, shape index: {}]   ;;  %s396_s0 = inlined_call_operand.vmem [shape: f32[8,128], index: 0, kind: input, shape index: {}]   ;;  %s397_s2 = inlined_call_operand.vmem [shape: f32[1,256], index: 2, kind: input, shape index: {}]   ;;  %s398_s3 = inlined_call_operand.vmem [shape: f32[1,256], index: 3, kind: input, shape index: {}]   ;;  %s399_s4 = inlined_call_operand.vmem [shape: f32[8,256], index: 4, kind: output, shape index: {}]  }
   0x1   :  { %v273_v0 = vld [vmem:[%s395_s1 + $0x74] ss:$8 sps:$4 sm:$0xff]   ;;  %148 = vmatprep.mubr.bf16.mxu0 %v301_v1  ;;  %v275_v2 = vld [vmem:[%s395_s1 + $0x70] ss:$8 sps:$4 sm:$0xff]   ;;  %v276_v3 = vld [vmem:[%s395_s1 + $0x64] ss:$8 sps:$4 sm:$0xff]   ;;  %v203_v62 = vunpack.c.l.s4 %v302_v61 }
   0x2   :  { %116 = vmatprep.subr.bf16.mxu0 %v273_v0  ;;  %v278_v4 = vld [vmem:[%s395_s1 + $0x60] ss:$8 sps:$4 sm:$0xff]   ;;  %v279_v5 = vld [vmem:[%s395_s1 + $0x54] ss:$8 sps:$4 sm:$0xff]   ;;  %v281_v6 = vld [vmem:[%s395_s1 + $0x50] ss:$8 sps:$4 sm:$0xff]  }
   0x3   :  { %117 = vmatpush1.bf16.msra.mxu0 %v275_v2  ;;  %v282_v7 = vld [vmem:[%s395_s1 + $0x44] ss:$8 sps:$4 sm:$0xff]   ;;  %v284_v8 = vld [vmem:[%s395_s1 + $0x40] ss:$8 sps:$4 sm:$0xff]   ;;  %v285_v9 = vld [vmem:[%s395_s1 + $0x34] ss:$8 sps:$4 sm:$0xff]   ;;  %v204_v63 = vunpack.c.0.s8 %v203_v62 }
   0x4   :  { %118 = vmatprep.subr.bf16.mxu0 %v276_v3  ;;  %v287_v10 = vld [vmem:[%s395_s1 + $0x30] ss:$8 sps:$4 sm:$0xff]   ;;  %v288_v11 = vld [vmem:[%s395_s1 + $0x24] ss:$8 sps:$4 sm:$0xff]   ;;  %v290_v12 = vld [vmem:[%s395_s1 + $0x20] ss:$8 sps:$4 sm:$0xff]  }
   0x5   :  { %v291_v13 = vld [vmem:[%s395_s1 + $0x14] ss:$8 sps:$4 sm:$0xff]   ;;  %v293_v14 = vld [vmem:[%s395_s1 + $0x10] ss:$8 sps:$4 sm:$0xff]   ;;  %v294_v15 = vld [vmem:[%s395_s1 + $0x4] ss:$8 sps:$4 sm:$0xff]  }
   0x6   :  { %v296_v16 = vld [vmem:[%s395_s1] ss:$8 sps:$4 sm:$0xff]   ;;  %v174_v33 = vshrl.u32 %v173_v27, 7 }
   0x7   :  { %119 = vmatpush1.bf16.msra.mxu0 %v278_v4  ;;  %v18_v17 = vld [vmem:[%s396_s0] sm:$0xff] }
   0x8   :  { %120 = vmatprep.subr.bf16.mxu0 %v279_v5  ;;  %v19_v18 = vpack.c.bf16 %v18_v17, %v18_v17  ;;  %vm175_vm0 = vcmp.lt.s32.totalorder %v174_v33, 2  ;;  %v207_v1 = vsub.s32 %v204_v63, %v174_v33  ;;  %v194_v5 = vld [vmem:[%s397_s2] sm:$0x3] }
   0xb   :  { %121 = vmatpush1.bf16.msra.mxu0 %v281_v6 }
   0xc   :  { %122 = vmatprep.subr.bf16.mxu0 %v282_v7  ;;  %v221_v7 = vsub.s32 0, %v174_v33 }
   0xf   :  { %123 = vmatpush1.bf16.msra.mxu0 %v284_v8  ;;  %v225_v8 = vsub.s32 1, %v174_v33 }
  0x10   :  { %124 = vmatprep.subr.bf16.mxu0 %v285_v9  ;;  %v231_v9 = vld [vmem:[%s398_s3] sm:$0x3] }
  0x13   :  { %125 = vmatpush1.bf16.msra.mxu0 %v287_v10 }
  0x14   :  { %126 = vmatprep.subr.bf16.mxu0 %v288_v11 }
  0x17   :  { %127 = vmatpush1.bf16.msra.mxu0 %v290_v12 }
  0x18   :  { %128 = vmatprep.subr.bf16.mxu0 %v291_v13  ;;  %v236_v13 = vrot.slane %v231_v9, %v221_v7 }
  0x1b   :  { %129 = vmatpush1.bf16.msra.mxu0 %v293_v14  ;;  %v240_v14 = vrot.slane %v231_v9, %v225_v8 }
  0x1c   :  { %130 = vmatprep.subr.bf16.mxu0 %v294_v15 }
  0x1f   :  { %131 = vmatpush1.bf16.msra.mxu0 %v296_v16 }
  0x22   :  { %149 = vmatmul.mubr.bf16.vlgmr.msra.gmra.mxu0 %v19_v18 }
  0xe2   :  { %v150_v19 = vpop.f32.mrf.mxu0 }
  0xe3   :  { %v157_v20 = vrot.slane %v150_v19, 4 }
  0xe4   :  { %v152_v21 = vpop.f32.mrf.mxu0 }
  0xe5   :  { %v158_v22 = vadd.f32 %v157_v20, %v150_v19  ;;  %v163_v23 = vrot.slane %v152_v21, 4 }
  0xe6   :  { %v154_v24 = vpop.f32.mrf.mxu0 }
  0xe7   :  { %v159_v25 = vrot.slane %v158_v22, 2  ;;  %v164_v26 = vadd.f32 %v163_v23, %v152_v21 }
  0xe8   :  { %v155_v28 = vpop.f32.mrf.mxu0 }
  0xe9   :  { %v160_v29 = vadd.f32 %v159_v25, %v158_v22  ;;  %v165_v30 = vrot.slane %v164_v26, 2 }
  0xeb   :  { %v161_v31 = vrot.slane %v160_v29, 1  ;;  %v166_v32 = vadd.f32 %v165_v30, %v164_v26 }
  0xed   :  { %v162_v34 = vadd.f32 %v161_v31, %v160_v29  ;;  %v167_v35 = vrot.slane %v166_v32, 1 }
  0xef   :  { %v169_v36 = vmul.f32 0.5, %v162_v34  ;;  %v168_v37 = vadd.f32 %v167_v35, %v166_v32 }
  0xf1   :  { %v171_v38 = vsub.f32 %v150_v19, %v169_v36  ;;  %v170_v39 = vmul.f32 0.5, %v168_v37 }
  0xf3   :  { %v176_v40 = vsel %vm175_vm0, %v171_v38, 0.0  ;;  %v172_v41 = vsub.f32 %v152_v21, %v170_v39 }
  0xf4   :  { %v178_v42 = vmul.f32 %v176_v40, %v176_v40 }
  0xf5   :  { %v177_v43 = vsel %vm175_vm0, %v172_v41, 0.0 }
  0xf6   :  { %v180_v44 = vrot.slane %v178_v42, 4  ;;  %v179_v45 = vmul.f32 %v177_v43, %v177_v43 }
  0xf8   :  { %v181_v46 = vadd.f32 %v180_v44, %v178_v42  ;;  %v186_v47 = vrot.slane %v179_v45, 4 }
  0xfa   :  { %v182_v48 = vrot.slane %v181_v46, 2  ;;  %v187_v49 = vadd.f32 %v186_v47, %v179_v45 }
  0xfc   :  { %v183_v50 = vadd.f32 %v182_v48, %v181_v46  ;;  %v188_v51 = vrot.slane %v187_v49, 2 }
  0xfe   :  { %v184_v52 = vrot.slane %v183_v50, 1  ;;  %v189_v53 = vadd.f32 %v188_v51, %v187_v49 }
 0x100   :  { %v185_v54 = vadd.f32 %v184_v52, %v183_v50  ;;  %v190_v55 = vrot.slane %v189_v53, 1 }
 0x102   :  { %v192_v56 = vmul.f32 0.5, %v185_v54  ;;  %v191_v57 = vadd.f32 %v190_v55, %v189_v53 }
 0x104   :  { %v195_v58 = vadd.f32 1e-05, %v192_v56  ;;  %v193_v59 = vmul.f32 0.5, %v191_v57 }
 0x106   :  { %v196_v60 = vadd.f32 1e-05, %v193_v59  ;;  %297 = vrsqrt.f32 %v195_v58 }
 0x108   :  { %299 = vrsqrt.f32 %v196_v60 }
 0x113   :  { %v298_v0 = vpop.eup %297 }
 0x115   :  { %v300_v2 = vpop.eup %299 }
 0x116   :  { %v201_v3 = vcombine.low %v298_v0, %v300_v2 }
 0x118   :  { %v208_v4 = vrot.slane %v201_v3, %v207_v1 }
 0x11a   :  { %v215_v6 = vrot.slane %v208_v4, %v207_v1 }
 0x11c   :  { %v217_v10 = vmul.f32 %v215_v6, %v194_v5 }
 0x11e   :  { %v222_v11 = vrot.slane %v217_v10, %v221_v7  ;;  %v226_v12 = vrot.slane %v217_v10, %v225_v8 }
 0x120   :  { %v229_v15 = vmul.f32 %v222_v11, %v176_v40  ;;  %v230_v16 = vmul.f32 %v226_v12, %v177_v43 }
 0x122   :  { %v243_v17 = vadd.f32 %v236_v13, %v229_v15  ;;  %v244_v18 = vadd.f32 %v240_v14, %v230_v16 }
 0x124   :  { %v245_v19 = vmax.f32 %v243_v17, 0.0  ;;  %v246_v20 = vmax.f32 %v244_v18, 0.0 }
 0x126   :  { %v247_v21 = vsel %vm175_vm0, %v245_v19, 0.0  ;;  %v248_v22 = vsel %vm175_vm0, %v246_v20, 0.0 }
 0x127   :  { %249 = vst [vmem:[%s399_s4] sm:$0xff] %v247_v21  ;;  %250 = vst [vmem:[%s399_s4 + $0x8] sm:$0xff] %v248_v22 }

// kernel: resnet18_forward.30
= control target key start
LH: loop header
LB: loop body
LE: loop exit
PB: predicated region body
PF: predicated region fallthrough
CT: control target
= control target key end

     0   :  { %v270_v44 = vlaneseq  ;;  %s581_s1 = inlined_call_operand.vmem [shape: bf16[256,256], index: 1, kind: input, shape index: {}]   ;;  %s582_s0 = inlined_call_operand.vmem [shape: f32[8,256], index: 0, kind: input, shape index: {}]   ;;  %s583_s2 = inlined_call_operand.vmem [shape: f32[1,256], index: 2, kind: input, shape index: {}]   ;;  %s584_s3 = inlined_call_operand.vmem [shape: f32[1,256], index: 3, kind: input, shape index: {}]   ;;  %s585_s4 = inlined_call_operand.vmem [shape: f32[8,256], index: 4, kind: output, shape index: {}]  }
   0x1   :  { %v385_v0 = vld [vmem:[%s581_s1 + $0x74] ss:$8 sps:$4 sm:$0xff]   ;;  %v387_v1 = vld [vmem:[%s581_s1 + $0x70] ss:$8 sps:$4 sm:$0xff]   ;;  %v388_v2 = vld [vmem:[%s581_s1 + $0x64] ss:$8 sps:$4 sm:$0xff]  }
   0x2   :  { %213 = vmatprep.subr.bf16.mxu0 %v385_v0  ;;  %v390_v3 = vld [vmem:[%s581_s1 + $0x60] ss:$8 sps:$4 sm:$0xff]   ;;  %v391_v4 = vld [vmem:[%s581_s1 + $0x54] ss:$8 sps:$4 sm:$0xff]   ;;  %v393_v5 = vld [vmem:[%s581_s1 + $0x50] ss:$8 sps:$4 sm:$0xff]  }
   0x3   :  { %214 = vmatpush1.bf16.msra.mxu0 %v387_v1  ;;  %v394_v6 = vld [vmem:[%s581_s1 + $0x44] ss:$8 sps:$4 sm:$0xff]   ;;  %v396_v7 = vld [vmem:[%s581_s1 + $0x40] ss:$8 sps:$4 sm:$0xff]   ;;  %v397_v8 = vld [vmem:[%s581_s1 + $0x34] ss:$8 sps:$4 sm:$0xff]  }
   0x4   :  { %215 = vmatprep.subr.bf16.mxu0 %v388_v2  ;;  %v399_v9 = vld [vmem:[%s581_s1 + $0x30] ss:$8 sps:$4 sm:$0xff]   ;;  %v400_v10 = vld [vmem:[%s581_s1 + $0x24] ss:$8 sps:$4 sm:$0xff]   ;;  %v402_v11 = vld [vmem:[%s581_s1 + $0x20] ss:$8 sps:$4 sm:$0xff]  }
   0x5   :  { %v403_v12 = vld [vmem:[%s581_s1 + $0x14] ss:$8 sps:$4 sm:$0xff]   ;;  %v18_v13 = vld [vmem:[%s582_s0 + $0x8] sm:$0xff]  ;;  %v405_v15 = vld [vmem:[%s581_s1 + $0x10] ss:$8 sps:$4 sm:$0xff]   ;;  %v271_v50 = vshrl.u32 %v270_v44, 7 }
   0x6   :  { %v20_v14 = vpack.c.bf16 %v18_v13, %v18_v13  ;;  %v406_v16 = vld [vmem:[%s581_s1 + $0x4] ss:$8 sps:$4 sm:$0xff]   ;;  %v408_v17 = vld [vmem:[%s581_s1] ss:$8 sps:$4 sm:$0xff]   ;;  %v409_v18 = vld [vmem:[%s581_s1 + $0xf4] ss:$8 sps:$4 sm:$0xff]  }
   0x7   :  { %216 = vmatpush1.bf16.msra.mxu0 %v390_v3  ;;  %v411_v19 = vld [vmem:[%s581_s1 + $0xf0] ss:$8 sps:$4 sm:$0xff]   ;;  %v412_v20 = vld [vmem:[%s581_s1 + $0xe4] ss:$8 sps:$4 sm:$0xff]   ;;  %v414_v21 = vld [vmem:[%s581_s1 + $0xe0] ss:$8 sps:$4 sm:$0xff]  }
   0x8   :  { %217 = vmatprep.subr.bf16.mxu0 %v391_v4  ;;  %245 = vmatprep.mubr.bf16.mxu0 %v20_v14  ;;  %v415_v22 = vld [vmem:[%s581_s1 + $0xd4] ss:$8 sps:$4 sm:$0xff]   ;;  %v417_v23 = vld [vmem:[%s581_s1 + $0xd0] ss:$8 sps:$4 sm:$0xff]   ;;  %v418_v24 = vld [vmem:[%s581_s1 + $0xc4] ss:$8 sps:$4 sm:$0xff]  }
   0x9   :  { %v420_v25 = vld [vmem:[%s581_s1 + $0xc0] ss:$8 sps:$4 sm:$0xff]   ;;  %v421_v26 = vld [vmem:[%s581_s1 + $0xb4] ss:$8 sps:$4 sm:$0xff]   ;;  %v423_v27 = vld [vmem:[%s581_s1 + $0xb0] ss:$8 sps:$4 sm:$0xff]  }
   0xa   :  { %v424_v28 = vld [vmem:[%s581_s1 + $0xa4] ss:$8 sps:$4 sm:$0xff]   ;;  %v426_v29 = vld [vmem:[%s581_s1 + $0xa0] ss:$8 sps:$4 sm:$0xff]   ;;  %v427_v30 = vld [vmem:[%s581_s1 + $0x94] ss:$8 sps:$4 sm:$0xff]  }
   0xb   :  { %218 = vmatpush1.bf16.msra.mxu0 %v393_v5  ;;  %v429_v31 = vld [vmem:[%s581_s1 + $0x90] ss:$8 sps:$4 sm:$0xff]   ;;  %v430_v32 = vld [vmem:[%s581_s1 + $0x84] ss:$8 sps:$4 sm:$0xff]   ;;  %v432_v33 = vld [vmem:[%s581_s1 + $0x80] ss:$8 sps:$4 sm:$0xff]  }
   0xc   :  { %219 = vmatprep.subr.bf16.mxu0 %v394_v6  ;;  %v17_v34 = vld [vmem:[%s582_s0] sm:$0xff]  ;;  %vm272_vm0 = vcmp.lt.s32.totalorder %v271_v50, 2  ;;  %v437_v14 = vmov 1966171168  }
   0xd   :  { %v19_v35 = vpack.c.bf16 %v17_v34, %v17_v34 }
   0xf   :  { %220 = vmatpush1.bf16.msra.mxu0 %v396_v7 }
  0x10   :  { %221 = vmatprep.subr.bf16.mxu0 %v397_v8 }
  0x13   :  { %222 = vmatpush1.bf16.msra.mxu0 %v399_v9 }
  0x14   :  { %223 = vmatprep.subr.bf16.mxu0 %v400_v10 }
  0x17   :  { %224 = vmatpush1.bf16.msra.mxu0 %v402_v11 }
  0x18   :  { %225 = vmatprep.subr.bf16.mxu0 %v403_v12 }
  0x1b   :  { %226 = vmatpush1.bf16.msra.mxu0 %v405_v15  ;;  %v300_v15 = vunpack.c.l.s4 %v437_v14 }
  0x1c   :  { %227 = vmatprep.subr.bf16.mxu0 %v406_v16 }
  0x1d   :  { %v301_v16 = vunpack.c.0.s8 %v300_v15 }
  0x1f   :  { %228 = vmatpush1.bf16.msra.mxu0 %v408_v17 }
  0x20   :  { %229 = vmatprep.subr.bf16.mxu0 %v409_v18  ;;  %v304_v18 = vsub.s32 %v301_v16, %v271_v50 }
  0x23   :  { %230 = vmatpush2.bf16.msra.mxu0 %v411_v19 }
  0x24   :  { %231 = vmatprep.subr.bf16.mxu0 %v412_v20 }
  0x27   :  { %232 = vmatpush2.bf16.msra.mxu0 %v414_v21 }
  0x28   :  { %233 = vmatprep.subr.bf16.mxu0 %v415_v22  ;;  %v291_v22 = vld [vmem:[%s583_s2] sm:$0x3] }
  0x2b   :  { %234 = vmatpush2.bf16.msra.mxu0 %v417_v23 }
  0x2c   :  { %235 = vmatprep.subr.bf16.mxu0 %v418_v24  ;;  %v318_v24 = vsub.s32 0, %v271_v50 }
  0x2f   :  { %236 = vmatpush2.bf16.msra.mxu0 %v420_v25  ;;  %v322_v25 = vsub.s32 1, %v271_v50 }
  0x30   :  { %237 = vmatprep.subr.bf16.mxu0 %v421_v26  ;;  %v328_v26 = vld [vmem:[%s584_s3] sm:$0x3] }
  0x33   :  { %238 = vmatpush2.bf16.msra.mxu0 %v423_v27 }
  0x34   :  { %239 = vmatprep.subr.bf16.mxu0 %v424_v28 }
  0x37   :  { %240 = vmatpush2.bf16.msra.mxu0 %v426_v29 }
  0x38   :  { %241 = vmatprep.subr.bf16.mxu0 %v427_v30  ;;  %v333_v30 = vrot.slane %v328_v26, %v318_v24 }
  0x3b   :  { %242 = vmatpush2.bf16.msra.mxu0 %v429_v31  ;;  %v337_v31 = vrot.slane %v328_v26, %v322_v25 }
  0x3c   :  { %243 = vmatprep.subr.bf16.mxu0 %v430_v32 }
  0x3f   :  { %244 = vmatpush2.bf16.msra.mxu0 %v432_v33 }
  0x42   :  { %246 = vmatmul.mubr.bf16.vlgmr.msra.gmra.mxu0 %v19_v35 }
 0x102   :  { %v247_v36 = vpop.f32.mrf.mxu0 }
 0x103   :  { %v254_v37 = vrot.slane %v247_v36, 4 }
 0x104   :  { %v249_v38 = vpop.f32.mrf.mxu0 }
 0x105   :  { %v255_v39 = vadd.f32 %v254_v37, %v247_v36  ;;  %v260_v40 = vrot.slane %v249_v38, 4 }
 0x106   :  { %v251_v41 = vpop.f32.mrf.mxu0 }
 0x107   :  { %v256_v42 = vrot.slane %v255_v39, 2  ;;  %v261_v43 = vadd.f32 %v260_v40, %v249_v38 }
 0x108   :  { %v252_v45 = vpop.f32.mrf.mxu0 }
 0x109   :  { %v257_v46 = vadd.f32 %v256_v42, %v255_v39  ;;  %v262_v47 = vrot.slane %v261_v43, 2 }
 0x10b   :  { %v258_v48 = vrot.slane %v257_v46, 1  ;;  %v263_v49 = vadd.f32 %v262_v47, %v261_v43 }
 0x10d   :  { %v259_v51 = vadd.f32 %v258_v48, %v257_v46  ;;  %v264_v52 = vrot.slane %v263_v49, 1 }
 0x10f   :  { %v266_v53 = vmul.f32 0.5, %v259_v51  ;;  %v265_v54 = vadd.f32 %v264_v52, %v263_v49 }
 0x111   :  { %v268_v55 = vsub.f32 %v247_v36, %v266_v53  ;;  %v267_v56 = vmul.f32 0.5, %v265_v54 }
 0x113   :  { %v273_v57 = vsel %vm272_vm0, %v268_v55, 0.0  ;;  %v269_v58 = vsub.f32 %v249_v38, %v267_v56 }
 0x114   :  { %v275_v59 = vmul.f32 %v273_v57, %v273_v57 }
 0x115   :  { %v274_v60 = vsel %vm272_vm0, %v269_v58, 0.0 }
 0x116   :  { %v277_v61 = vrot.slane %v275_v59, 4  ;;  %v276_v62 = vmul.f32 %v274_v60, %v274_v60 }
 0x118   :  { %v278_v63 = vadd.f32 %v277_v61, %v275_v59  ;;  %v283_v0 = vrot.slane %v276_v62, 4 }
 0x11a   :  { %v279_v1 = vrot.slane %v278_v63, 2  ;;  %v284_v2 = vadd.f32 %v283_v0, %v276_v62 }
 0x11c   :  { %v280_v3 = vadd.f32 %v279_v1, %v278_v63  ;;  %v285_v4 = vrot.slane %v284_v2, 2 }
 0x11e   :  { %v281_v5 = vrot.slane %v280_v3, 1  ;;  %v286_v6 = vadd.f32 %v285_v4, %v284_v2 }
 0x120   :  { %v282_v7 = vadd.f32 %v281_v5, %v280_v3  ;;  %v287_v8 = vrot.slane %v286_v6, 1 }
 0x122   :  { %v289_v9 = vmul.f32 0.5, %v282_v7  ;;  %v288_v10 = vadd.f32 %v287_v8, %v286_v6 }
 0x124   :  { %v292_v11 = vadd.f32 1e-05, %v289_v9  ;;  %v290_v12 = vmul.f32 0.5, %v288_v10 }
 0x126   :  { %v293_v13 = vadd.f32 1e-05, %v290_v12  ;;  %433 = vrsqrt.f32 %v292_v11 }
 0x128   :  { %435 = vrsqrt.f32 %v293_v13 }
 0x133   :  { %v434_v17 = vpop.eup %433 }
 0x135   :  { %v436_v19 = vpop.eup %435 }
 0x136   :  { %v298_v20 = vcombine.low %v434_v17, %v436_v19 }
 0x138   :  { %v305_v21 = vrot.slane %v298_v20, %v304_v18 }
 0x13a   :  { %v312_v23 = vrot.slane %v305_v21, %v304_v18 }
 0x13c   :  { %v314_v27 = vmul.f32 %v312_v23, %v291_v22 }
 0x13e   :  { %v319_v28 = vrot.slane %v314_v27, %v318_v24  ;;  %v323_v29 = vrot.slane %v314_v27, %v322_v25 }
 0x140   :  { %v326_v32 = vmul.f32 %v319_v28, %v273_v57  ;;  %v327_v33 = vmul.f32 %v323_v29, %v274_v60 }
 0x142   :  { %v340_v34 = vadd.f32 %v333_v30, %v326_v32  ;;  %v341_v35 = vadd.f32 %v337_v31, %v327_v33 }
 0x144   :  { %v342_v36 = vmax.f32 %v340_v34, 0.0  ;;  %v343_v37 = vmax.f32 %v341_v35, 0.0 }
 0x146   :  { %v344_v38 = vsel %vm272_vm0, %v342_v36, 0.0  ;;  %v345_v39 = vsel %vm272_vm0, %v343_v37, 0.0 }
 0x147   :  { %346 = vst [vmem:[%s585_s4] sm:$0xff] %v344_v38  ;;  %347 = vst [vmem:[%s585_s4 + $0x8] sm:$0xff] %v345_v39 }

// kernel: resnet18_forward.32
= control target key start
LH: loop header
LB: loop body
LE: loop exit
PB: predicated region body
PF: predicated region fallthrough
CT: control target
= control target key end

     0   :  { %v273_v44 = vlaneseq  ;;  %s609_s1 = inlined_call_operand.vmem [shape: bf16[256,256], index: 1, kind: input, shape index: {}]   ;;  %s610_s0 = inlined_call_operand.vmem [shape: f32[8,256], index: 0, kind: input, shape index: {}]   ;;  %s611_s2 = inlined_call_operand.vmem [shape: f32[1,256], index: 2, kind: input, shape index: {}]   ;;  %s612_s3 = inlined_call_operand.vmem [shape: f32[1,256], index: 3, kind: input, shape index: {}]   ;;  %s613_s4 = inlined_call_operand.vmem [shape: f32[8,256], index: 4, kind: input, shape index: {}]   ;;  %s614_s5 = inlined_call_operand.vmem [shape: f32[8,256], index: 5, kind: output, shape index: {}]  }
   0x1   :  { %v392_v0 = vld [vmem:[%s609_s1 + $0x74] ss:$8 sps:$4 sm:$0xff]   ;;  %v394_v1 = vld [vmem:[%s609_s1 + $0x70] ss:$8 sps:$4 sm:$0xff]   ;;  %v395_v2 = vld [vmem:[%s609_s1 + $0x64] ss:$8 sps:$4 sm:$0xff]  }
   0x2   :  { %216 = vmatprep.subr.bf16.mxu0 %v392_v0  ;;  %v397_v3 = vld [vmem:[%s609_s1 + $0x60] ss:$8 sps:$4 sm:$0xff]   ;;  %v398_v4 = vld [vmem:[%s609_s1 + $0x54] ss:$8 sps:$4 sm:$0xff]   ;;  %v400_v5 = vld [vmem:[%s609_s1 + $0x50] ss:$8 sps:$4 sm:$0xff]  }
   0x3   :  { %217 = vmatpush1.bf16.msra.mxu0 %v394_v1  ;;  %v401_v6 = vld [vmem:[%s609_s1 + $0x44] ss:$8 sps:$4 sm:$0xff]   ;;  %v403_v7 = vld [vmem:[%s609_s1 + $0x40] ss:$8 sps:$4 sm:$0xff]   ;;  %v404_v8 = vld [vmem:[%s609_s1 + $0x34] ss:$8 sps:$4 sm:$0xff]  }
   0x4   :  { %218 = vmatprep.subr.bf16.mxu0 %v395_v2  ;;  %v406_v9 = vld [vmem:[%s609_s1 + $0x30] ss:$8 sps:$4 sm:$0xff]   ;;  %v407_v10 = vld [vmem:[%s609_s1 + $0x24] ss:$8 sps:$4 sm:$0xff]   ;;  %v409_v11 = vld [vmem:[%s609_s1 + $0x20] ss:$8 sps:$4 sm:$0xff]  }
   0x5   :  { %v410_v12 = vld [vmem:[%s609_s1 + $0x14] ss:$8 sps:$4 sm:$0xff]   ;;  %v21_v13 = vld [vmem:[%s610_s0 + $0x8] sm:$0xff]  ;;  %v412_v15 = vld [vmem:[%s609_s1 + $0x10] ss:$8 sps:$4 sm:$0xff]   ;;  %v577_v50 = vshrl.u32 %v273_v44, 7 }
   0x6   :  { %v23_v14 = vpack.c.bf16 %v21_v13, %v21_v13  ;;  %v413_v16 = vld [vmem:[%s609_s1 + $0x4] ss:$8 sps:$4 sm:$0xff]   ;;  %v415_v17 = vld [vmem:[%s609_s1] ss:$8 sps:$4 sm:$0xff]   ;;  %v416_v18 = vld [vmem:[%s609_s1 + $0xf4] ss:$8 sps:$4 sm:$0xff]  }
   0x7   :  { %219 = vmatpush1.bf16.msra.mxu0 %v397_v3  ;;  %v418_v19 = vld [vmem:[%s609_s1 + $0xf0] ss:$8 sps:$4 sm:$0xff]   ;;  %v419_v20 = vld [vmem:[%s609_s1 + $0xe4] ss:$8 sps:$4 sm:$0xff]   ;;  %v421_v21 = vld [vmem:[%s609_s1 + $0xe0] ss:$8 sps:$4 sm:$0xff]  }
   0x8   :  { %220 = vmatprep.subr.bf16.mxu0 %v398_v4  ;;  %248 = vmatprep.mubr.bf16.mxu0 %v23_v14  ;;  %v422_v22 = vld [vmem:[%s609_s1 + $0xd4] ss:$8 sps:$4 sm:$0xff]   ;;  %v424_v23 = vld [vmem:[%s609_s1 + $0xd0] ss:$8 sps:$4 sm:$0xff]   ;;  %v425_v24 = vld [vmem:[%s609_s1 + $0xc4] ss:$8 sps:$4 sm:$0xff]  }
   0x9   :  { %v427_v25 = vld [vmem:[%s609_s1 + $0xc0] ss:$8 sps:$4 sm:$0xff]   ;;  %v428_v26 = vld [vmem:[%s609_s1 + $0xb4] ss:$8 sps:$4 sm:$0xff]   ;;  %v430_v27 = vld [vmem:[%s609_s1 + $0xb0] ss:$8 sps:$4 sm:$0xff]  }
   0xa   :  { %v431_v28 = vld [vmem:[%s609_s1 + $0xa4] ss:$8 sps:$4 sm:$0xff]   ;;  %v433_v29 = vld [vmem:[%s609_s1 + $0xa0] ss:$8 sps:$4 sm:$0xff]   ;;  %v434_v30 = vld [vmem:[%s609_s1 + $0x94] ss:$8 sps:$4 sm:$0xff]  }
   0xb   :  { %221 = vmatpush1.bf16.msra.mxu0 %v400_v5  ;;  %v436_v31 = vld [vmem:[%s609_s1 + $0x90] ss:$8 sps:$4 sm:$0xff]   ;;  %v437_v32 = vld [vmem:[%s609_s1 + $0x84] ss:$8 sps:$4 sm:$0xff]   ;;  %v439_v33 = vld [vmem:[%s609_s1 + $0x80] ss:$8 sps:$4 sm:$0xff]  }
   0xc   :  { %222 = vmatprep.subr.bf16.mxu0 %v401_v6  ;;  %v20_v34 = vld [vmem:[%s610_s0] sm:$0xff]  ;;  %vm275_vm0 = vcmp.lt.s32.totalorder %v577_v50, 2  ;;  %v444_v14 = vmov 1966171168  }
   0xd   :  { %v22_v35 = vpack.c.bf16 %v20_v34, %v20_v34  ;;  %v345_v34 = vld [vmem:[%s613_s4] sm:$0xff] }
   0xf   :  { %223 = vmatpush1.bf16.msra.mxu0 %v403_v7 }
  0x10   :  { %224 = vmatprep.subr.bf16.mxu0 %v404_v8 }
  0x13   :  { %225 = vmatpush1.bf16.msra.mxu0 %v406_v9 }
  0x14   :  { %226 = vmatprep.subr.bf16.mxu0 %v407_v10 }
  0x17   :  { %227 = vmatpush1.bf16.msra.mxu0 %v409_v11 }
  0x18   :  { %228 = vmatprep.subr.bf16.mxu0 %v410_v12 }
  0x1b   :  { %229 = vmatpush1.bf16.msra.mxu0 %v412_v15  ;;  %v303_v15 = vunpack.c.l.s4 %v444_v14 }
  0x1c   :  { %230 = vmatprep.subr.bf16.mxu0 %v413_v16 }
  0x1d   :  { %v304_v16 = vunpack.c.0.s8 %v303_v15 }
  0x1f   :  { %231 = vmatpush1.bf16.msra.mxu0 %v415_v17 }
  0x20   :  { %232 = vmatprep.subr.bf16.mxu0 %v416_v18  ;;  %v307_v18 = vsub.s32 %v304_v16, %v577_v50 }
  0x23   :  { %233 = vmatpush2.bf16.msra.mxu0 %v418_v19 }
  0x24   :  { %234 = vmatprep.subr.bf16.mxu0 %v419_v20 }
  0x27   :  { %235 = vmatpush2.bf16.msra.mxu0 %v421_v21 }
  0x28   :  { %236 = vmatprep.subr.bf16.mxu0 %v422_v22  ;;  %v294_v22 = vld [vmem:[%s611_s2] sm:$0x3] }
  0x2b   :  { %237 = vmatpush2.bf16.msra.mxu0 %v424_v23 }
  0x2c   :  { %238 = vmatprep.subr.bf16.mxu0 %v425_v24  ;;  %v321_v24 = vsub.s32 0, %v577_v50 }
  0x2f   :  { %239 = vmatpush2.bf16.msra.mxu0 %v427_v25  ;;  %v325_v25 = vsub.s32 1, %v577_v50 }
  0x30   :  { %240 = vmatprep.subr.bf16.mxu0 %v428_v26  ;;  %v331_v26 = vld [vmem:[%s612_s3] sm:$0x3] }
  0x33   :  { %241 = vmatpush2.bf16.msra.mxu0 %v430_v27 }
  0x34   :  { %242 = vmatprep.subr.bf16.mxu0 %v431_v28 }
  0x37   :  { %243 = vmatpush2.bf16.msra.mxu0 %v433_v29 }
  0x38   :  { %244 = vmatprep.subr.bf16.mxu0 %v434_v30  ;;  %v336_v30 = vrot.slane %v331_v26, %v321_v24 }
  0x3b   :  { %245 = vmatpush2.bf16.msra.mxu0 %v436_v31  ;;  %v340_v31 = vrot.slane %v331_v26, %v325_v25 }
  0x3c   :  { %246 = vmatprep.subr.bf16.mxu0 %v437_v32 }
  0x3f   :  { %247 = vmatpush2.bf16.msra.mxu0 %v439_v33 }
  0x42   :  { %249 = vmatmul.mubr.bf16.vlgmr.msra.gmra.mxu0 %v22_v35  ;;  %v346_v35 = vld [vmem:[%s613_s4 + $0x8] sm:$0xff] }
 0x102   :  { %v250_v36 = vpop.f32.mrf.mxu0 }
 0x103   :  { %v257_v37 = vrot.slane %v250_v36, 4 }
 0x104   :  { %v252_v38 = vpop.f32.mrf.mxu0 }
 0x105   :  { %v258_v39 = vadd.f32 %v257_v37, %v250_v36  ;;  %v263_v40 = vrot.slane %v252_v38, 4 }
 0x106   :  { %v254_v41 = vpop.f32.mrf.mxu0 }
 0x107   :  { %v259_v42 = vrot.slane %v258_v39, 2  ;;  %v264_v43 = vadd.f32 %v263_v40, %v252_v38 }
 0x108   :  { %v255_v45 = vpop.f32.mrf.mxu0 }
 0x109   :  { %v260_v46 = vadd.f32 %v259_v42, %v258_v39  ;;  %v265_v47 = vrot.slane %v264_v43, 2 }
 0x10b   :  { %v261_v48 = vrot.slane %v260_v46, 1  ;;  %v266_v49 = vadd.f32 %v265_v47, %v264_v43 }
 0x10d   :  { %v262_v51 = vadd.f32 %v261_v48, %v260_v46  ;;  %v267_v52 = vrot.slane %v266_v49, 1 }
 0x10f   :  { %v269_v53 = vmul.f32 0.5, %v262_v51  ;;  %v268_v54 = vadd.f32 %v267_v52, %v266_v49 }
 0x111   :  { %v271_v55 = vsub.f32 %v250_v36, %v269_v53  ;;  %v270_v56 = vmul.f32 0.5, %v268_v54 }
 0x113   :  { %v276_v57 = vsel %vm275_vm0, %v271_v55, 0.0  ;;  %v272_v58 = vsub.f32 %v252_v38, %v270_v56 }
 0x114   :  { %v278_v59 = vmul.f32 %v276_v57, %v276_v57 }
 0x115   :  { %v277_v60 = vsel %vm275_vm0, %v272_v58, 0.0 }
 0x116   :  { %v280_v61 = vrot.slane %v278_v59, 4  ;;  %v279_v62 = vmul.f32 %v277_v60, %v277_v60 }
 0x118   :  { %v281_v63 = vadd.f32 %v280_v61, %v278_v59  ;;  %v286_v0 = vrot.slane %v279_v62, 4 }
 0x11a   :  { %v282_v1 = vrot.slane %v281_v63, 2  ;;  %v287_v2 = vadd.f32 %v286_v0, %v279_v62 }
 0x11c   :  { %v283_v3 = vadd.f32 %v282_v1, %v281_v63  ;;  %v288_v4 = vrot.slane %v287_v2, 2 }
 0x11e   :  { %v284_v5 = vrot.slane %v283_v3, 1  ;;  %v289_v6 = vadd.f32 %v288_v4, %v287_v2 }
 0x120   :  { %v285_v7 = vadd.f32 %v284_v5, %v283_v3  ;;  %v290_v8 = vrot.slane %v289_v6, 1 }
 0x122   :  { %v292_v9 = vmul.f32 0.5, %v285_v7  ;;  %v291_v10 = vadd.f32 %v290_v8, %v289_v6 }
 0x124   :  { %v295_v11 = vadd.f32 1e-05, %v292_v9  ;;  %v293_v12 = vmul.f32 0.5, %v291_v10 }
 0x126   :  { %v296_v13 = vadd.f32 1e-05, %v293_v12  ;;  %440 = vrsqrt.f32 %v295_v11 }
 0x128   :  { %442 = vrsqrt.f32 %v296_v13 }
 0x133   :  { %v441_v17 = vpop.eup %440 }
 0x135   :  { %v443_v19 = vpop.eup %442 }
 0x136   :  { %v301_v20 = vcombine.low %v441_v17, %v443_v19 }
 0x138   :  { %v308_v21 = vrot.slane %v301_v20, %v307_v18 }
 0x13a   :  { %v315_v23 = vrot.slane %v308_v21, %v307_v18 }
 0x13c   :  { %v317_v27 = vmul.f32 %v315_v23, %v294_v22 }
 0x13e   :  { %v322_v28 = vrot.slane %v317_v27, %v321_v24  ;;  %v326_v29 = vrot.slane %v317_v27, %v325_v25 }
 0x140   :  { %v329_v32 = vmul.f32 %v322_v28, %v276_v57  ;;  %v330_v33 = vmul.f32 %v326_v29, %v277_v60 }
 0x142   :  { %v343_v36 = vadd.f32 %v336_v30, %v329_v32  ;;  %v344_v37 = vadd.f32 %v340_v31, %v330_v33 }
 0x144   :  { %v347_v38 = vadd.f32 %v345_v34, %v343_v36  ;;  %v348_v39 = vadd.f32 %v346_v35, %v344_v37 }
 0x146   :  { %v349_v40 = vmax.f32 %v347_v38, 0.0  ;;  %v350_v41 = vmax.f32 %v348_v39, 0.0 }
 0x148   :  { %v351_v42 = vsel %vm275_vm0, %v349_v40, 0.0  ;;  %v352_v43 = vsel %vm275_vm0, %v350_v41, 0.0 }
 0x149   :  { %353 = vst [vmem:[%s614_s5] sm:$0xff] %v351_v42  ;;  %354 = vst [vmem:[%s614_s5 + $0x8] sm:$0xff] %v352_v43 }

// kernel: resnet18_forward.33
= control target key start
LH: loop header
LB: loop body
LE: loop exit
PB: predicated region body
PF: predicated region fallthrough
CT: control target
= control target key end

     0   :  { %s1119_s1 = inlined_call_operand.vmem [shape: bf16[256,512], index: 1, kind: input, shape index: {}]   ;;  %s1120_s0 = inlined_call_operand.vmem [shape: f32[8,256], index: 0, kind: input, shape index: {}]   ;;  %s1121_s2 = inlined_call_operand.vmem [shape: f32[1,512], index: 2, kind: input, shape index: {}]   ;;  %s1122_s3 = inlined_call_operand.vmem [shape: f32[1,512], index: 3, kind: input, shape index: {}]   ;;  %s1123_s4 = inlined_call_operand.vmem [shape: f32[8,512], index: 4, kind: output, shape index: {}]  }
   0x1   :  { %v729_v0 = vld [vmem:[%s1119_s1 + $0xe4] ss:$16 sps:$4 sm:$0xff]   ;;  %v731_v1 = vld [vmem:[%s1119_s1 + $0xec] ss:$16 sps:$4 sm:$0xff]   ;;  %v733_v2 = vld [vmem:[%s1119_s1 + $0xe0] ss:$16 sps:$4 sm:$0xff]  }
   0x2   :  { %405 = vmatprep.subr.bf16.mxu0 %v729_v0  ;;  %v734_v3 = vld [vmem:[%s1119_s1 + $0xe8] ss:$16 sps:$4 sm:$0xff]   ;;  %446 = vmatprep.subr.bf16.mxu1 %v731_v1  ;;  %v735_v4 = vld [vmem:[%s1119_s1 + $0xc4] ss:$16 sps:$4 sm:$0xff]   ;;  %v737_v5 = vld [vmem:[%s1119_s1 + $0xcc] ss:$16 sps:$4 sm:$0xff]  }
   0x3   :  { %406 = vmatpush1.bf16.msra.mxu0 %v733_v2  ;;  %447 = vmatpush1.bf16.msra.mxu1 %v734_v3  ;;  %v739_v6 = vld [vmem:[%s1119_s1 + $0xc0] ss:$16 sps:$4 sm:$0xff]   ;;  %v740_v7 = vld [vmem:[%s1119_s1 + $0xc8] ss:$16 sps:$4 sm:$0xff]   ;;  %v741_v8 = vld [vmem:[%s1119_s1 + $0xa4] ss:$16 sps:$4 sm:$0xff]  }
   0x4   :  { %407 = vmatprep.subr.bf16.mxu0 %v735_v4  ;;  %448 = vmatprep.subr.bf16.mxu1 %v737_v5  ;;  %v743_v9 = vld [vmem:[%s1119_s1 + $0xac] ss:$16 sps:$4 sm:$0xff]   ;;  %v745_v10 = vld [vmem:[%s1119_s1 + $0xa0] ss:$16 sps:$4 sm:$0xff]   ;;  %v746_v11 = vld [vmem:[%s1119_s1 + $0xa8] ss:$16 sps:$4 sm:$0xff]  }
   0x5   :  { %v747_v12 = vld [vmem:[%s1119_s1 + $0x84] ss:$16 sps:$4 sm:$0xff]   ;;  %v749_v13 = vld [vmem:[%s1119_s1 + $0x8c] ss:$16 sps:$4 sm:$0xff]   ;;  %v751_v14 = vld [vmem:[%s1119_s1 + $0x80] ss:$16 sps:$4 sm:$0xff]  }
   0x6   :  { %v752_v15 = vld [vmem:[%s1119_s1 + $0x88] ss:$16 sps:$4 sm:$0xff]   ;;  %v753_v16 = vld [vmem:[%s1119_s1 + $0x64] ss:$16 sps:$4 sm:$0xff]   ;;  %v755_v17 = vld [vmem:[%s1119_s1 + $0x6c] ss:$16 sps:$4 sm:$0xff]  }
   0x7   :  { %408 = vmatpush1.bf16.msra.mxu0 %v739_v6  ;;  %449 = vmatpush1.bf16.msra.mxu1 %v740_v7  ;;  %v757_v18 = vld [vmem:[%s1119_s1 + $0x60] ss:$16 sps:$4 sm:$0xff]   ;;  %v758_v19 = vld [vmem:[%s1119_s1 + $0x68] ss:$16 sps:$4 sm:$0xff]   ;;  %v759_v20 = vld [vmem:[%s1119_s1 + $0x44] ss:$16 sps:$4 sm:$0xff]  }
   0x8   :  { %409 = vmatprep.subr.bf16.mxu0 %v741_v8  ;;  %450 = vmatprep.subr.bf16.mxu1 %v743_v9  ;;  %v761_v21 = vld [vmem:[%s1119_s1 + $0x4c] ss:$16 sps:$4 sm:$0xff]   ;;  %v763_v22 = vld [vmem:[%s1119_s1 + $0x40] ss:$16 sps:$4 sm:$0xff]   ;;  %v764_v23 = vld [vmem:[%s1119_s1 + $0x48] ss:$16 sps:$4 sm:$0xff]  }
   0x9   :  { %v765_v24 = vld [vmem:[%s1119_s1 + $0x24] ss:$16 sps:$4 sm:$0xff]   ;;  %v767_v25 = vld [vmem:[%s1119_s1 + $0x2c] ss:$16 sps:$4 sm:$0xff]   ;;  %v769_v26 = vld [vmem:[%s1119_s1 + $0x20] ss:$16 sps:$4 sm:$0xff]  }
   0xa   :  { %v770_v27 = vld [vmem:[%s1119_s1 + $0x28] ss:$16 sps:$4 sm:$0xff]   ;;  %v771_v28 = vld [vmem:[%s1119_s1 + $0x4] ss:$16 sps:$4 sm:$0xff]   ;;  %v773_v29 = vld [vmem:[%s1119_s1 + $0xc] ss:$16 sps:$4 sm:$0xff]  }
   0xb   :  { %410 = vmatpush1.bf16.msra.mxu0 %v745_v10  ;;  %451 = vmatpush1.bf16.msra.mxu1 %v746_v11  ;;  %v775_v30 = vld [vmem:[%s1119_s1] ss:$16 sps:$4 sm:$0xff]   ;;  %v776_v31 = vld [vmem:[%s1119_s1 + $0x8] ss:$16 sps:$4 sm:$0xff]   ;;  %v777_v32 = vld [vmem:[%s1119_s1 + $0x1e4] ss:$16 sps:$4 sm:$0xff]  }
   0xc   :  { %411 = vmatprep.subr.bf16.mxu0 %v747_v12  ;;  %452 = vmatprep.subr.bf16.mxu1 %v749_v13  ;;  %v779_v33 = vld [vmem:[%s1119_s1 + $0x1ec] ss:$16 sps:$4 sm:$0xff]   ;;  %v781_v34 = vld [vmem:[%s1119_s1 + $0x1e0] ss:$16 sps:$4 sm:$0xff]   ;;  %v782_v35 = vld [vmem:[%s1119_s1 + $0x1e8] ss:$16 sps:$4 sm:$0xff]  }
   0xd   :  { %v783_v36 = vld [vmem:[%s1119_s1 + $0x1c4] ss:$16 sps:$4 sm:$0xff]   ;;  %v785_v37 = vld [vmem:[%s1119_s1 + $0x1cc] ss:$16 sps:$4 sm:$0xff]   ;;  %v787_v38 = vld [vmem:[%s1119_s1 + $0x1c0] ss:$16 sps:$4 sm:$0xff]  }
   0xe   :  { %v788_v39 = vld [vmem:[%s1119_s1 + $0x1c8] ss:$16 sps:$4 sm:$0xff]   ;;  %v789_v40 = vld [vmem:[%s1119_s1 + $0x1a4] ss:$16 sps:$4 sm:$0xff]   ;;  %v791_v41 = vld [vmem:[%s1119_s1 + $0x1ac] ss:$16 sps:$4 sm:$0xff]  }
   0xf   :  { %412 = vmatpush1.bf16.msra.mxu0 %v751_v14  ;;  %453 = vmatpush1.bf16.msra.mxu1 %v752_v15  ;;  %v793_v42 = vld [vmem:[%s1119_s1 + $0x1a0] ss:$16 sps:$4 sm:$0xff]   ;;  %v794_v43 = vld [vmem:[%s1119_s1 + $0x1a8] ss:$16 sps:$4 sm:$0xff]   ;;  %v795_v44 = vld [vmem:[%s1119_s1 + $0x184] ss:$16 sps:$4 sm:$0xff]  }
  0x10   :  { %413 = vmatprep.subr.bf16.mxu0 %v753_v16  ;;  %454 = vmatprep.subr.bf16.mxu1 %v755_v17  ;;  %v797_v45 = vld [vmem:[%s1119_s1 + $0x18c] ss:$16 sps:$4 sm:$0xff]   ;;  %v799_v47 = vld [vmem:[%s1119_s1 + $0x180] ss:$16 sps:$4 sm:$0xff]   ;;  %v800_v48 = vld [vmem:[%s1119_s1 + $0x188] ss:$16 sps:$4 sm:$0xff]  }
  0x11   :  { %v18_v46 = vld [vmem:[%s1120_s0 + $0x8] sm:$0xff]  ;;  %v801_v50 = vld [vmem:[%s1119_s1 + $0x164] ss:$16 sps:$4 sm:$0xff]   ;;  %v805_v52 = vld [vmem:[%s1119_s1 + $0x160] ss:$16 sps:$4 sm:$0xff]  }
  0x12   :  { %v20_v49 = vpack.c.bf16 %v18_v46, %v18_v46  ;;  %v803_v51 = vld [vmem:[%s1119_s1 + $0x16c] ss:$16 sps:$4 sm:$0xff]   ;;  %v806_v53 = vld [vmem:[%s1119_s1 + $0x168] ss:$16 sps:$4 sm:$0xff]   ;;  %v807_v54 = vld [vmem:[%s1119_s1 + $0x144] ss:$16 sps:$4 sm:$0xff]  }
  0x13   :  { %414 = vmatpush1.bf16.msra.mxu0 %v757_v18  ;;  %455 = vmatpush1.bf16.msra.mxu1 %v758_v19  ;;  %v809_v55 = vld [vmem:[%s1119_s1 + $0x14c] ss:$16 sps:$4 sm:$0xff]   ;;  %v811_v56 = vld [vmem:[%s1119_s1 + $0x140] ss:$16 sps:$4 sm:$0xff]   ;;  %v812_v57 = vld [vmem:[%s1119_s1 + $0x148] ss:$16 sps:$4 sm:$0xff]  }
  0x14   :  { %415 = vmatprep.subr.bf16.mxu0 %v759_v20  ;;  %456 = vmatprep.subr.bf16.mxu1 %v761_v21  ;;  %v813_v58 = vld [vmem:[%s1119_s1 + $0x124] ss:$16 sps:$4 sm:$0xff]   ;;  %v815_v59 = vld [vmem:[%s1119_s1 + $0x12c] ss:$16 sps:$4 sm:$0xff]   ;;  %v817_v60 = vld [vmem:[%s1119_s1 + $0x120] ss:$16 sps:$4 sm:$0xff]   ;;  %v519_v20 = vlaneseq }
  0x15   :  { %437 = vmatprep.mubr.bf16.mxu0 %v20_v49  ;;  %478 = vmatprep.mubr.bf16.mxu1 %v20_v49  ;;  %v818_v61 = vld [vmem:[%s1119_s1 + $0x128] ss:$16 sps:$4 sm:$0xff]   ;;  %v819_v62 = vld [vmem:[%s1119_s1 + $0x104] ss:$16 sps:$4 sm:$0xff]   ;;  %v821_v63 = vld [vmem:[%s1119_s1 + $0x10c] ss:$16 sps:$4 sm:$0xff]  }
  0x16   :  { %v823_v0 = vld [vmem:[%s1119_s1 + $0x100] ss:$16 sps:$4 sm:$0xff]   ;;  %v824_v1 = vld [vmem:[%s1119_s1 + $0x108] ss:$16 sps:$4 sm:$0xff]  }
  0x17   :  { %416 = vmatpush1.bf16.msra.mxu0 %v763_v22  ;;  %457 = vmatpush1.bf16.msra.mxu1 %v764_v23  ;;  %v17_v2 = vld [vmem:[%s1120_s0] sm:$0xff] }
  0x18   :  { %417 = vmatprep.subr.bf16.mxu0 %v765_v24  ;;  %458 = vmatprep.subr.bf16.mxu1 %v767_v25  ;;  %v19_v3 = vpack.c.bf16 %v17_v2, %v17_v2 }
  0x1b   :  { %418 = vmatpush1.bf16.msra.mxu0 %v769_v26  ;;  %459 = vmatpush1.bf16.msra.mxu1 %v770_v27 }
  0x1c   :  { %419 = vmatprep.subr.bf16.mxu0 %v771_v28  ;;  %460 = vmatprep.subr.bf16.mxu1 %v773_v29 }
  0x1f   :  { %420 = vmatpush1.bf16.msra.mxu0 %v775_v30  ;;  %461 = vmatpush1.bf16.msra.mxu1 %v776_v31  ;;  %v1057_v31 = vshrl.u32 %v519_v20, 7 }
  0x20   :  { %421 = vmatprep.subr.bf16.mxu0 %v777_v32  ;;  %462 = vmatprep.subr.bf16.mxu1 %v779_v33 }
  0x21   :  { %vm521_vm0 = vcmp.lt.s32.totalorder %v1057_v31, 2 }
  0x23   :  { %422 = vmatpush2.bf16.msra.mxu0 %v781_v34  ;;  %463 = vmatpush2.bf16.msra.mxu1 %v782_v35 }
  0x24   :  { %423 = vmatprep.subr.bf16.mxu0 %v783_v36  ;;  %464 = vmatprep.subr.bf16.mxu1 %v785_v37 }
  0x27   :  { %424 = vmatpush2.bf16.msra.mxu0 %v787_v38  ;;  %465 = vmatpush2.bf16.msra.mxu1 %v788_v39 }
  0x28   :  { %425 = vmatprep.subr.bf16.mxu0 %v789_v40  ;;  %466 = vmatprep.subr.bf16.mxu1 %v791_v41 }
  0x2b   :  { %426 = vmatpush2.bf16.msra.mxu0 %v793_v42  ;;  %467 = vmatpush2.bf16.msra.mxu1 %v794_v43 }
  0x2c   :  { %427 = vmatprep.subr.bf16.mxu0 %v795_v44  ;;  %468 = vmatprep.subr.bf16.mxu1 %v797_v45 }
  0x2f   :  { %428 = vmatpush2.bf16.msra.mxu0 %v799_v47  ;;  %469 = vmatpush2.bf16.msra.mxu1 %v800_v48 }
  0x30   :  { %429 = vmatprep.subr.bf16.mxu0 %v801_v50  ;;  %470 = vmatprep.subr.bf16.mxu1 %v803_v51 }
  0x33   :  { %430 = vmatpush2.bf16.msra.mxu0 %v805_v52  ;;  %471 = vmatpush2.bf16.msra.mxu1 %v806_v53 }
  0x34   :  { %431 = vmatprep.subr.bf16.mxu0 %v807_v54  ;;  %472 = vmatprep.subr.bf16.mxu1 %v809_v55 }
  0x37   :  { %432 = vmatpush2.bf16.msra.mxu0 %v811_v56  ;;  %473 = vmatpush2.bf16.msra.mxu1 %v812_v57 }
  0x38   :  { %433 = vmatprep.subr.bf16.mxu0 %v813_v58  ;;  %474 = vmatprep.subr.bf16.mxu1 %v815_v59 }
  0x3b   :  { %434 = vmatpush2.bf16.msra.mxu0 %v817_v60  ;;  %475 = vmatpush2.bf16.msra.mxu1 %v818_v61 }
  0x3c   :  { %435 = vmatprep.subr.bf16.mxu0 %v819_v62  ;;  %476 = vmatprep.subr.bf16.mxu1 %v821_v63 }
  0x3f   :  { %436 = vmatpush2.bf16.msra.mxu0 %v823_v0  ;;  %477 = vmatpush2.bf16.msra.mxu1 %v824_v1 }
  0x42   :  { %438 = vmatmul.mubr.bf16.vlgmr.msra.gmra.mxu0 %v19_v3  ;;  %479 = vmatmul.mubr.bf16.vlgmr.msra.gmra.mxu1 %v19_v3 }
 0x102   :  { %v439_v4 = vpop.f32.mrf.mxu0  ;;  %v480_v5 = vpop.f32.mrf.mxu1 }
 0x103   :  { %v487_v6 = vrot.slane %v439_v4, 4  ;;  %v499_v7 = vrot.slane %v480_v5, 4 }
 0x104   :  { %v441_v8 = vpop.f32.mrf.mxu0  ;;  %v482_v9 = vpop.f32.mrf.mxu1 }
 0x105   :  { %v488_v10 = vadd.f32 %v487_v6, %v439_v4  ;;  %v500_v11 = vadd.f32 %v499_v7, %v480_v5  ;;  %v493_v12 = vrot.slane %v441_v8, 4  ;;  %v505_v13 = vrot.slane %v482_v9, 4 }
 0x106   :  { %v443_v14 = vpop.f32.mrf.mxu0  ;;  %v484_v15 = vpop.f32.mrf.mxu1 }
 0x107   :  { %v489_v16 = vrot.slane %v488_v10, 2  ;;  %v501_v17 = vrot.slane %v500_v11, 2  ;;  %v494_v18 = vadd.f32 %v493_v12, %v441_v8  ;;  %v506_v19 = vadd.f32 %v505_v13, %v482_v9 }
 0x108   :  { %v444_v21 = vpop.f32.mrf.mxu0  ;;  %v485_v22 = vpop.f32.mrf.mxu1 }
 0x109   :  { %v490_v23 = vadd.f32 %v489_v16, %v488_v10  ;;  %v502_v24 = vadd.f32 %v501_v17, %v500_v11  ;;  %v495_v25 = vrot.slane %v494_v18, 2  ;;  %v507_v26 = vrot.slane %v506_v19, 2 }
 0x10a   :  { %v833_v22 = vmov 1966171168  }
 0x10b   :  { %v491_v27 = vrot.slane %v490_v23, 1  ;;  %v503_v28 = vrot.slane %v502_v24, 1  ;;  %v496_v29 = vadd.f32 %v495_v25, %v494_v18  ;;  %v508_v30 = vadd.f32 %v507_v26, %v506_v19 }
 0x10d   :  { %v492_v32 = vadd.f32 %v491_v27, %v490_v23  ;;  %v504_v33 = vadd.f32 %v503_v28, %v502_v24  ;;  %v497_v34 = vrot.slane %v496_v29, 1  ;;  %v509_v35 = vrot.slane %v508_v30, 1 }
 0x10e   :  { %v574_v23 = vunpack.c.l.s4 %v833_v22 }
 0x10f   :  { %v511_v36 = vmul.f32 0.5, %v492_v32  ;;  %v513_v37 = vmul.f32 0.5, %v504_v33  ;;  %v498_v38 = vadd.f32 %v497_v34, %v496_v29  ;;  %v510_v39 = vadd.f32 %v509_v35, %v508_v30 }
 0x110   :  { %v575_v24 = vunpack.c.0.s8 %v574_v23 }
 0x111   :  { %v515_v40 = vsub.f32 %v439_v4, %v511_v36  ;;  %v517_v41 = vsub.f32 %v480_v5, %v513_v37  ;;  %v512_v42 = vmul.f32 0.5, %v498_v38  ;;  %v514_v43 = vmul.f32 0.5, %v510_v39  ;;  %v558_v36 = vld [vmem:[%s1121_s2] sm:$0xf] }
 0x112   :  { %v578_v27 = vsub.s32 %v575_v24, %v1057_v31  ;;  %v600_v37 = vsub.s32 0, %v1057_v31  ;;  %v604_v39 = vsub.s32 1, %v1057_v31 }
 0x113   :  { %v1062_v44 = vsel %vm521_vm0, %v515_v40, 0.0  ;;  %v1066_v45 = vsel %vm521_vm0, %v517_v41, 0.0  ;;  %v516_v46 = vsub.f32 %v441_v8, %v512_v42  ;;  %v518_v47 = vsub.f32 %v482_v9, %v514_v43  ;;  %v622_v42 = vld [vmem:[%s1122_s3] sm:$0xf] }
 0x114   :  { %v526_v48 = vmul.f32 %v1062_v44, %v1062_v44  ;;  %v528_v49 = vmul.f32 %v1066_v45, %v1066_v45  ;;  %v608_v40 = vsub.s32 2, %v1057_v31  ;;  %v612_v41 = vsub.s32 3, %v1057_v31 }
 0x115   :  { %v1074_v50 = vsel %vm521_vm0, %v516_v46, 0.0  ;;  %v1078_v51 = vsel %vm521_vm0, %v518_v47, 0.0  ;;  %v627_v46 = vrot.slane %v622_v42, %v600_v37  ;;  %v631_v47 = vrot.slane %v622_v42, %v604_v39 }
 0x116   :  { %v530_v52 = vrot.slane %v526_v48, 4  ;;  %v542_v53 = vrot.slane %v528_v49, 4  ;;  %v527_v54 = vmul.f32 %v1074_v50, %v1074_v50  ;;  %v529_v55 = vmul.f32 %v1078_v51, %v1078_v51 }
 0x118   :  { %v531_v56 = vadd.f32 %v530_v52, %v526_v48  ;;  %v543_v57 = vadd.f32 %v542_v53, %v528_v49  ;;  %v536_v58 = vrot.slane %v527_v54, 4  ;;  %v548_v59 = vrot.slane %v529_v55, 4 }
 0x119   :  { %v635_v48 = vrot.slane %v622_v42, %v608_v40  ;;  %v639_v49 = vrot.slane %v622_v42, %v612_v41 }
 0x11a   :  { %v532_v60 = vrot.slane %v531_v56, 2  ;;  %v544_v61 = vrot.slane %v543_v57, 2  ;;  %v537_v62 = vadd.f32 %v536_v58, %v527_v54  ;;  %v549_v63 = vadd.f32 %v548_v59, %v529_v55 }
 0x11c   :  { %v533_v0 = vadd.f32 %v532_v60, %v531_v56  ;;  %v545_v1 = vadd.f32 %v544_v61, %v543_v57  ;;  %v538_v2 = vrot.slane %v537_v62, 2  ;;  %v550_v3 = vrot.slane %v549_v63, 2 }
 0x11e   :  { %v534_v4 = vrot.slane %v533_v0, 1  ;;  %v546_v5 = vrot.slane %v545_v1, 1  ;;  %v539_v6 = vadd.f32 %v538_v2, %v537_v62  ;;  %v551_v7 = vadd.f32 %v550_v3, %v549_v63 }
 0x120   :  { %v535_v8 = vadd.f32 %v534_v4, %v533_v0  ;;  %v547_v9 = vadd.f32 %v546_v5, %v545_v1  ;;  %v540_v10 = vrot.slane %v539_v6, 1  ;;  %v552_v11 = vrot.slane %v551_v7, 1 }
 0x122   :  { %v554_v12 = vmul.f32 0.5, %v535_v8  ;;  %v556_v13 = vmul.f32 0.5, %v547_v9  ;;  %v541_v14 = vadd.f32 %v540_v10, %v539_v6  ;;  %v553_v15 = vadd.f32 %v552_v11, %v551_v7 }
 0x124   :  { %v559_v16 = vadd.f32 1e-05, %v554_v12  ;;  %v561_v17 = vadd.f32 1e-05, %v556_v13  ;;  %v555_v18 = vmul.f32 0.5, %v541_v14  ;;  %v557_v19 = vmul.f32 0.5, %v553_v15 }
 0x126   :  { %825 = vrsqrt.f32 %v559_v16  ;;  %v560_v20 = vadd.f32 1e-05, %v555_v18  ;;  %v562_v21 = vadd.f32 1e-05, %v557_v19 }
 0x127   :  { %827 = vrsqrt.f32 %v561_v17 }
 0x128   :  { %829 = vrsqrt.f32 %v560_v20 }
 0x129   :  { %831 = vrsqrt.f32 %v562_v21 }
 0x133   :  { %v826_v25 = vpop.eup %825 }
 0x134   :  { %v828_v26 = vpop.eup %827 }
 0x135   :  { %v830_v28 = vpop.eup %829 }
 0x136   :  { %v832_v29 = vpop.eup %831  ;;  %v571_v30 = vcombine.low %v826_v25, %v830_v28 }
 0x137   :  { %v572_v32 = vcombine.low %v828_v26, %v832_v29 }
 0x138   :  { %v579_v33 = vrot.slane %v571_v30, %v578_v27 }
 0x139   :  { %v586_v34 = vrot.slane %v572_v32, %v578_v27 }
 0x13b   :  { %v587_v35 = vcombine.low %v579_v33, %v586_v34 }
 0x13d   :  { %v594_v38 = vrot.slane %v587_v35, %v578_v27 }
 0x13f   :  { %v596_v43 = vmul.f32 %v594_v38, %v558_v36 }
 0x141   :  { %v601_v52 = vrot.slane %v596_v43, %v600_v37  ;;  %v605_v53 = vrot.slane %v596_v43, %v604_v39  ;;  %v609_v54 = vrot.slane %v596_v43, %v608_v40  ;;  %v613_v55 = vrot.slane %v596_v43, %v612_v41 }
 0x143   :  { %v618_v56 = vmul.f32 %v601_v52, %v1062_v44  ;;  %v619_v57 = vmul.f32 %v605_v53, %v1074_v50  ;;  %v620_v58 = vmul.f32 %v609_v54, %v1066_v45  ;;  %v621_v59 = vmul.f32 %v613_v55, %v1078_v51 }
 0x145   :  { %v644_v60 = vadd.f32 %v627_v46, %v618_v56  ;;  %v645_v61 = vadd.f32 %v631_v47, %v619_v57  ;;  %v646_v62 = vadd.f32 %v635_v48, %v620_v58  ;;  %v647_v63 = vadd.f32 %v639_v49, %v621_v59 }
 0x147   :  { %v648_v0 = vmax.f32 %v644_v60, 0.0  ;;  %v649_v1 = vmax.f32 %v645_v61, 0.0  ;;  %v650_v2 = vmax.f32 %v646_v62, 0.0  ;;  %v651_v3 = vmax.f32 %v647_v63, 0.0 }
 0x149   :  { %v652_v4 = vsel %vm521_vm0, %v648_v0, 0.0  ;;  %v653_v44 = vsel %vm521_vm0, %v649_v1, 0.0  ;;  %v654_v50 = vsel %vm521_vm0, %v650_v2, 0.0  ;;  %v655_v45 = vsel %vm521_vm0, %v651_v3, 0.0 }
 0x14a   :  { %656 = vst [vmem:[%s1123_s4] sm:$0xff] %v652_v4  ;;  %657 = vst [vmem:[%s1123_s4 + $0x8] sm:$0xff] %v653_v44 }
 0x14b   :  { %658 = vst [vmem:[%s1123_s4 + $0x10] sm:$0xff] %v654_v50  ;;  %659 = vst [vmem:[%s1123_s4 + $0x18] sm:$0xff] %v655_v45 }

// kernel: resnet18_forward.34
= control target key start
LH: loop header
LB: loop body
LE: loop exit
PB: predicated region body
PF: predicated region fallthrough
CT: control target
= control target key end

     0   :  { %s1949_s1 = inlined_call_operand.vmem [shape: bf16[512,512], index: 1, kind: input, shape index: {}]   ;;  %s1950_s0 = inlined_call_operand.vmem [shape: f32[8,512], index: 0, kind: input, shape index: {}]   ;;  %s1951_s2 = inlined_call_operand.vmem [shape: f32[1,512], index: 2, kind: input, shape index: {}]   ;;  %s1952_s3 = inlined_call_operand.vmem [shape: f32[1,512], index: 3, kind: input, shape index: {}]   ;;  %s1953_s4 = inlined_call_operand.vmem [shape: f32[8,512], index: 4, kind: output, shape index: {}]  }
   0x1   :  { %v1263_v0 = vld [vmem:[%s1949_s1 + $0xe4] ss:$16 sps:$4 sm:$0xff]   ;;  %v1267_v2 = vld [vmem:[%s1949_s1 + $0xe0] ss:$16 sps:$4 sm:$0xff]   ;;  %v18_v46 = vld [vmem:[%s1950_s0 + $0x8] sm:$0xff] }
   0x2   :  { %v1265_v1 = vld [vmem:[%s1949_s1 + $0x2e4] ss:$16 sps:$4 sm:$0xff]   ;;  %793 = vmatprep.subr.bf16.mxu0 %v1263_v0  ;;  %v1268_v3 = vld [vmem:[%s1949_s1 + $0x2e0] ss:$16 sps:$4 sm:$0xff]   ;;  %v1636_v49 = vpack.c.bf16 %v18_v46, %v18_v46  ;;  %v20_v50 = vld [vmem:[%s1950_s0 + $0x18] sm:$0xff] }
   0x3   :  { %834 = vmatprep.subr.bf16.mxu1 %v1265_v1  ;;  %v1269_v4 = vld [vmem:[%s1949_s1 + $0xc4] ss:$16 sps:$4 sm:$0xff]   ;;  %794 = vmatpush1.bf16.msra.mxu0 %v1267_v2  ;;  %v1273_v6 = vld [vmem:[%s1949_s1 + $0xc0] ss:$16 sps:$4 sm:$0xff]   ;;  %v24_v52 = vpack.c.bf16 %v20_v50, %v20_v50  ;;  %v1413_v46 = vld [vmem:[%s1949_s1 + $0x1c8] ss:$16 sps:$4 sm:$0xff]  }
   0x4   :  { %835 = vmatpush1.bf16.msra.mxu1 %v1268_v3  ;;  %v1271_v5 = vld [vmem:[%s1949_s1 + $0x2c4] ss:$16 sps:$4 sm:$0xff]   ;;  %795 = vmatprep.subr.bf16.mxu0 %v1269_v4  ;;  %v1274_v7 = vld [vmem:[%s1949_s1 + $0x2c0] ss:$16 sps:$4 sm:$0xff]   ;;  %v1419_v50 = vld [vmem:[%s1949_s1 + $0x1a8] ss:$16 sps:$4 sm:$0xff]  }
   0x5   :  { %836 = vmatprep.subr.bf16.mxu1 %v1271_v5  ;;  %v1275_v8 = vld [vmem:[%s1949_s1 + $0xa4] ss:$16 sps:$4 sm:$0xff]   ;;  %v1279_v10 = vld [vmem:[%s1949_s1 + $0xa0] ss:$16 sps:$4 sm:$0xff]   ;;  %825 = vmatprep.mubr.bf16.mxu0 %v1636_v49 }
   0x6   :  { %v1277_v9 = vld [vmem:[%s1949_s1 + $0x2a4] ss:$16 sps:$4 sm:$0xff]   ;;  %v1280_v11 = vld [vmem:[%s1949_s1 + $0x2a0] ss:$16 sps:$4 sm:$0xff]   ;;  %866 = vmatprep.mubr.bf16.mxu1 %v24_v52 }
   0x7   :  { %796 = vmatpush1.bf16.msra.mxu0 %v1273_v6  ;;  %v1281_v12 = vld [vmem:[%s1949_s1 + $0x84] ss:$16 sps:$4 sm:$0xff]   ;;  %v1285_v14 = vld [vmem:[%s1949_s1 + $0x80] ss:$16 sps:$4 sm:$0xff]   ;;  %v1361_v6 = vld [vmem:[%s1949_s1 + $0xec] ss:$16 sps:$4 sm:$0xff]  }
   0x8   :  { %837 = vmatpush1.bf16.msra.mxu1 %v1274_v7  ;;  %797 = vmatprep.subr.bf16.mxu0 %v1275_v8  ;;  %v1283_v13 = vld [vmem:[%s1949_s1 + $0x284] ss:$16 sps:$4 sm:$0xff]   ;;  %v1286_v15 = vld [vmem:[%s1949_s1 + $0x280] ss:$16 sps:$4 sm:$0xff]   ;;  %v1364_v7 = vld [vmem:[%s1949_s1 + $0x2ec] ss:$16 sps:$4 sm:$0xff]  }
   0x9   :  { %838 = vmatprep.subr.bf16.mxu1 %v1277_v9  ;;  %v1287_v16 = vld [vmem:[%s1949_s1 + $0x64] ss:$16 sps:$4 sm:$0xff]   ;;  %v1291_v18 = vld [vmem:[%s1949_s1 + $0x60] ss:$16 sps:$4 sm:$0xff]  }
   0xa   :  { %v1289_v17 = vld [vmem:[%s1949_s1 + $0x264] ss:$16 sps:$4 sm:$0xff]   ;;  %v1292_v19 = vld [vmem:[%s1949_s1 + $0x260] ss:$16 sps:$4 sm:$0xff]  }
   0xb   :  { %798 = vmatpush1.bf16.msra.mxu0 %v1279_v10  ;;  %v1293_v20 = vld [vmem:[%s1949_s1 + $0x44] ss:$16 sps:$4 sm:$0xff]   ;;  %v1297_v22 = vld [vmem:[%s1949_s1 + $0x40] ss:$16 sps:$4 sm:$0xff]   ;;  %v1359_v10 = vld [vmem:[%s1949_s1 + $0xe8] ss:$16 sps:$4 sm:$0xff]  }
   0xc   :  { %839 = vmatpush1.bf16.msra.mxu1 %v1280_v11  ;;  %799 = vmatprep.subr.bf16.mxu0 %v1281_v12  ;;  %v1295_v21 = vld [vmem:[%s1949_s1 + $0x244] ss:$16 sps:$4 sm:$0xff]   ;;  %v1298_v23 = vld [vmem:[%s1949_s1 + $0x240] ss:$16 sps:$4 sm:$0xff]   ;;  %v1362_v11 = vld [vmem:[%s1949_s1 + $0x2e8] ss:$16 sps:$4 sm:$0xff]  }
   0xd   :  { %840 = vmatprep.subr.bf16.mxu1 %v1283_v13  ;;  %v1299_v24 = vld [vmem:[%s1949_s1 + $0x24] ss:$16 sps:$4 sm:$0xff]   ;;  %v1303_v26 = vld [vmem:[%s1949_s1 + $0x20] ss:$16 sps:$4 sm:$0xff]   ;;  %v1367_v12 = vld [vmem:[%s1949_s1 + $0xcc] ss:$16 sps:$4 sm:$0xff]  }
   0xe   :  { %v1301_v25 = vld [vmem:[%s1949_s1 + $0x224] ss:$16 sps:$4 sm:$0xff]   ;;  %v1304_v27 = vld [vmem:[%s1949_s1 + $0x220] ss:$16 sps:$4 sm:$0xff]   ;;  %v1370_v13 = vld [vmem:[%s1949_s1 + $0x2cc] ss:$16 sps:$4 sm:$0xff]  }
   0xf   :  { %800 = vmatpush1.bf16.msra.mxu0 %v1285_v14  ;;  %v1305_v28 = vld [vmem:[%s1949_s1 + $0x4] ss:$16 sps:$4 sm:$0xff]   ;;  %v1309_v30 = vld [vmem:[%s1949_s1] ss:$16 sps:$4 sm:$0xff]   ;;  %v1365_v14 = vld [vmem:[%s1949_s1 + $0xc8] ss:$16 sps:$4 sm:$0xff]  }
  0x10   :  { %841 = vmatpush1.bf16.msra.mxu1 %v1286_v15  ;;  %801 = vmatprep.subr.bf16.mxu0 %v1287_v16  ;;  %v1307_v29 = vld [vmem:[%s1949_s1 + $0x204] ss:$16 sps:$4 sm:$0xff]   ;;  %v1310_v31 = vld [vmem:[%s1949_s1 + $0x200] ss:$16 sps:$4 sm:$0xff]   ;;  %v1368_v15 = vld [vmem:[%s1949_s1 + $0x2c8] ss:$16 sps:$4 sm:$0xff]  }
  0x11   :  { %842 = vmatprep.subr.bf16.mxu1 %v1289_v17  ;;  %v1311_v32 = vld [vmem:[%s1949_s1 + $0x1e4] ss:$16 sps:$4 sm:$0xff]   ;;  %v1315_v34 = vld [vmem:[%s1949_s1 + $0x1e0] ss:$16 sps:$4 sm:$0xff]   ;;  %v1373_v16 = vld [vmem:[%s1949_s1 + $0xac] ss:$16 sps:$4 sm:$0xff]  }
  0x12   :  { %v1313_v33 = vld [vmem:[%s1949_s1 + $0x3e4] ss:$16 sps:$4 sm:$0xff]   ;;  %v1316_v35 = vld [vmem:[%s1949_s1 + $0x3e0] ss:$16 sps:$4 sm:$0xff]   ;;  %v1376_v17 = vld [vmem:[%s1949_s1 + $0x2ac] ss:$16 sps:$4 sm:$0xff]  }
  0x13   :  { %802 = vmatpush1.bf16.msra.mxu0 %v1291_v18  ;;  %v1317_v36 = vld [vmem:[%s1949_s1 + $0x1c4] ss:$16 sps:$4 sm:$0xff]   ;;  %v1321_v38 = vld [vmem:[%s1949_s1 + $0x1c0] ss:$16 sps:$4 sm:$0xff]   ;;  %v1371_v18 = vld [vmem:[%s1949_s1 + $0xa8] ss:$16 sps:$4 sm:$0xff]  }
  0x14   :  { %843 = vmatpush1.bf16.msra.mxu1 %v1292_v19  ;;  %803 = vmatprep.subr.bf16.mxu0 %v1293_v20  ;;  %v1319_v37 = vld [vmem:[%s1949_s1 + $0x3c4] ss:$16 sps:$4 sm:$0xff]   ;;  %v1322_v39 = vld [vmem:[%s1949_s1 + $0x3c0] ss:$16 sps:$4 sm:$0xff]   ;;  %v1374_v19 = vld [vmem:[%s1949_s1 + $0x2a8] ss:$16 sps:$4 sm:$0xff]  }
  0x15   :  { %844 = vmatprep.subr.bf16.mxu1 %v1295_v21  ;;  %v1323_v40 = vld [vmem:[%s1949_s1 + $0x1a4] ss:$16 sps:$4 sm:$0xff]   ;;  %v1327_v42 = vld [vmem:[%s1949_s1 + $0x1a0] ss:$16 sps:$4 sm:$0xff]   ;;  %v1379_v20 = vld [vmem:[%s1949_s1 + $0x8c] ss:$16 sps:$4 sm:$0xff]  }
  0x16   :  { %v1325_v41 = vld [vmem:[%s1949_s1 + $0x3a4] ss:$16 sps:$4 sm:$0xff]   ;;  %v1328_v43 = vld [vmem:[%s1949_s1 + $0x3a0] ss:$16 sps:$4 sm:$0xff]   ;;  %v1382_v21 = vld [vmem:[%s1949_s1 + $0x28c] ss:$16 sps:$4 sm:$0xff]  }
  0x17   :  { %804 = vmatpush1.bf16.msra.mxu0 %v1297_v22  ;;  %v1329_v44 = vld [vmem:[%s1949_s1 + $0x184] ss:$16 sps:$4 sm:$0xff]   ;;  %v1333_v47 = vld [vmem:[%s1949_s1 + $0x180] ss:$16 sps:$4 sm:$0xff]   ;;  %v1377_v22 = vld [vmem:[%s1949_s1 + $0x88] ss:$16 sps:$4 sm:$0xff]  }
  0x18   :  { %845 = vmatpush1.bf16.msra.mxu1 %v1298_v23  ;;  %805 = vmatprep.subr.bf16.mxu0 %v1299_v24  ;;  %v1331_v45 = vld [vmem:[%s1949_s1 + $0x384] ss:$16 sps:$4 sm:$0xff]   ;;  %v1334_v48 = vld [vmem:[%s1949_s1 + $0x380] ss:$16 sps:$4 sm:$0xff]   ;;  %v1380_v23 = vld [vmem:[%s1949_s1 + $0x288] ss:$16 sps:$4 sm:$0xff]  }
  0x19   :  { %846 = vmatprep.subr.bf16.mxu1 %v1301_v25  ;;  %v1335_v51 = vld [vmem:[%s1949_s1 + $0x164] ss:$16 sps:$4 sm:$0xff]   ;;  %v1339_v54 = vld [vmem:[%s1949_s1 + $0x160] ss:$16 sps:$4 sm:$0xff]   ;;  %v1385_v24 = vld [vmem:[%s1949_s1 + $0x6c] ss:$16 sps:$4 sm:$0xff]  }
  0x1a   :  { %v1337_v53 = vld [vmem:[%s1949_s1 + $0x364] ss:$16 sps:$4 sm:$0xff]   ;;  %v1340_v55 = vld [vmem:[%s1949_s1 + $0x360] ss:$16 sps:$4 sm:$0xff]   ;;  %v1388_v25 = vld [vmem:[%s1949_s1 + $0x26c] ss:$16 sps:$4 sm:$0xff]  }
  0x1b   :  { %806 = vmatpush1.bf16.msra.mxu0 %v1303_v26  ;;  %v1341_v56 = vld [vmem:[%s1949_s1 + $0x144] ss:$16 sps:$4 sm:$0xff]   ;;  %v1345_v58 = vld [vmem:[%s1949_s1 + $0x140] ss:$16 sps:$4 sm:$0xff]   ;;  %v1383_v26 = vld [vmem:[%s1949_s1 + $0x68] ss:$16 sps:$4 sm:$0xff]  }
  0x1c   :  { %847 = vmatpush1.bf16.msra.mxu1 %v1304_v27  ;;  %807 = vmatprep.subr.bf16.mxu0 %v1305_v28  ;;  %v1343_v57 = vld [vmem:[%s1949_s1 + $0x344] ss:$16 sps:$4 sm:$0xff]   ;;  %v1346_v59 = vld [vmem:[%s1949_s1 + $0x340] ss:$16 sps:$4 sm:$0xff]   ;;  %v1386_v27 = vld [vmem:[%s1949_s1 + $0x268] ss:$16 sps:$4 sm:$0xff]  }
  0x1d   :  { %848 = vmatprep.subr.bf16.mxu1 %v1307_v29  ;;  %v1347_v60 = vld [vmem:[%s1949_s1 + $0x124] ss:$16 sps:$4 sm:$0xff]   ;;  %v1351_v62 = vld [vmem:[%s1949_s1 + $0x120] ss:$16 sps:$4 sm:$0xff]   ;;  %v1391_v28 = vld [vmem:[%s1949_s1 + $0x4c] ss:$16 sps:$4 sm:$0xff]  }
  0x1e   :  { %v1349_v61 = vld [vmem:[%s1949_s1 + $0x324] ss:$16 sps:$4 sm:$0xff]   ;;  %v1352_v63 = vld [vmem:[%s1949_s1 + $0x320] ss:$16 sps:$4 sm:$0xff]   ;;  %v1394_v29 = vld [vmem:[%s1949_s1 + $0x24c] ss:$16 sps:$4 sm:$0xff]  }
  0x1f   :  { %808 = vmatpush1.bf16.msra.mxu0 %v1309_v30  ;;  %v1353_v0 = vld [vmem:[%s1949_s1 + $0x104] ss:$16 sps:$4 sm:$0xff]   ;;  %v1357_v2 = vld [vmem:[%s1949_s1 + $0x100] ss:$16 sps:$4 sm:$0xff]   ;;  %v1389_v30 = vld [vmem:[%s1949_s1 + $0x48] ss:$16 sps:$4 sm:$0xff]  }
  0x20   :  { %849 = vmatpush1.bf16.msra.mxu1 %v1310_v31  ;;  %809 = vmatprep.subr.bf16.mxu0 %v1311_v32  ;;  %v1355_v1 = vld [vmem:[%s1949_s1 + $0x304] ss:$16 sps:$4 sm:$0xff]   ;;  %v1358_v3 = vld [vmem:[%s1949_s1 + $0x300] ss:$16 sps:$4 sm:$0xff]   ;;  %v1392_v31 = vld [vmem:[%s1949_s1 + $0x248] ss:$16 sps:$4 sm:$0xff]  }
  0x21   :  { %850 = vmatprep.subr.bf16.mxu1 %v1313_v33  ;;  %v17_v4 = vld [vmem:[%s1950_s0] sm:$0xff]  ;;  %v19_v5 = vld [vmem:[%s1950_s0 + $0x10] sm:$0xff]  ;;  %v1397_v32 = vld [vmem:[%s1949_s1 + $0x2c] ss:$16 sps:$4 sm:$0xff]  }
  0x22   :  { %v1702_v8 = vpack.c.bf16 %v17_v4, %v17_v4  ;;  %v1704_v9 = vpack.c.bf16 %v19_v5, %v19_v5  ;;  %v1400_v33 = vld [vmem:[%s1949_s1 + $0x22c] ss:$16 sps:$4 sm:$0xff]  }
  0x23   :  { %810 = vmatpush2.bf16.msra.mxu0 %v1315_v34  ;;  %v1395_v34 = vld [vmem:[%s1949_s1 + $0x28] ss:$16 sps:$4 sm:$0xff]   ;;  %v1451_v4 = vld [vmem:[%s1949_s1 + $0x10c] ss:$16 sps:$4 sm:$0xff]  }
  0x24   :  { %851 = vmatpush2.bf16.msra.mxu1 %v1316_v35  ;;  %811 = vmatprep.subr.bf16.mxu0 %v1317_v36  ;;  %v1398_v35 = vld [vmem:[%s1949_s1 + $0x228] ss:$16 sps:$4 sm:$0xff]   ;;  %v1403_v36 = vld [vmem:[%s1949_s1 + $0xc] ss:$16 sps:$4 sm:$0xff]  }
  0x25   :  { %852 = vmatprep.subr.bf16.mxu1 %v1319_v37  ;;  %v1406_v37 = vld [vmem:[%s1949_s1 + $0x20c] ss:$16 sps:$4 sm:$0xff]  }
  0x26   :  { %v1454_v5 = vld [vmem:[%s1949_s1 + $0x30c] ss:$16 sps:$4 sm:$0xff]  }
  0x27   :  { %812 = vmatpush2.bf16.msra.mxu0 %v1321_v38  ;;  %v1401_v38 = vld [vmem:[%s1949_s1 + $0x8] ss:$16 sps:$4 sm:$0xff]  }
  0x28   :  { %853 = vmatpush2.bf16.msra.mxu1 %v1322_v39  ;;  %813 = vmatprep.subr.bf16.mxu0 %v1323_v40  ;;  %v1404_v39 = vld [vmem:[%s1949_s1 + $0x208] ss:$16 sps:$4 sm:$0xff]   ;;  %v1409_v40 = vld [vmem:[%s1949_s1 + $0x1ec] ss:$16 sps:$4 sm:$0xff]  }
  0x29   :  { %854 = vmatprep.subr.bf16.mxu1 %v1325_v41  ;;  %v1412_v41 = vld [vmem:[%s1949_s1 + $0x3ec] ss:$16 sps:$4 sm:$0xff]  }
  0x2b   :  { %814 = vmatpush2.bf16.msra.mxu0 %v1327_v42  ;;  %v1407_v42 = vld [vmem:[%s1949_s1 + $0x1e8] ss:$16 sps:$4 sm:$0xff]  }
  0x2c   :  { %855 = vmatpush2.bf16.msra.mxu1 %v1328_v43  ;;  %815 = vmatprep.subr.bf16.mxu0 %v1329_v44  ;;  %v1410_v43 = vld [vmem:[%s1949_s1 + $0x3e8] ss:$16 sps:$4 sm:$0xff]   ;;  %v1415_v44 = vld [vmem:[%s1949_s1 + $0x1cc] ss:$16 sps:$4 sm:$0xff]  }
  0x2d   :  { %856 = vmatprep.subr.bf16.mxu1 %v1331_v45  ;;  %v1418_v45 = vld [vmem:[%s1949_s1 + $0x3cc] ss:$16 sps:$4 sm:$0xff]  }
  0x2f   :  { %816 = vmatpush2.bf16.msra.mxu0 %v1333_v47  ;;  %v1416_v47 = vld [vmem:[%s1949_s1 + $0x3c8] ss:$16 sps:$4 sm:$0xff]  }
  0x30   :  { %857 = vmatpush2.bf16.msra.mxu1 %v1334_v48  ;;  %817 = vmatprep.subr.bf16.mxu0 %v1335_v51  ;;  %v1421_v48 = vld [vmem:[%s1949_s1 + $0x1ac] ss:$16 sps:$4 sm:$0xff]   ;;  %v1422_v51 = vld [vmem:[%s1949_s1 + $0x3a8] ss:$16 sps:$4 sm:$0xff]  }
  0x31   :  { %858 = vmatprep.subr.bf16.mxu1 %v1337_v53  ;;  %v1430_v53 = vld [vmem:[%s1949_s1 + $0x38c] ss:$16 sps:$4 sm:$0xff]  }
  0x33   :  { %818 = vmatpush2.bf16.msra.mxu0 %v1339_v54  ;;  %v1425_v54 = vld [vmem:[%s1949_s1 + $0x188] ss:$16 sps:$4 sm:$0xff]  }
  0x34   :  { %859 = vmatpush2.bf16.msra.mxu1 %v1340_v55  ;;  %819 = vmatprep.subr.bf16.mxu0 %v1341_v56  ;;  %v1428_v55 = vld [vmem:[%s1949_s1 + $0x388] ss:$16 sps:$4 sm:$0xff]   ;;  %v1433_v56 = vld [vmem:[%s1949_s1 + $0x16c] ss:$16 sps:$4 sm:$0xff]  }
  0x35   :  { %860 = vmatprep.subr.bf16.mxu1 %v1343_v57  ;;  %v1436_v57 = vld [vmem:[%s1949_s1 + $0x36c] ss:$16 sps:$4 sm:$0xff]  }
  0x37   :  { %820 = vmatpush2.bf16.msra.mxu0 %v1345_v58  ;;  %v1431_v58 = vld [vmem:[%s1949_s1 + $0x168] ss:$16 sps:$4 sm:$0xff]  }
  0x38   :  { %861 = vmatpush2.bf16.msra.mxu1 %v1346_v59  ;;  %821 = vmatprep.subr.bf16.mxu0 %v1347_v60  ;;  %v1434_v59 = vld [vmem:[%s1949_s1 + $0x368] ss:$16 sps:$4 sm:$0xff]   ;;  %v1439_v60 = vld [vmem:[%s1949_s1 + $0x14c] ss:$16 sps:$4 sm:$0xff]  }
  0x39   :  { %862 = vmatprep.subr.bf16.mxu1 %v1349_v61  ;;  %v1442_v61 = vld [vmem:[%s1949_s1 + $0x34c] ss:$16 sps:$4 sm:$0xff]  }
  0x3b   :  { %822 = vmatpush2.bf16.msra.mxu0 %v1351_v62  ;;  %v1437_v62 = vld [vmem:[%s1949_s1 + $0x148] ss:$16 sps:$4 sm:$0xff]  }
  0x3c   :  { %863 = vmatpush2.bf16.msra.mxu1 %v1352_v63  ;;  %823 = vmatprep.subr.bf16.mxu0 %v1353_v0  ;;  %v1440_v63 = vld [vmem:[%s1949_s1 + $0x348] ss:$16 sps:$4 sm:$0xff]   ;;  %v1445_v0 = vld [vmem:[%s1949_s1 + $0x12c] ss:$16 sps:$4 sm:$0xff]  }
  0x3d   :  { %864 = vmatprep.subr.bf16.mxu1 %v1355_v1  ;;  %v1448_v1 = vld [vmem:[%s1949_s1 + $0x32c] ss:$16 sps:$4 sm:$0xff]  }
  0x3f   :  { %824 = vmatpush2.bf16.msra.mxu0 %v1357_v2  ;;  %v1443_v2 = vld [vmem:[%s1949_s1 + $0x128] ss:$16 sps:$4 sm:$0xff]  }
  0x40   :  { %865 = vmatpush2.bf16.msra.mxu1 %v1358_v3  ;;  %875 = vmatprep.subr.bf16.mxu0 %v1361_v6  ;;  %v1446_v3 = vld [vmem:[%s1949_s1 + $0x328] ss:$16 sps:$4 sm:$0xff]  }
  0x41   :  { %916 = vmatprep.subr.bf16.mxu1 %v1364_v7  ;;  %v1449_v6 = vld [vmem:[%s1949_s1 + $0x108] ss:$16 sps:$4 sm:$0xff]  }
  0x42   :  { %826 = vmatmul.mubr.bf16.vlgmr.msra.gmra.mxu0 %v1702_v8  ;;  %v1452_v7 = vld [vmem:[%s1949_s1 + $0x308] ss:$16 sps:$4 sm:$0xff]  }
  0x43   :  { %867 = vmatmul.mubr.bf16.vlgmr.msra.gmra.mxu1 %v1704_v9  ;;  %876 = vmatpush1.bf16.msra.mxu0 %v1359_v10 }
  0x44   :  { %917 = vmatpush1.bf16.msra.mxu1 %v1362_v11  ;;  %877 = vmatprep.subr.bf16.mxu0 %v1367_v12 }
  0x45   :  { %918 = vmatprep.subr.bf16.mxu1 %v1370_v13  ;;  %907 = vmatprep.mubr.bf16.mxu0 %v1636_v49  ;;  %v1424_v49 = vld [vmem:[%s1949_s1 + $0x3ac] ss:$16 sps:$4 sm:$0xff]  }
  0x46   :  { %948 = vmatprep.mubr.bf16.mxu1 %v24_v52  ;;  %v1427_v52 = vld [vmem:[%s1949_s1 + $0x18c] ss:$16 sps:$4 sm:$0xff]  }
  0x47   :  { %878 = vmatpush1.bf16.msra.mxu0 %v1365_v14 }
  0x48   :  { %919 = vmatpush1.bf16.msra.mxu1 %v1368_v15  ;;  %879 = vmatprep.subr.bf16.mxu0 %v1373_v16 }
  0x49   :  { %920 = vmatprep.subr.bf16.mxu1 %v1376_v17 }
  0x4b   :  { %880 = vmatpush1.bf16.msra.mxu0 %v1371_v18 }
  0x4c   :  { %921 = vmatpush1.bf16.msra.mxu1 %v1374_v19  ;;  %881 = vmatprep.subr.bf16.mxu0 %v1379_v20 }
  0x4d   :  { %922 = vmatprep.subr.bf16.mxu1 %v1382_v21 }
  0x4f   :  { %882 = vmatpush1.bf16.msra.mxu0 %v1377_v22 }
  0x50   :  { %923 = vmatpush1.bf16.msra.mxu1 %v1380_v23  ;;  %883 = vmatprep.subr.bf16.mxu0 %v1385_v24 }
  0x51   :  { %924 = vmatprep.subr.bf16.mxu1 %v1388_v25  ;;  %v989_v25 = vlaneseq }
  0x53   :  { %884 = vmatpush1.bf16.msra.mxu0 %v1383_v26 }
  0x54   :  { %925 = vmatpush1.bf16.msra.mxu1 %v1386_v27  ;;  %885 = vmatprep.subr.bf16.mxu0 %v1391_v28  ;;  %v1897_v28 = vshrl.u32 %v989_v25, 7 }
  0x55   :  { %926 = vmatprep.subr.bf16.mxu1 %v1394_v29 }
  0x56   :  { %vm991_vm0 = vcmp.lt.s32.totalorder %v1897_v28, 2 }
  0x57   :  { %886 = vmatpush1.bf16.msra.mxu0 %v1389_v30 }
  0x58   :  { %927 = vmatpush1.bf16.msra.mxu1 %v1392_v31  ;;  %887 = vmatprep.subr.bf16.mxu0 %v1397_v32 }
  0x59   :  { %928 = vmatprep.subr.bf16.mxu1 %v1400_v33 }
  0x5b   :  { %888 = vmatpush1.bf16.msra.mxu0 %v1395_v34 }
  0x5c   :  { %929 = vmatpush1.bf16.msra.mxu1 %v1398_v35  ;;  %889 = vmatprep.subr.bf16.mxu0 %v1403_v36 }
  0x5d   :  { %930 = vmatprep.subr.bf16.mxu1 %v1406_v37 }
  0x5f   :  { %890 = vmatpush1.bf16.msra.mxu0 %v1401_v38 }
  0x60   :  { %931 = vmatpush1.bf16.msra.mxu1 %v1404_v39  ;;  %891 = vmatprep.subr.bf16.mxu0 %v1409_v40 }
  0x61   :  { %932 = vmatprep.subr.bf16.mxu1 %v1412_v41 }
  0x63   :  { %892 = vmatpush2.bf16.msra.mxu0 %v1407_v42 }
  0x64   :  { %933 = vmatpush2.bf16.msra.mxu1 %v1410_v43  ;;  %893 = vmatprep.subr.bf16.mxu0 %v1415_v44 }
  0x65   :  { %934 = vmatprep.subr.bf16.mxu1 %v1418_v45 }
  0x67   :  { %894 = vmatpush2.bf16.msra.mxu0 %v1413_v46 }
  0x68   :  { %935 = vmatpush2.bf16.msra.mxu1 %v1416_v47  ;;  %895 = vmatprep.subr.bf16.mxu0 %v1421_v48 }
  0x69   :  { %936 = vmatprep.subr.bf16.mxu1 %v1424_v49 }
  0x6b   :  { %896 = vmatpush2.bf16.msra.mxu0 %v1419_v50 }
  0x6c   :  { %937 = vmatpush2.bf16.msra.mxu1 %v1422_v51  ;;  %897 = vmatprep.subr.bf16.mxu0 %v1427_v52 }
  0x6d   :  { %938 = vmatprep.subr.bf16.mxu1 %v1430_v53 }
  0x6f   :  { %898 = vmatpush2.bf16.msra.mxu0 %v1425_v54 }
  0x70   :  { %939 = vmatpush2.bf16.msra.mxu1 %v1428_v55  ;;  %899 = vmatprep.subr.bf16.mxu0 %v1433_v56 }
  0x71   :  { %940 = vmatprep.subr.bf16.mxu1 %v1436_v57 }
  0x73   :  { %900 = vmatpush2.bf16.msra.mxu0 %v1431_v58 }
  0x74   :  { %941 = vmatpush2.bf16.msra.mxu1 %v1434_v59  ;;  %901 = vmatprep.subr.bf16.mxu0 %v1439_v60 }
  0x75   :  { %942 = vmatprep.subr.bf16.mxu1 %v1442_v61 }
  0x77   :  { %902 = vmatpush2.bf16.msra.mxu0 %v1437_v62 }
  0x78   :  { %943 = vmatpush2.bf16.msra.mxu1 %v1440_v63  ;;  %903 = vmatprep.subr.bf16.mxu0 %v1445_v0 }
  0x79   :  { %944 = vmatprep.subr.bf16.mxu1 %v1448_v1 }
  0x7b   :  { %904 = vmatpush2.bf16.msra.mxu0 %v1443_v2 }
  0x7c   :  { %945 = vmatpush2.bf16.msra.mxu1 %v1446_v3  ;;  %905 = vmatprep.subr.bf16.mxu0 %v1451_v4 }
  0x7d   :  { %946 = vmatprep.subr.bf16.mxu1 %v1454_v5 }
  0x7f   :  { %906 = vmatpush2.bf16.msra.mxu0 %v1449_v6 }
  0x80   :  { %947 = vmatpush2.bf16.msra.mxu1 %v1452_v7 }
  0x82   :  { %908 = vmatmul.mubr.bf16.vlgmr.msra.gmra.mxu0 %v1702_v8 }
  0x83   :  { %949 = vmatmul.mubr.bf16.vlgmr.msra.gmra.mxu1 %v1704_v9 }
 0x102   :  { %v827_v10 = vpop.f32.mrf.mxu0 }
 0x103   :  { %v868_v11 = vpop.f32.mrf.mxu1 }
 0x104   :  { %v869_v12 = vadd.f32 %v868_v11, %v827_v10  ;;  %v829_v13 = vpop.f32.mrf.mxu0 }
 0x105   :  { %v870_v14 = vpop.f32.mrf.mxu1 }
 0x106   :  { %v957_v15 = vrot.slane %v869_v12, 4  ;;  %v871_v16 = vadd.f32 %v870_v14, %v829_v13  ;;  %v831_v17 = vpop.f32.mrf.mxu0 }
 0x107   :  { %v872_v18 = vpop.f32.mrf.mxu1 }
 0x108   :  { %v958_v19 = vadd.f32 %v957_v15, %v869_v12  ;;  %v963_v20 = vrot.slane %v871_v16, 4  ;;  %v832_v21 = vpop.f32.mrf.mxu0 }
 0x109   :  { %v873_v22 = vpop.f32.mrf.mxu1 }
 0x10a   :  { %v959_v23 = vrot.slane %v958_v19, 2  ;;  %v964_v24 = vadd.f32 %v963_v20, %v871_v16 }
 0x10c   :  { %v960_v26 = vadd.f32 %v959_v23, %v958_v19  ;;  %v965_v8 = vrot.slane %v964_v24, 2 }
 0x10e   :  { %v961_v27 = vrot.slane %v960_v26, 1  ;;  %v966_v9 = vadd.f32 %v965_v8, %v964_v24 }
 0x110   :  { %v962_v29 = vadd.f32 %v961_v27, %v960_v26  ;;  %v967_v30 = vrot.slane %v966_v9, 1 }
 0x112   :  { %v981_v31 = vmul.f32 0.5, %v962_v29  ;;  %v968_v32 = vadd.f32 %v967_v30, %v966_v9 }
 0x114   :  { %v985_v33 = vsub.f32 %v869_v12, %v981_v31  ;;  %v982_v34 = vmul.f32 0.5, %v968_v32 }
 0x116   :  { %v1902_v35 = vsel %vm991_vm0, %v985_v33, 0.0  ;;  %v986_v36 = vsub.f32 %v871_v16, %v982_v34 }
 0x117   :  { %v996_v37 = vmul.f32 %v1902_v35, %v1902_v35 }
 0x118   :  { %v1908_v38 = vsel %vm991_vm0, %v986_v36, 0.0 }
 0x119   :  { %v1000_v39 = vrot.slane %v996_v37, 4  ;;  %v997_v40 = vmul.f32 %v1908_v38, %v1908_v38 }
 0x11b   :  { %v1001_v41 = vadd.f32 %v1000_v39, %v996_v37  ;;  %v1006_v42 = vrot.slane %v997_v40, 4 }
 0x11d   :  { %v1002_v43 = vrot.slane %v1001_v41, 2  ;;  %v1007_v44 = vadd.f32 %v1006_v42, %v997_v40 }
 0x11f   :  { %v1003_v45 = vadd.f32 %v1002_v43, %v1001_v41  ;;  %v1008_v46 = vrot.slane %v1007_v44, 2 }
 0x121   :  { %v1004_v47 = vrot.slane %v1003_v45, 1  ;;  %v1009_v48 = vadd.f32 %v1008_v46, %v1007_v44  ;;  %v1463_v44 = vmov 1966171168  }
 0x123   :  { %v1005_v49 = vadd.f32 %v1004_v47, %v1003_v45  ;;  %v1010_v50 = vrot.slane %v1009_v48, 1  ;;  %v1044_v45 = vunpack.c.l.s4 %v1463_v44 }
 0x125   :  { %v1024_v51 = vmul.f32 0.5, %v1005_v49  ;;  %v1011_v52 = vadd.f32 %v1010_v50, %v1009_v48  ;;  %v1045_v46 = vunpack.c.0.s8 %v1044_v45 }
 0x127   :  { %v1029_v53 = vadd.f32 1e-05, %v1024_v51  ;;  %v1025_v54 = vmul.f32 0.5, %v1011_v52  ;;  %v1048_v48 = vsub.s32 %v1045_v46, %v1897_v28 }
 0x129   :  { %v1030_v55 = vadd.f32 1e-05, %v1025_v54  ;;  %1455 = vrsqrt.f32 %v1029_v53  ;;  %v1028_v54 = vld [vmem:[%s1951_s2] sm:$0xf] }
 0x12b   :  { %1457 = vrsqrt.f32 %v1030_v55  ;;  %v1070_v55 = vsub.s32 0, %v1897_v28 }
 0x136   :  { %v1456_v56 = vpop.eup %1455 }
 0x138   :  { %v1458_v57 = vpop.eup %1457 }
 0x139   :  { %v1041_v58 = vcombine.low %v1456_v56, %v1458_v57  ;;  %v1074_v57 = vsub.s32 1, %v1897_v28 }
 0x13b   :  { %v1049_v51 = vrot.slane %v1041_v58, %v1048_v48 }
 0x142   :  { %v909_v59 = vpop.f32.mrf.mxu0 }
 0x143   :  { %v950_v60 = vpop.f32.mrf.mxu1 }
 0x144   :  { %v951_v61 = vadd.f32 %v950_v60, %v909_v59  ;;  %v911_v62 = vpop.f32.mrf.mxu0  ;;  %v1078_v59 = vsub.s32 2, %v1897_v28  ;;  %v1082_v60 = vsub.s32 3, %v1897_v28 }
 0x145   :  { %v952_v63 = vpop.f32.mrf.mxu1 }
 0x146   :  { %v969_v0 = vrot.slane %v951_v61, 4  ;;  %v953_v1 = vadd.f32 %v952_v63, %v911_v62  ;;  %v913_v2 = vpop.f32.mrf.mxu0 }
 0x147   :  { %v954_v3 = vpop.f32.mrf.mxu1 }
 0x148   :  { %v970_v4 = vadd.f32 %v969_v0, %v951_v61  ;;  %v975_v5 = vrot.slane %v953_v1, 4  ;;  %v914_v6 = vpop.f32.mrf.mxu0 }
 0x149   :  { %v955_v7 = vpop.f32.mrf.mxu1 }
 0x14a   :  { %v971_v10 = vrot.slane %v970_v4, 2  ;;  %v976_v11 = vadd.f32 %v975_v5, %v953_v1 }
 0x14c   :  { %v972_v12 = vadd.f32 %v971_v10, %v970_v4  ;;  %v977_v13 = vrot.slane %v976_v11, 2 }
 0x14e   :  { %v973_v14 = vrot.slane %v972_v12, 1  ;;  %v978_v15 = vadd.f32 %v977_v13, %v976_v11 }
 0x150   :  { %v974_v16 = vadd.f32 %v973_v14, %v972_v12  ;;  %v979_v17 = vrot.slane %v978_v15, 1 }
 0x152   :  { %v983_v18 = vmul.f32 0.5, %v974_v16  ;;  %v980_v19 = vadd.f32 %v979_v17, %v978_v15 }
 0x154   :  { %v987_v20 = vsub.f32 %v951_v61, %v983_v18  ;;  %v984_v21 = vmul.f32 0.5, %v980_v19  ;;  %v1092_v61 = vld [vmem:[%s1952_s3] sm:$0xf] }
 0x155   :  { %v1097_v62 = vrot.slane %v1092_v61, %v1070_v55  ;;  %v1101_v63 = vrot.slane %v1092_v61, %v1074_v57  ;;  %v1105_v0 = vrot.slane %v1092_v61, %v1078_v59 }
 0x156   :  { %v994_v22 = vsel %vm991_vm0, %v987_v20, 0.0  ;;  %v988_v23 = vsub.f32 %v953_v1, %v984_v21  ;;  %v1109_v1 = vrot.slane %v1092_v61, %v1082_v60 }
 0x157   :  { %v998_v24 = vmul.f32 %v994_v22, %v994_v22 }
 0x158   :  { %v995_v25 = vsel %vm991_vm0, %v988_v23, 0.0 }
 0x159   :  { %v1012_v26 = vrot.slane %v998_v24, 4  ;;  %v999_v8 = vmul.f32 %v995_v25, %v995_v25 }
 0x15b   :  { %v1013_v27 = vadd.f32 %v1012_v26, %v998_v24  ;;  %v1018_v9 = vrot.slane %v999_v8, 4 }
 0x15d   :  { %v1014_v29 = vrot.slane %v1013_v27, 2  ;;  %v1019_v30 = vadd.f32 %v1018_v9, %v999_v8 }
 0x15f   :  { %v1015_v31 = vadd.f32 %v1014_v29, %v1013_v27  ;;  %v1020_v32 = vrot.slane %v1019_v30, 2 }
 0x161   :  { %v1016_v33 = vrot.slane %v1015_v31, 1  ;;  %v1021_v34 = vadd.f32 %v1020_v32, %v1019_v30 }
 0x163   :  { %v1017_v36 = vadd.f32 %v1016_v33, %v1015_v31  ;;  %v1022_v37 = vrot.slane %v1021_v34, 1 }
 0x165   :  { %v1026_v39 = vmul.f32 0.5, %v1017_v36  ;;  %v1023_v40 = vadd.f32 %v1022_v37, %v1021_v34 }
 0x167   :  { %v1031_v41 = vadd.f32 1e-05, %v1026_v39  ;;  %v1027_v42 = vmul.f32 0.5, %v1023_v40 }
 0x169   :  { %v1032_v43 = vadd.f32 1e-05, %v1027_v42  ;;  %1459 = vrsqrt.f32 %v1031_v41 }
 0x16b   :  { %1461 = vrsqrt.f32 %v1032_v43 }
 0x176   :  { %v1460_v47 = vpop.eup %1459 }
 0x178   :  { %v1462_v49 = vpop.eup %1461 }
 0x179   :  { %v1042_v50 = vcombine.low %v1460_v47, %v1462_v49 }
 0x17b   :  { %v1056_v52 = vrot.slane %v1042_v50, %v1048_v48 }
 0x17d   :  { %v1057_v53 = vcombine.low %v1049_v51, %v1056_v52 }
 0x17f   :  { %v1064_v56 = vrot.slane %v1057_v53, %v1048_v48 }
 0x181   :  { %v1066_v58 = vmul.f32 %v1064_v56, %v1028_v54 }
 0x183   :  { %v1071_v2 = vrot.slane %v1066_v58, %v1070_v55  ;;  %v1075_v3 = vrot.slane %v1066_v58, %v1074_v57  ;;  %v1079_v4 = vrot.slane %v1066_v58, %v1078_v59  ;;  %v1083_v5 = vrot.slane %v1066_v58, %v1082_v60 }
 0x185   :  { %v1088_v6 = vmul.f32 %v1071_v2, %v1902_v35  ;;  %v1089_v7 = vmul.f32 %v1075_v3, %v1908_v38  ;;  %v1090_v10 = vmul.f32 %v1079_v4, %v994_v22  ;;  %v1091_v11 = vmul.f32 %v1083_v5, %v995_v25 }
 0x187   :  { %v1114_v12 = vadd.f32 %v1097_v62, %v1088_v6  ;;  %v1115_v13 = vadd.f32 %v1101_v63, %v1089_v7  ;;  %v1116_v14 = vadd.f32 %v1105_v0, %v1090_v10  ;;  %v1117_v15 = vadd.f32 %v1109_v1, %v1091_v11 }
 0x189   :  { %v1118_v16 = vmax.f32 %v1114_v12, 0.0  ;;  %v1119_v17 = vmax.f32 %v1115_v13, 0.0  ;;  %v1120_v18 = vmax.f32 %v1116_v14, 0.0  ;;  %v1121_v19 = vmax.f32 %v1117_v15, 0.0 }
 0x18b   :  { %v1122_v20 = vsel %vm991_vm0, %v1118_v16, 0.0  ;;  %v1123_v21 = vsel %vm991_vm0, %v1119_v17, 0.0  ;;  %v1124_v35 = vsel %vm991_vm0, %v1120_v18, 0.0  ;;  %v1125_v38 = vsel %vm991_vm0, %v1121_v19, 0.0 }
 0x18c   :  { %1126 = vst [vmem:[%s1953_s4] sm:$0xff] %v1122_v20  ;;  %1127 = vst [vmem:[%s1953_s4 + $0x8] sm:$0xff] %v1123_v21 }
 0x18d   :  { %1128 = vst [vmem:[%s1953_s4 + $0x10] sm:$0xff] %v1124_v35  ;;  %1129 = vst [vmem:[%s1953_s4 + $0x18] sm:$0xff] %v1125_v38 }

// kernel: resnet18_forward.36
= control target key start
LH: loop header
LB: loop body
LE: loop exit
PB: predicated region body
PF: predicated region fallthrough
CT: control target
= control target key end

     0   :  { %s1977_s1 = inlined_call_operand.vmem [shape: bf16[512,512], index: 1, kind: input, shape index: {}]   ;;  %s1978_s0 = inlined_call_operand.vmem [shape: f32[8,512], index: 0, kind: input, shape index: {}]   ;;  %s1979_s2 = inlined_call_operand.vmem [shape: f32[1,512], index: 2, kind: input, shape index: {}]   ;;  %s1980_s3 = inlined_call_operand.vmem [shape: f32[1,512], index: 3, kind: input, shape index: {}]   ;;  %s1981_s4 = inlined_call_operand.vmem [shape: f32[8,512], index: 4, kind: input, shape index: {}]   ;;  %s1982_s5 = inlined_call_operand.vmem [shape: f32[8,512], index: 5, kind: output, shape index: {}]  }
   0x1   :  { %v1274_v0 = vld [vmem:[%s1977_s1 + $0xe4] ss:$16 sps:$4 sm:$0xff]   ;;  %v1278_v2 = vld [vmem:[%s1977_s1 + $0xe0] ss:$16 sps:$4 sm:$0xff]   ;;  %v21_v46 = vld [vmem:[%s1978_s0 + $0x8] sm:$0xff] }
   0x2   :  { %v1276_v1 = vld [vmem:[%s1977_s1 + $0x2e4] ss:$16 sps:$4 sm:$0xff]   ;;  %796 = vmatprep.subr.bf16.mxu0 %v1274_v0  ;;  %v1279_v3 = vld [vmem:[%s1977_s1 + $0x2e0] ss:$16 sps:$4 sm:$0xff]   ;;  %v1652_v49 = vpack.c.bf16 %v21_v46, %v21_v46  ;;  %v23_v50 = vld [vmem:[%s1978_s0 + $0x18] sm:$0xff] }
   0x3   :  { %837 = vmatprep.subr.bf16.mxu1 %v1276_v1  ;;  %v1280_v4 = vld [vmem:[%s1977_s1 + $0xc4] ss:$16 sps:$4 sm:$0xff]   ;;  %797 = vmatpush1.bf16.msra.mxu0 %v1278_v2  ;;  %v1284_v6 = vld [vmem:[%s1977_s1 + $0xc0] ss:$16 sps:$4 sm:$0xff]   ;;  %v27_v52 = vpack.c.bf16 %v23_v50, %v23_v50  ;;  %v1424_v46 = vld [vmem:[%s1977_s1 + $0x1c8] ss:$16 sps:$4 sm:$0xff]  }
   0x4   :  { %838 = vmatpush1.bf16.msra.mxu1 %v1279_v3  ;;  %v1282_v5 = vld [vmem:[%s1977_s1 + $0x2c4] ss:$16 sps:$4 sm:$0xff]   ;;  %798 = vmatprep.subr.bf16.mxu0 %v1280_v4  ;;  %v1285_v7 = vld [vmem:[%s1977_s1 + $0x2c0] ss:$16 sps:$4 sm:$0xff]   ;;  %v1430_v50 = vld [vmem:[%s1977_s1 + $0x1a8] ss:$16 sps:$4 sm:$0xff]  }
   0x5   :  { %839 = vmatprep.subr.bf16.mxu1 %v1282_v5  ;;  %v1286_v8 = vld [vmem:[%s1977_s1 + $0xa4] ss:$16 sps:$4 sm:$0xff]   ;;  %v1290_v10 = vld [vmem:[%s1977_s1 + $0xa0] ss:$16 sps:$4 sm:$0xff]   ;;  %828 = vmatprep.mubr.bf16.mxu0 %v1652_v49 }
   0x6   :  { %v1288_v9 = vld [vmem:[%s1977_s1 + $0x2a4] ss:$16 sps:$4 sm:$0xff]   ;;  %v1291_v11 = vld [vmem:[%s1977_s1 + $0x2a0] ss:$16 sps:$4 sm:$0xff]   ;;  %869 = vmatprep.mubr.bf16.mxu1 %v27_v52 }
   0x7   :  { %799 = vmatpush1.bf16.msra.mxu0 %v1284_v6  ;;  %v1292_v12 = vld [vmem:[%s1977_s1 + $0x84] ss:$16 sps:$4 sm:$0xff]   ;;  %v1296_v14 = vld [vmem:[%s1977_s1 + $0x80] ss:$16 sps:$4 sm:$0xff]   ;;  %v1372_v6 = vld [vmem:[%s1977_s1 + $0xec] ss:$16 sps:$4 sm:$0xff]  }
   0x8   :  { %840 = vmatpush1.bf16.msra.mxu1 %v1285_v7  ;;  %800 = vmatprep.subr.bf16.mxu0 %v1286_v8  ;;  %v1294_v13 = vld [vmem:[%s1977_s1 + $0x284] ss:$16 sps:$4 sm:$0xff]   ;;  %v1297_v15 = vld [vmem:[%s1977_s1 + $0x280] ss:$16 sps:$4 sm:$0xff]   ;;  %v1375_v7 = vld [vmem:[%s1977_s1 + $0x2ec] ss:$16 sps:$4 sm:$0xff]  }
   0x9   :  { %841 = vmatprep.subr.bf16.mxu1 %v1288_v9  ;;  %v1298_v16 = vld [vmem:[%s1977_s1 + $0x64] ss:$16 sps:$4 sm:$0xff]   ;;  %v1302_v18 = vld [vmem:[%s1977_s1 + $0x60] ss:$16 sps:$4 sm:$0xff]  }
   0xa   :  { %v1300_v17 = vld [vmem:[%s1977_s1 + $0x264] ss:$16 sps:$4 sm:$0xff]   ;;  %v1303_v19 = vld [vmem:[%s1977_s1 + $0x260] ss:$16 sps:$4 sm:$0xff]  }
   0xb   :  { %801 = vmatpush1.bf16.msra.mxu0 %v1290_v10  ;;  %v1304_v20 = vld [vmem:[%s1977_s1 + $0x44] ss:$16 sps:$4 sm:$0xff]   ;;  %v1308_v22 = vld [vmem:[%s1977_s1 + $0x40] ss:$16 sps:$4 sm:$0xff]   ;;  %v1370_v10 = vld [vmem:[%s1977_s1 + $0xe8] ss:$16 sps:$4 sm:$0xff]  }
   0xc   :  { %842 = vmatpush1.bf16.msra.mxu1 %v1291_v11  ;;  %802 = vmatprep.subr.bf16.mxu0 %v1292_v12  ;;  %v1306_v21 = vld [vmem:[%s1977_s1 + $0x244] ss:$16 sps:$4 sm:$0xff]   ;;  %v1309_v23 = vld [vmem:[%s1977_s1 + $0x240] ss:$16 sps:$4 sm:$0xff]   ;;  %v1373_v11 = vld [vmem:[%s1977_s1 + $0x2e8] ss:$16 sps:$4 sm:$0xff]  }
   0xd   :  { %843 = vmatprep.subr.bf16.mxu1 %v1294_v13  ;;  %v1310_v24 = vld [vmem:[%s1977_s1 + $0x24] ss:$16 sps:$4 sm:$0xff]   ;;  %v1314_v26 = vld [vmem:[%s1977_s1 + $0x20] ss:$16 sps:$4 sm:$0xff]   ;;  %v1378_v12 = vld [vmem:[%s1977_s1 + $0xcc] ss:$16 sps:$4 sm:$0xff]  }
   0xe   :  { %v1312_v25 = vld [vmem:[%s1977_s1 + $0x224] ss:$16 sps:$4 sm:$0xff]   ;;  %v1315_v27 = vld [vmem:[%s1977_s1 + $0x220] ss:$16 sps:$4 sm:$0xff]   ;;  %v1381_v13 = vld [vmem:[%s1977_s1 + $0x2cc] ss:$16 sps:$4 sm:$0xff]  }
   0xf   :  { %803 = vmatpush1.bf16.msra.mxu0 %v1296_v14  ;;  %v1316_v28 = vld [vmem:[%s1977_s1 + $0x4] ss:$16 sps:$4 sm:$0xff]   ;;  %v1320_v30 = vld [vmem:[%s1977_s1] ss:$16 sps:$4 sm:$0xff]   ;;  %v1376_v14 = vld [vmem:[%s1977_s1 + $0xc8] ss:$16 sps:$4 sm:$0xff]  }
  0x10   :  { %844 = vmatpush1.bf16.msra.mxu1 %v1297_v15  ;;  %804 = vmatprep.subr.bf16.mxu0 %v1298_v16  ;;  %v1318_v29 = vld [vmem:[%s1977_s1 + $0x204] ss:$16 sps:$4 sm:$0xff]   ;;  %v1321_v31 = vld [vmem:[%s1977_s1 + $0x200] ss:$16 sps:$4 sm:$0xff]   ;;  %v1379_v15 = vld [vmem:[%s1977_s1 + $0x2c8] ss:$16 sps:$4 sm:$0xff]  }
  0x11   :  { %845 = vmatprep.subr.bf16.mxu1 %v1300_v17  ;;  %v1322_v32 = vld [vmem:[%s1977_s1 + $0x1e4] ss:$16 sps:$4 sm:$0xff]   ;;  %v1326_v34 = vld [vmem:[%s1977_s1 + $0x1e0] ss:$16 sps:$4 sm:$0xff]   ;;  %v1384_v16 = vld [vmem:[%s1977_s1 + $0xac] ss:$16 sps:$4 sm:$0xff]  }
  0x12   :  { %v1324_v33 = vld [vmem:[%s1977_s1 + $0x3e4] ss:$16 sps:$4 sm:$0xff]   ;;  %v1327_v35 = vld [vmem:[%s1977_s1 + $0x3e0] ss:$16 sps:$4 sm:$0xff]   ;;  %v1387_v17 = vld [vmem:[%s1977_s1 + $0x2ac] ss:$16 sps:$4 sm:$0xff]  }
  0x13   :  { %805 = vmatpush1.bf16.msra.mxu0 %v1302_v18  ;;  %v1328_v36 = vld [vmem:[%s1977_s1 + $0x1c4] ss:$16 sps:$4 sm:$0xff]   ;;  %v1332_v38 = vld [vmem:[%s1977_s1 + $0x1c0] ss:$16 sps:$4 sm:$0xff]   ;;  %v1382_v18 = vld [vmem:[%s1977_s1 + $0xa8] ss:$16 sps:$4 sm:$0xff]  }
  0x14   :  { %846 = vmatpush1.bf16.msra.mxu1 %v1303_v19  ;;  %806 = vmatprep.subr.bf16.mxu0 %v1304_v20  ;;  %v1330_v37 = vld [vmem:[%s1977_s1 + $0x3c4] ss:$16 sps:$4 sm:$0xff]   ;;  %v1333_v39 = vld [vmem:[%s1977_s1 + $0x3c0] ss:$16 sps:$4 sm:$0xff]   ;;  %v1385_v19 = vld [vmem:[%s1977_s1 + $0x2a8] ss:$16 sps:$4 sm:$0xff]  }
  0x15   :  { %847 = vmatprep.subr.bf16.mxu1 %v1306_v21  ;;  %v1334_v40 = vld [vmem:[%s1977_s1 + $0x1a4] ss:$16 sps:$4 sm:$0xff]   ;;  %v1338_v42 = vld [vmem:[%s1977_s1 + $0x1a0] ss:$16 sps:$4 sm:$0xff]   ;;  %v1390_v20 = vld [vmem:[%s1977_s1 + $0x8c] ss:$16 sps:$4 sm:$0xff]  }
  0x16   :  { %v1336_v41 = vld [vmem:[%s1977_s1 + $0x3a4] ss:$16 sps:$4 sm:$0xff]   ;;  %v1339_v43 = vld [vmem:[%s1977_s1 + $0x3a0] ss:$16 sps:$4 sm:$0xff]   ;;  %v1393_v21 = vld [vmem:[%s1977_s1 + $0x28c] ss:$16 sps:$4 sm:$0xff]  }
  0x17   :  { %807 = vmatpush1.bf16.msra.mxu0 %v1308_v22  ;;  %v1340_v44 = vld [vmem:[%s1977_s1 + $0x184] ss:$16 sps:$4 sm:$0xff]   ;;  %v1344_v47 = vld [vmem:[%s1977_s1 + $0x180] ss:$16 sps:$4 sm:$0xff]   ;;  %v1388_v22 = vld [vmem:[%s1977_s1 + $0x88] ss:$16 sps:$4 sm:$0xff]  }
  0x18   :  { %848 = vmatpush1.bf16.msra.mxu1 %v1309_v23  ;;  %808 = vmatprep.subr.bf16.mxu0 %v1310_v24  ;;  %v1342_v45 = vld [vmem:[%s1977_s1 + $0x384] ss:$16 sps:$4 sm:$0xff]   ;;  %v1345_v48 = vld [vmem:[%s1977_s1 + $0x380] ss:$16 sps:$4 sm:$0xff]   ;;  %v1391_v23 = vld [vmem:[%s1977_s1 + $0x288] ss:$16 sps:$4 sm:$0xff]  }
  0x19   :  { %849 = vmatprep.subr.bf16.mxu1 %v1312_v25  ;;  %v1346_v51 = vld [vmem:[%s1977_s1 + $0x164] ss:$16 sps:$4 sm:$0xff]   ;;  %v1350_v54 = vld [vmem:[%s1977_s1 + $0x160] ss:$16 sps:$4 sm:$0xff]   ;;  %v1396_v24 = vld [vmem:[%s1977_s1 + $0x6c] ss:$16 sps:$4 sm:$0xff]  }
  0x1a   :  { %v1348_v53 = vld [vmem:[%s1977_s1 + $0x364] ss:$16 sps:$4 sm:$0xff]   ;;  %v1351_v55 = vld [vmem:[%s1977_s1 + $0x360] ss:$16 sps:$4 sm:$0xff]   ;;  %v1399_v25 = vld [vmem:[%s1977_s1 + $0x26c] ss:$16 sps:$4 sm:$0xff]  }
  0x1b   :  { %809 = vmatpush1.bf16.msra.mxu0 %v1314_v26  ;;  %v1352_v56 = vld [vmem:[%s1977_s1 + $0x144] ss:$16 sps:$4 sm:$0xff]   ;;  %v1356_v58 = vld [vmem:[%s1977_s1 + $0x140] ss:$16 sps:$4 sm:$0xff]   ;;  %v1394_v26 = vld [vmem:[%s1977_s1 + $0x68] ss:$16 sps:$4 sm:$0xff]  }
  0x1c   :  { %850 = vmatpush1.bf16.msra.mxu1 %v1315_v27  ;;  %810 = vmatprep.subr.bf16.mxu0 %v1316_v28  ;;  %v1354_v57 = vld [vmem:[%s1977_s1 + $0x344] ss:$16 sps:$4 sm:$0xff]   ;;  %v1357_v59 = vld [vmem:[%s1977_s1 + $0x340] ss:$16 sps:$4 sm:$0xff]   ;;  %v1397_v27 = vld [vmem:[%s1977_s1 + $0x268] ss:$16 sps:$4 sm:$0xff]  }
  0x1d   :  { %851 = vmatprep.subr.bf16.mxu1 %v1318_v29  ;;  %v1358_v60 = vld [vmem:[%s1977_s1 + $0x124] ss:$16 sps:$4 sm:$0xff]   ;;  %v1362_v62 = vld [vmem:[%s1977_s1 + $0x120] ss:$16 sps:$4 sm:$0xff]   ;;  %v1402_v28 = vld [vmem:[%s1977_s1 + $0x4c] ss:$16 sps:$4 sm:$0xff]  }
  0x1e   :  { %v1360_v61 = vld [vmem:[%s1977_s1 + $0x324] ss:$16 sps:$4 sm:$0xff]   ;;  %v1363_v63 = vld [vmem:[%s1977_s1 + $0x320] ss:$16 sps:$4 sm:$0xff]   ;;  %v1405_v29 = vld [vmem:[%s1977_s1 + $0x24c] ss:$16 sps:$4 sm:$0xff]  }
  0x1f   :  { %811 = vmatpush1.bf16.msra.mxu0 %v1320_v30  ;;  %v1364_v0 = vld [vmem:[%s1977_s1 + $0x104] ss:$16 sps:$4 sm:$0xff]   ;;  %v1368_v2 = vld [vmem:[%s1977_s1 + $0x100] ss:$16 sps:$4 sm:$0xff]   ;;  %v1400_v30 = vld [vmem:[%s1977_s1 + $0x48] ss:$16 sps:$4 sm:$0xff]  }
  0x20   :  { %852 = vmatpush1.bf16.msra.mxu1 %v1321_v31  ;;  %812 = vmatprep.subr.bf16.mxu0 %v1322_v32  ;;  %v1366_v1 = vld [vmem:[%s1977_s1 + $0x304] ss:$16 sps:$4 sm:$0xff]   ;;  %v1369_v3 = vld [vmem:[%s1977_s1 + $0x300] ss:$16 sps:$4 sm:$0xff]   ;;  %v1403_v31 = vld [vmem:[%s1977_s1 + $0x248] ss:$16 sps:$4 sm:$0xff]  }
  0x21   :  { %853 = vmatprep.subr.bf16.mxu1 %v1324_v33  ;;  %v20_v4 = vld [vmem:[%s1978_s0] sm:$0xff]  ;;  %v22_v5 = vld [vmem:[%s1978_s0 + $0x10] sm:$0xff]  ;;  %v1408_v32 = vld [vmem:[%s1977_s1 + $0x2c] ss:$16 sps:$4 sm:$0xff]  }
  0x22   :  { %v1718_v8 = vpack.c.bf16 %v20_v4, %v20_v4  ;;  %v1720_v9 = vpack.c.bf16 %v22_v5, %v22_v5  ;;  %v1411_v33 = vld [vmem:[%s1977_s1 + $0x22c] ss:$16 sps:$4 sm:$0xff]  }
  0x23   :  { %813 = vmatpush2.bf16.msra.mxu0 %v1326_v34  ;;  %v1406_v34 = vld [vmem:[%s1977_s1 + $0x28] ss:$16 sps:$4 sm:$0xff]   ;;  %v1462_v4 = vld [vmem:[%s1977_s1 + $0x10c] ss:$16 sps:$4 sm:$0xff]  }
  0x24   :  { %854 = vmatpush2.bf16.msra.mxu1 %v1327_v35  ;;  %814 = vmatprep.subr.bf16.mxu0 %v1328_v36  ;;  %v1409_v35 = vld [vmem:[%s1977_s1 + $0x228] ss:$16 sps:$4 sm:$0xff]   ;;  %v1414_v36 = vld [vmem:[%s1977_s1 + $0xc] ss:$16 sps:$4 sm:$0xff]  }
  0x25   :  { %855 = vmatprep.subr.bf16.mxu1 %v1330_v37  ;;  %v1417_v37 = vld [vmem:[%s1977_s1 + $0x20c] ss:$16 sps:$4 sm:$0xff]  }
  0x26   :  { %v1465_v5 = vld [vmem:[%s1977_s1 + $0x30c] ss:$16 sps:$4 sm:$0xff]  }
  0x27   :  { %815 = vmatpush2.bf16.msra.mxu0 %v1332_v38  ;;  %v1412_v38 = vld [vmem:[%s1977_s1 + $0x8] ss:$16 sps:$4 sm:$0xff]  }
  0x28   :  { %856 = vmatpush2.bf16.msra.mxu1 %v1333_v39  ;;  %816 = vmatprep.subr.bf16.mxu0 %v1334_v40  ;;  %v1415_v39 = vld [vmem:[%s1977_s1 + $0x208] ss:$16 sps:$4 sm:$0xff]   ;;  %v1420_v40 = vld [vmem:[%s1977_s1 + $0x1ec] ss:$16 sps:$4 sm:$0xff]  }
  0x29   :  { %857 = vmatprep.subr.bf16.mxu1 %v1336_v41  ;;  %v1423_v41 = vld [vmem:[%s1977_s1 + $0x3ec] ss:$16 sps:$4 sm:$0xff]  }
  0x2b   :  { %817 = vmatpush2.bf16.msra.mxu0 %v1338_v42  ;;  %v1418_v42 = vld [vmem:[%s1977_s1 + $0x1e8] ss:$16 sps:$4 sm:$0xff]  }
  0x2c   :  { %858 = vmatpush2.bf16.msra.mxu1 %v1339_v43  ;;  %818 = vmatprep.subr.bf16.mxu0 %v1340_v44  ;;  %v1421_v43 = vld [vmem:[%s1977_s1 + $0x3e8] ss:$16 sps:$4 sm:$0xff]   ;;  %v1426_v44 = vld [vmem:[%s1977_s1 + $0x1cc] ss:$16 sps:$4 sm:$0xff]  }
  0x2d   :  { %859 = vmatprep.subr.bf16.mxu1 %v1342_v45  ;;  %v1429_v45 = vld [vmem:[%s1977_s1 + $0x3cc] ss:$16 sps:$4 sm:$0xff]  }
  0x2f   :  { %819 = vmatpush2.bf16.msra.mxu0 %v1344_v47  ;;  %v1427_v47 = vld [vmem:[%s1977_s1 + $0x3c8] ss:$16 sps:$4 sm:$0xff]  }
  0x30   :  { %860 = vmatpush2.bf16.msra.mxu1 %v1345_v48  ;;  %820 = vmatprep.subr.bf16.mxu0 %v1346_v51  ;;  %v1432_v48 = vld [vmem:[%s1977_s1 + $0x1ac] ss:$16 sps:$4 sm:$0xff]   ;;  %v1433_v51 = vld [vmem:[%s1977_s1 + $0x3a8] ss:$16 sps:$4 sm:$0xff]  }
  0x31   :  { %861 = vmatprep.subr.bf16.mxu1 %v1348_v53  ;;  %v1441_v53 = vld [vmem:[%s1977_s1 + $0x38c] ss:$16 sps:$4 sm:$0xff]  }
  0x33   :  { %821 = vmatpush2.bf16.msra.mxu0 %v1350_v54  ;;  %v1436_v54 = vld [vmem:[%s1977_s1 + $0x188] ss:$16 sps:$4 sm:$0xff]  }
  0x34   :  { %862 = vmatpush2.bf16.msra.mxu1 %v1351_v55  ;;  %822 = vmatprep.subr.bf16.mxu0 %v1352_v56  ;;  %v1439_v55 = vld [vmem:[%s1977_s1 + $0x388] ss:$16 sps:$4 sm:$0xff]   ;;  %v1444_v56 = vld [vmem:[%s1977_s1 + $0x16c] ss:$16 sps:$4 sm:$0xff]  }
  0x35   :  { %863 = vmatprep.subr.bf16.mxu1 %v1354_v57  ;;  %v1447_v57 = vld [vmem:[%s1977_s1 + $0x36c] ss:$16 sps:$4 sm:$0xff]  }
  0x37   :  { %823 = vmatpush2.bf16.msra.mxu0 %v1356_v58  ;;  %v1442_v58 = vld [vmem:[%s1977_s1 + $0x168] ss:$16 sps:$4 sm:$0xff]  }
  0x38   :  { %864 = vmatpush2.bf16.msra.mxu1 %v1357_v59  ;;  %824 = vmatprep.subr.bf16.mxu0 %v1358_v60  ;;  %v1445_v59 = vld [vmem:[%s1977_s1 + $0x368] ss:$16 sps:$4 sm:$0xff]   ;;  %v1450_v60 = vld [vmem:[%s1977_s1 + $0x14c] ss:$16 sps:$4 sm:$0xff]  }
  0x39   :  { %865 = vmatprep.subr.bf16.mxu1 %v1360_v61  ;;  %v1453_v61 = vld [vmem:[%s1977_s1 + $0x34c] ss:$16 sps:$4 sm:$0xff]  }
  0x3b   :  { %825 = vmatpush2.bf16.msra.mxu0 %v1362_v62  ;;  %v1448_v62 = vld [vmem:[%s1977_s1 + $0x148] ss:$16 sps:$4 sm:$0xff]  }
  0x3c   :  { %866 = vmatpush2.bf16.msra.mxu1 %v1363_v63  ;;  %826 = vmatprep.subr.bf16.mxu0 %v1364_v0  ;;  %v1451_v63 = vld [vmem:[%s1977_s1 + $0x348] ss:$16 sps:$4 sm:$0xff]   ;;  %v1456_v0 = vld [vmem:[%s1977_s1 + $0x12c] ss:$16 sps:$4 sm:$0xff]  }
  0x3d   :  { %867 = vmatprep.subr.bf16.mxu1 %v1366_v1  ;;  %v1459_v1 = vld [vmem:[%s1977_s1 + $0x32c] ss:$16 sps:$4 sm:$0xff]  }
  0x3f   :  { %827 = vmatpush2.bf16.msra.mxu0 %v1368_v2  ;;  %v1454_v2 = vld [vmem:[%s1977_s1 + $0x128] ss:$16 sps:$4 sm:$0xff]  }
  0x40   :  { %868 = vmatpush2.bf16.msra.mxu1 %v1369_v3  ;;  %878 = vmatprep.subr.bf16.mxu0 %v1372_v6  ;;  %v1457_v3 = vld [vmem:[%s1977_s1 + $0x328] ss:$16 sps:$4 sm:$0xff]  }
  0x41   :  { %919 = vmatprep.subr.bf16.mxu1 %v1375_v7  ;;  %v1460_v6 = vld [vmem:[%s1977_s1 + $0x108] ss:$16 sps:$4 sm:$0xff]  }
  0x42   :  { %829 = vmatmul.mubr.bf16.vlgmr.msra.gmra.mxu0 %v1718_v8  ;;  %v1463_v7 = vld [vmem:[%s1977_s1 + $0x308] ss:$16 sps:$4 sm:$0xff]  }
  0x43   :  { %870 = vmatmul.mubr.bf16.vlgmr.msra.gmra.mxu1 %v1720_v9  ;;  %879 = vmatpush1.bf16.msra.mxu0 %v1370_v10 }
  0x44   :  { %920 = vmatpush1.bf16.msra.mxu1 %v1373_v11  ;;  %880 = vmatprep.subr.bf16.mxu0 %v1378_v12 }
  0x45   :  { %921 = vmatprep.subr.bf16.mxu1 %v1381_v13  ;;  %910 = vmatprep.mubr.bf16.mxu0 %v1652_v49  ;;  %v1435_v49 = vld [vmem:[%s1977_s1 + $0x3ac] ss:$16 sps:$4 sm:$0xff]  }
  0x46   :  { %951 = vmatprep.mubr.bf16.mxu1 %v27_v52  ;;  %v1438_v52 = vld [vmem:[%s1977_s1 + $0x18c] ss:$16 sps:$4 sm:$0xff]  }
  0x47   :  { %881 = vmatpush1.bf16.msra.mxu0 %v1376_v14 }
  0x48   :  { %922 = vmatpush1.bf16.msra.mxu1 %v1379_v15  ;;  %882 = vmatprep.subr.bf16.mxu0 %v1384_v16 }
  0x49   :  { %923 = vmatprep.subr.bf16.mxu1 %v1387_v17 }
  0x4b   :  { %883 = vmatpush1.bf16.msra.mxu0 %v1382_v18 }
  0x4c   :  { %924 = vmatpush1.bf16.msra.mxu1 %v1385_v19  ;;  %884 = vmatprep.subr.bf16.mxu0 %v1390_v20 }
  0x4d   :  { %925 = vmatprep.subr.bf16.mxu1 %v1393_v21 }
  0x4f   :  { %885 = vmatpush1.bf16.msra.mxu0 %v1388_v22 }
  0x50   :  { %926 = vmatpush1.bf16.msra.mxu1 %v1391_v23  ;;  %886 = vmatprep.subr.bf16.mxu0 %v1396_v24 }
  0x51   :  { %927 = vmatprep.subr.bf16.mxu1 %v1399_v25  ;;  %v992_v25 = vlaneseq }
  0x53   :  { %887 = vmatpush1.bf16.msra.mxu0 %v1394_v26 }
  0x54   :  { %928 = vmatpush1.bf16.msra.mxu1 %v1397_v27  ;;  %888 = vmatprep.subr.bf16.mxu0 %v1402_v28  ;;  %v1913_v28 = vshrl.u32 %v992_v25, 7 }
  0x55   :  { %929 = vmatprep.subr.bf16.mxu1 %v1405_v29 }
  0x56   :  { %vm994_vm0 = vcmp.lt.s32.totalorder %v1913_v28, 2 }
  0x57   :  { %889 = vmatpush1.bf16.msra.mxu0 %v1400_v30 }
  0x58   :  { %930 = vmatpush1.bf16.msra.mxu1 %v1403_v31  ;;  %890 = vmatprep.subr.bf16.mxu0 %v1408_v32 }
  0x59   :  { %931 = vmatprep.subr.bf16.mxu1 %v1411_v33 }
  0x5b   :  { %891 = vmatpush1.bf16.msra.mxu0 %v1406_v34 }
  0x5c   :  { %932 = vmatpush1.bf16.msra.mxu1 %v1409_v35  ;;  %892 = vmatprep.subr.bf16.mxu0 %v1414_v36 }
  0x5d   :  { %933 = vmatprep.subr.bf16.mxu1 %v1417_v37 }
  0x5f   :  { %893 = vmatpush1.bf16.msra.mxu0 %v1412_v38 }
  0x60   :  { %934 = vmatpush1.bf16.msra.mxu1 %v1415_v39  ;;  %894 = vmatprep.subr.bf16.mxu0 %v1420_v40 }
  0x61   :  { %935 = vmatprep.subr.bf16.mxu1 %v1423_v41 }
  0x63   :  { %895 = vmatpush2.bf16.msra.mxu0 %v1418_v42 }
  0x64   :  { %936 = vmatpush2.bf16.msra.mxu1 %v1421_v43  ;;  %896 = vmatprep.subr.bf16.mxu0 %v1426_v44 }
  0x65   :  { %937 = vmatprep.subr.bf16.mxu1 %v1429_v45 }
  0x67   :  { %897 = vmatpush2.bf16.msra.mxu0 %v1424_v46 }
  0x68   :  { %938 = vmatpush2.bf16.msra.mxu1 %v1427_v47  ;;  %898 = vmatprep.subr.bf16.mxu0 %v1432_v48 }
  0x69   :  { %939 = vmatprep.subr.bf16.mxu1 %v1435_v49 }
  0x6b   :  { %899 = vmatpush2.bf16.msra.mxu0 %v1430_v50 }
  0x6c   :  { %940 = vmatpush2.bf16.msra.mxu1 %v1433_v51  ;;  %900 = vmatprep.subr.bf16.mxu0 %v1438_v52 }
  0x6d   :  { %941 = vmatprep.subr.bf16.mxu1 %v1441_v53 }
  0x6f   :  { %901 = vmatpush2.bf16.msra.mxu0 %v1436_v54 }
  0x70   :  { %942 = vmatpush2.bf16.msra.mxu1 %v1439_v55  ;;  %902 = vmatprep.subr.bf16.mxu0 %v1444_v56 }
  0x71   :  { %943 = vmatprep.subr.bf16.mxu1 %v1447_v57 }
  0x73   :  { %903 = vmatpush2.bf16.msra.mxu0 %v1442_v58 }
  0x74   :  { %944 = vmatpush2.bf16.msra.mxu1 %v1445_v59  ;;  %904 = vmatprep.subr.bf16.mxu0 %v1450_v60 }
  0x75   :  { %945 = vmatprep.subr.bf16.mxu1 %v1453_v61 }
  0x77   :  { %905 = vmatpush2.bf16.msra.mxu0 %v1448_v62 }
  0x78   :  { %946 = vmatpush2.bf16.msra.mxu1 %v1451_v63  ;;  %906 = vmatprep.subr.bf16.mxu0 %v1456_v0 }
  0x79   :  { %947 = vmatprep.subr.bf16.mxu1 %v1459_v1 }
  0x7b   :  { %907 = vmatpush2.bf16.msra.mxu0 %v1454_v2 }
  0x7c   :  { %948 = vmatpush2.bf16.msra.mxu1 %v1457_v3  ;;  %908 = vmatprep.subr.bf16.mxu0 %v1462_v4 }
  0x7d   :  { %949 = vmatprep.subr.bf16.mxu1 %v1465_v5 }
  0x7f   :  { %909 = vmatpush2.bf16.msra.mxu0 %v1460_v6 }
  0x80   :  { %950 = vmatpush2.bf16.msra.mxu1 %v1463_v7 }
  0x82   :  { %911 = vmatmul.mubr.bf16.vlgmr.msra.gmra.mxu0 %v1718_v8 }
  0x83   :  { %952 = vmatmul.mubr.bf16.vlgmr.msra.gmra.mxu1 %v1720_v9 }
 0x102   :  { %v830_v10 = vpop.f32.mrf.mxu0 }
 0x103   :  { %v871_v11 = vpop.f32.mrf.mxu1 }
 0x104   :  { %v872_v12 = vadd.f32 %v871_v11, %v830_v10  ;;  %v832_v13 = vpop.f32.mrf.mxu0 }
 0x105   :  { %v873_v14 = vpop.f32.mrf.mxu1 }
 0x106   :  { %v960_v15 = vrot.slane %v872_v12, 4  ;;  %v874_v16 = vadd.f32 %v873_v14, %v832_v13  ;;  %v834_v17 = vpop.f32.mrf.mxu0 }
 0x107   :  { %v875_v18 = vpop.f32.mrf.mxu1 }
 0x108   :  { %v961_v19 = vadd.f32 %v960_v15, %v872_v12  ;;  %v966_v20 = vrot.slane %v874_v16, 4  ;;  %v835_v21 = vpop.f32.mrf.mxu0 }
 0x109   :  { %v876_v22 = vpop.f32.mrf.mxu1 }
 0x10a   :  { %v962_v23 = vrot.slane %v961_v19, 2  ;;  %v967_v24 = vadd.f32 %v966_v20, %v874_v16 }
 0x10c   :  { %v963_v26 = vadd.f32 %v962_v23, %v961_v19  ;;  %v968_v8 = vrot.slane %v967_v24, 2 }
 0x10e   :  { %v964_v27 = vrot.slane %v963_v26, 1  ;;  %v969_v9 = vadd.f32 %v968_v8, %v967_v24 }
 0x110   :  { %v965_v29 = vadd.f32 %v964_v27, %v963_v26  ;;  %v970_v30 = vrot.slane %v969_v9, 1 }
 0x112   :  { %v984_v31 = vmul.f32 0.5, %v965_v29  ;;  %v971_v32 = vadd.f32 %v970_v30, %v969_v9 }
 0x114   :  { %v988_v33 = vsub.f32 %v872_v12, %v984_v31  ;;  %v985_v34 = vmul.f32 0.5, %v971_v32 }
 0x116   :  { %v1918_v35 = vsel %vm994_vm0, %v988_v33, 0.0  ;;  %v989_v36 = vsub.f32 %v874_v16, %v985_v34 }
 0x117   :  { %v999_v37 = vmul.f32 %v1918_v35, %v1918_v35 }
 0x118   :  { %v1924_v38 = vsel %vm994_vm0, %v989_v36, 0.0 }
 0x119   :  { %v1003_v39 = vrot.slane %v999_v37, 4  ;;  %v1000_v40 = vmul.f32 %v1924_v38, %v1924_v38 }
 0x11b   :  { %v1004_v41 = vadd.f32 %v1003_v39, %v999_v37  ;;  %v1009_v42 = vrot.slane %v1000_v40, 4 }
 0x11d   :  { %v1005_v43 = vrot.slane %v1004_v41, 2  ;;  %v1010_v44 = vadd.f32 %v1009_v42, %v1000_v40 }
 0x11f   :  { %v1006_v45 = vadd.f32 %v1005_v43, %v1004_v41  ;;  %v1011_v46 = vrot.slane %v1010_v44, 2 }
 0x121   :  { %v1007_v47 = vrot.slane %v1006_v45, 1  ;;  %v1012_v48 = vadd.f32 %v1011_v46, %v1010_v44  ;;  %v1474_v44 = vmov 1966171168  }
 0x123   :  { %v1008_v49 = vadd.f32 %v1007_v47, %v1006_v45  ;;  %v1013_v50 = vrot.slane %v1012_v48, 1  ;;  %v1047_v45 = vunpack.c.l.s4 %v1474_v44 }
 0x125   :  { %v1027_v51 = vmul.f32 0.5, %v1008_v49  ;;  %v1014_v52 = vadd.f32 %v1013_v50, %v1012_v48  ;;  %v1048_v46 = vunpack.c.0.s8 %v1047_v45 }
 0x127   :  { %v1032_v53 = vadd.f32 1e-05, %v1027_v51  ;;  %v1028_v54 = vmul.f32 0.5, %v1014_v52  ;;  %v1051_v48 = vsub.s32 %v1048_v46, %v1913_v28 }
 0x129   :  { %v1033_v55 = vadd.f32 1e-05, %v1028_v54  ;;  %1466 = vrsqrt.f32 %v1032_v53  ;;  %v1031_v54 = vld [vmem:[%s1979_s2] sm:$0xf] }
 0x12b   :  { %1468 = vrsqrt.f32 %v1033_v55  ;;  %v1073_v55 = vsub.s32 0, %v1913_v28 }
 0x136   :  { %v1467_v56 = vpop.eup %1466 }
 0x138   :  { %v1469_v57 = vpop.eup %1468 }
 0x139   :  { %v1044_v58 = vcombine.low %v1467_v56, %v1469_v57  ;;  %v1077_v57 = vsub.s32 1, %v1913_v28 }
 0x13b   :  { %v1052_v51 = vrot.slane %v1044_v58, %v1051_v48 }
 0x142   :  { %v912_v59 = vpop.f32.mrf.mxu0 }
 0x143   :  { %v953_v60 = vpop.f32.mrf.mxu1 }
 0x144   :  { %v954_v61 = vadd.f32 %v953_v60, %v912_v59  ;;  %v914_v62 = vpop.f32.mrf.mxu0  ;;  %v1081_v59 = vsub.s32 2, %v1913_v28  ;;  %v1085_v60 = vsub.s32 3, %v1913_v28 }
 0x145   :  { %v955_v63 = vpop.f32.mrf.mxu1 }
 0x146   :  { %v972_v0 = vrot.slane %v954_v61, 4  ;;  %v956_v1 = vadd.f32 %v955_v63, %v914_v62  ;;  %v916_v2 = vpop.f32.mrf.mxu0 }
 0x147   :  { %v957_v3 = vpop.f32.mrf.mxu1 }
 0x148   :  { %v973_v4 = vadd.f32 %v972_v0, %v954_v61  ;;  %v978_v5 = vrot.slane %v956_v1, 4  ;;  %v917_v6 = vpop.f32.mrf.mxu0 }
 0x149   :  { %v958_v7 = vpop.f32.mrf.mxu1 }
 0x14a   :  { %v974_v10 = vrot.slane %v973_v4, 2  ;;  %v979_v11 = vadd.f32 %v978_v5, %v956_v1 }
 0x14c   :  { %v975_v12 = vadd.f32 %v974_v10, %v973_v4  ;;  %v980_v13 = vrot.slane %v979_v11, 2 }
 0x14e   :  { %v976_v14 = vrot.slane %v975_v12, 1  ;;  %v981_v15 = vadd.f32 %v980_v13, %v979_v11  ;;  %v1122_v13 = vld [vmem:[%s1981_s4 + $0x8] sm:$0xff] }
 0x150   :  { %v977_v16 = vadd.f32 %v976_v14, %v975_v12  ;;  %v982_v17 = vrot.slane %v981_v15, 1  ;;  %v1121_v12 = vld [vmem:[%s1981_s4] sm:$0xff]  ;;  %v1123_v14 = vld [vmem:[%s1981_s4 + $0x10] sm:$0xff] }
 0x152   :  { %v986_v18 = vmul.f32 0.5, %v977_v16  ;;  %v983_v19 = vadd.f32 %v982_v17, %v981_v15 }
 0x154   :  { %v990_v20 = vsub.f32 %v954_v61, %v986_v18  ;;  %v987_v21 = vmul.f32 0.5, %v983_v19  ;;  %v1095_v61 = vld [vmem:[%s1980_s3] sm:$0xf] }
 0x155   :  { %v1100_v62 = vrot.slane %v1095_v61, %v1073_v55  ;;  %v1104_v63 = vrot.slane %v1095_v61, %v1077_v57  ;;  %v1108_v0 = vrot.slane %v1095_v61, %v1081_v59 }
 0x156   :  { %v997_v22 = vsel %vm994_vm0, %v990_v20, 0.0  ;;  %v991_v23 = vsub.f32 %v956_v1, %v987_v21  ;;  %v1112_v1 = vrot.slane %v1095_v61, %v1085_v60 }
 0x157   :  { %v1001_v24 = vmul.f32 %v997_v22, %v997_v22 }
 0x158   :  { %v998_v25 = vsel %vm994_vm0, %v991_v23, 0.0 }
 0x159   :  { %v1015_v26 = vrot.slane %v1001_v24, 4  ;;  %v1002_v8 = vmul.f32 %v998_v25, %v998_v25 }
 0x15b   :  { %v1016_v27 = vadd.f32 %v1015_v26, %v1001_v24  ;;  %v1021_v9 = vrot.slane %v1002_v8, 4 }
 0x15d   :  { %v1017_v29 = vrot.slane %v1016_v27, 2  ;;  %v1022_v30 = vadd.f32 %v1021_v9, %v1002_v8 }
 0x15f   :  { %v1018_v31 = vadd.f32 %v1017_v29, %v1016_v27  ;;  %v1023_v32 = vrot.slane %v1022_v30, 2 }
 0x161   :  { %v1019_v33 = vrot.slane %v1018_v31, 1  ;;  %v1024_v34 = vadd.f32 %v1023_v32, %v1022_v30 }
 0x163   :  { %v1020_v36 = vadd.f32 %v1019_v33, %v1018_v31  ;;  %v1025_v37 = vrot.slane %v1024_v34, 1 }
 0x165   :  { %v1029_v39 = vmul.f32 0.5, %v1020_v36  ;;  %v1026_v40 = vadd.f32 %v1025_v37, %v1024_v34 }
 0x167   :  { %v1034_v41 = vadd.f32 1e-05, %v1029_v39  ;;  %v1030_v42 = vmul.f32 0.5, %v1026_v40 }
 0x169   :  { %v1035_v43 = vadd.f32 1e-05, %v1030_v42  ;;  %1470 = vrsqrt.f32 %v1034_v41 }
 0x16b   :  { %1472 = vrsqrt.f32 %v1035_v43 }
 0x176   :  { %v1471_v47 = vpop.eup %1470 }
 0x178   :  { %v1473_v49 = vpop.eup %1472 }
 0x179   :  { %v1045_v50 = vcombine.low %v1471_v47, %v1473_v49 }
 0x17b   :  { %v1059_v52 = vrot.slane %v1045_v50, %v1051_v48 }
 0x17d   :  { %v1060_v53 = vcombine.low %v1052_v51, %v1059_v52 }
 0x17f   :  { %v1067_v56 = vrot.slane %v1060_v53, %v1051_v48 }
 0x181   :  { %v1069_v58 = vmul.f32 %v1067_v56, %v1031_v54 }
 0x183   :  { %v1074_v2 = vrot.slane %v1069_v58, %v1073_v55  ;;  %v1078_v3 = vrot.slane %v1069_v58, %v1077_v57  ;;  %v1082_v4 = vrot.slane %v1069_v58, %v1081_v59  ;;  %v1086_v5 = vrot.slane %v1069_v58, %v1085_v60 }
 0x185   :  { %v1091_v6 = vmul.f32 %v1074_v2, %v1918_v35  ;;  %v1092_v7 = vmul.f32 %v1078_v3, %v1924_v38  ;;  %v1093_v10 = vmul.f32 %v1082_v4, %v997_v22  ;;  %v1094_v11 = vmul.f32 %v1086_v5, %v998_v25  ;;  %v1124_v35 = vld [vmem:[%s1981_s4 + $0x18] sm:$0xff] }
 0x187   :  { %v1117_v15 = vadd.f32 %v1100_v62, %v1091_v6  ;;  %v1118_v38 = vadd.f32 %v1104_v63, %v1092_v7  ;;  %v1119_v16 = vadd.f32 %v1108_v0, %v1093_v10  ;;  %v1120_v17 = vadd.f32 %v1112_v1, %v1094_v11 }
 0x189   :  { %v1125_v18 = vadd.f32 %v1121_v12, %v1117_v15  ;;  %v1126_v19 = vadd.f32 %v1122_v13, %v1118_v38  ;;  %v1127_v20 = vadd.f32 %v1123_v14, %v1119_v16  ;;  %v1128_v21 = vadd.f32 %v1124_v35, %v1120_v17 }
 0x18b   :  { %v1129_v22 = vmax.f32 %v1125_v18, 0.0  ;;  %v1130_v23 = vmax.f32 %v1126_v19, 0.0  ;;  %v1131_v24 = vmax.f32 %v1127_v20, 0.0  ;;  %v1132_v25 = vmax.f32 %v1128_v21, 0.0 }
 0x18d   :  { %v1133_v26 = vsel %vm994_vm0, %v1129_v22, 0.0  ;;  %v1134_v8 = vsel %vm994_vm0, %v1130_v23, 0.0  ;;  %v1135_v27 = vsel %vm994_vm0, %v1131_v24, 0.0  ;;  %v1136_v9 = vsel %vm994_vm0, %v1132_v25, 0.0 }
 0x18e   :  { %1137 = vst [vmem:[%s1982_s5] sm:$0xff] %v1133_v26  ;;  %1138 = vst [vmem:[%s1982_s5 + $0x8] sm:$0xff] %v1134_v8 }
 0x18f   :  { %1139 = vst [vmem:[%s1982_s5 + $0x10] sm:$0xff] %v1135_v27  ;;  %1140 = vst [vmem:[%s1982_s5 + $0x18] sm:$0xff] %v1136_v9 }

// kernel: resnet18_forward.37
= control target key start
LH: loop header
LB: loop body
LE: loop exit
PB: predicated region body
PF: predicated region fallthrough
CT: control target
= control target key end

     0   :  { %vm366_vm0 = vcmask 80896   ;;  %s615_s1 = inlined_call_operand.vmem [shape: bf16[512,10], index: 1, kind: input, shape index: {}]   ;;  %s616_s0 = inlined_call_operand.vmem [shape: f32[8,512], index: 0, kind: input, shape index: {}]   ;;  %s617_s2 = inlined_call_operand.vmem [shape: f32[1,10], index: 2, kind: input, shape index: {}]   ;;  %s618_s3 = inlined_call_operand.vmem [shape: f32[8,10], index: 3, kind: output, shape index: {}]  }
   0x1   :  { %v449_v0 = vld [vmem:[%s615_s1 + $0x78] sm:$0xff]   ;;  %v453_v4 = vld [vmem:[%s615_s1 + $0x70] sm:$0xff]   ;;  %v457_v8 = vld [vmem:[%s615_s1 + $0x68] sm:$0xff]  }
   0x2   :  { %v450_v1 = vld [vmem:[%s615_s1 + $0xf8] sm:$0xff]   ;;  %405 = vmatprep.subr.bf16.mxu0 %v449_v0  ;;  %v454_v5 = vld [vmem:[%s615_s1 + $0xf0] sm:$0xff]   ;;  %v458_v9 = vld [vmem:[%s615_s1 + $0xe8] sm:$0xff]  }
   0x3   :  { %v451_v2 = vld [vmem:[%s615_s1 + $0x38] sm:$0xff]   ;;  %427 = vmatprep.subr.bf16.mxu1 %v450_v1  ;;  %v455_v6 = vld [vmem:[%s615_s1 + $0x30] sm:$0xff]   ;;  %v459_v10 = vld [vmem:[%s615_s1 + $0x28] sm:$0xff]  }
   0x4   :  { %v452_v3 = vld [vmem:[%s615_s1 + $0xb8] sm:$0xff]   ;;  %406 = vmatpush3.bf16.msra.mxu0 %v451_v2  ;;  %v456_v7 = vld [vmem:[%s615_s1 + $0xb0] sm:$0xff]   ;;  %v460_v11 = vld [vmem:[%s615_s1 + $0xa8] sm:$0xff]  }
   0x5   :  { %428 = vmatpush3.bf16.msra.mxu1 %v452_v3  ;;  %407 = vmatprep.subr.bf16.mxu0 %v453_v4  ;;  %v461_v12 = vld [vmem:[%s615_s1 + $0x60] sm:$0xff]   ;;  %v465_v16 = vld [vmem:[%s615_s1 + $0x58] sm:$0xff]   ;;  %v469_v20 = vld [vmem:[%s615_s1 + $0x50] sm:$0xff]  }
   0x6   :  { %429 = vmatprep.subr.bf16.mxu1 %v454_v5  ;;  %v462_v13 = vld [vmem:[%s615_s1 + $0xe0] sm:$0xff]   ;;  %v466_v17 = vld [vmem:[%s615_s1 + $0xd8] sm:$0xff]   ;;  %v470_v21 = vld [vmem:[%s615_s1 + $0xd0] sm:$0xff]  }
   0x7   :  { %v463_v14 = vld [vmem:[%s615_s1 + $0x20] sm:$0xff]   ;;  %v467_v18 = vld [vmem:[%s615_s1 + $0x18] sm:$0xff]   ;;  %v471_v22 = vld [vmem:[%s615_s1 + $0x10] sm:$0xff]  }
   0x8   :  { %408 = vmatpush3.bf16.msra.mxu0 %v455_v6  ;;  %v464_v15 = vld [vmem:[%s615_s1 + $0xa0] sm:$0xff]   ;;  %v468_v19 = vld [vmem:[%s615_s1 + $0x98] sm:$0xff]   ;;  %v472_v23 = vld [vmem:[%s615_s1 + $0x90] sm:$0xff]  }
   0x9   :  { %430 = vmatpush3.bf16.msra.mxu1 %v456_v7  ;;  %409 = vmatprep.subr.bf16.mxu0 %v457_v8  ;;  %v473_v24 = vld [vmem:[%s615_s1 + $0x48] sm:$0xff]   ;;  %v477_v28 = vld [vmem:[%s615_s1 + $0x40] sm:$0xff]   ;;  %v18_v33 = vld [vmem:[%s616_s0 + $0x18] sm:$0xff] }
   0xa   :  { %431 = vmatprep.subr.bf16.mxu1 %v458_v9  ;;  %v474_v25 = vld [vmem:[%s615_s1 + $0xc8] sm:$0xff]   ;;  %v478_v29 = vld [vmem:[%s615_s1 + $0xc0] sm:$0xff]   ;;  %v22_v36 = vpack.c.bf16 %v18_v33, %v18_v33  ;;  %v17_v38 = vld [vmem:[%s616_s0 + $0x10] sm:$0xff] }
   0xb   :  { %v475_v26 = vld [vmem:[%s615_s1 + $0x8] sm:$0xff]   ;;  %v479_v30 = vld [vmem:[%s615_s1] sm:$0xff]   ;;  %v21_v39 = vpack.c.bf16 %v17_v38, %v17_v38 }
   0xc   :  { %410 = vmatpush3.bf16.msra.mxu0 %v459_v10  ;;  %v476_v27 = vld [vmem:[%s615_s1 + $0x88] sm:$0xff]   ;;  %v480_v31 = vld [vmem:[%s615_s1 + $0x80] sm:$0xff]   ;;  %358 = vmatprep.mubr.bf16.mxu1 %v22_v36 }
   0xd   :  { %432 = vmatpush3.bf16.msra.mxu1 %v460_v11  ;;  %411 = vmatprep.subr.bf16.mxu0 %v461_v12  ;;  %v16_v32 = vld [vmem:[%s616_s0 + $0x8] sm:$0xff]  ;;  %v15_v34 = vld [vmem:[%s616_s0] sm:$0xff] }
   0xe   :  { %433 = vmatprep.subr.bf16.mxu1 %v462_v13  ;;  %v20_v35 = vpack.c.bf16 %v16_v32, %v16_v32  ;;  %v19_v37 = vpack.c.bf16 %v15_v34, %v15_v34  ;;  %v372_v42 = vld [vmem:[%s617_s2] ss:$0 sm:$0xff] }
  0x10   :  { %412 = vmatpush3.bf16.msra.mxu0 %v463_v14  ;;  %318 = vmatprep.mubr.bf16.mxu0 %v20_v35 }
  0x11   :  { %434 = vmatpush3.bf16.msra.mxu1 %v464_v15  ;;  %413 = vmatprep.subr.bf16.mxu0 %v465_v16 }
  0x12   :  { %435 = vmatprep.subr.bf16.mxu1 %v466_v17 }
  0x14   :  { %414 = vmatpush3.bf16.msra.mxu0 %v467_v18 }
  0x15   :  { %436 = vmatpush3.bf16.msra.mxu1 %v468_v19  ;;  %415 = vmatprep.subr.bf16.mxu0 %v469_v20 }
  0x16   :  { %437 = vmatprep.subr.bf16.mxu1 %v470_v21 }
  0x18   :  { %416 = vmatpush3.bf16.msra.mxu0 %v471_v22 }
  0x19   :  { %438 = vmatpush3.bf16.msra.mxu1 %v472_v23  ;;  %417 = vmatprep.subr.bf16.mxu0 %v473_v24 }
  0x1a   :  { %439 = vmatprep.subr.bf16.mxu1 %v474_v25 }
  0x1c   :  { %418 = vmatpush3.bf16.msra.mxu0 %v475_v26 }
  0x1d   :  { %440 = vmatpush3.bf16.msra.mxu1 %v476_v27  ;;  %419 = vmatprep.subr.bf16.mxu0 %v477_v28 }
  0x1e   :  { %441 = vmatprep.subr.bf16.mxu1 %v478_v29 }
  0x20   :  { %420 = vmatpush3.bf16.msra.mxu0 %v479_v30 }
  0x21   :  { %442 = vmatpush3.bf16.msra.mxu1 %v480_v31 }
  0x23   :  { %319 = vmatmul.mubr.bf16.vlgmr.msra.gmra.mxu0 %v19_v37 }
  0x24   :  { %359 = vmatmul.mubr.bf16.vlgmr.msra.gmra.mxu1 %v21_v39 }
  0xe3   :  { %v421_v40 = vpop.f32.mrf.mxu0 }
  0xe4   :  { %v443_v41 = vpop.f32.mrf.mxu1 }
  0xe5   :  { %v422_v43 = vpop.f32.mrf.mxu0 }
  0xe6   :  { %v444_v44 = vpop.f32.mrf.mxu1  ;;  %v423_v45 = vadd.f32 %v422_v43, %v421_v40 }
  0xe7   :  { %v424_v46 = vpop.f32.mrf.mxu0  ;;  %v445_v49 = vadd.f32 %v444_v44, %v443_v41 }
  0xe8   :  { %v446_v47 = vpop.f32.mrf.mxu1  ;;  %v321_v48 = vadd.f32 %v423_v45, %v372_v42 }
  0xe9   :  { %v425_v50 = vpop.f32.mrf.mxu0 }
  0xea   :  { %v447_v51 = vpop.f32.mrf.mxu1  ;;  %v361_v52 = vadd.f32 %v445_v49, %v321_v48 }
  0xec   :  { %367 = vst.msk [vmem:[%s618_s3] sm:$0xff] %vm366_vm0, %v361_v52 }

</bundles_post_ra>
